<compile_context>
chip_gen: v5e
topology: v5e:2x2
jax: 0.10.0
libtpu: 0.0.40
codegen_flags: <defaults>
</compile_context>

<pallas_src>
import math

import jax
import jax.numpy as jnp
from jax.experimental import pallas as pl
from jax.experimental.pallas import tpu as pltpu


# ----------------------------------------------------------------------------
# Shared in-kernel math
# ----------------------------------------------------------------------------
def _conv_math(x, adj, gate, w_root, w_rel, b):
    """PyG GraphConv (aggr='add') + ReLU on gated dense node features.

    x_in = x * gate    (0 on dropped/padded nodes)
    agg  = adj @ x_in  (messages j -> i; dropped sources contribute 0)
    h    = relu(x_in @ W_root + agg @ W_rel + bias)
    """
    bsz, n, f = x.shape
    x_in = x * gate                                                  # (B, N, F)
    agg = jnp.einsum("bij,bjf->bif", adj, x_in,
                     preferred_element_type=jnp.float32)             # (B, N, F)
    h = jnp.dot(x_in.reshape(bsz * n, f), w_root,
                preferred_element_type=jnp.float32)
    h = h + jnp.dot(agg.reshape(bsz * n, f), w_rel,
                    preferred_element_type=jnp.float32)
    h = jnp.maximum(h + b, 0.0)                                      # (B*N, C)
    return x_in, h.reshape(bsz, n, -1)


def _readout_math(x_in, sel):
    """cat([global_max_pool, global_mean_pool]) over selected nodes.

    x_in is already gated (0 outside the selection), sel is (B, N, 1) 1/0.
    """
    cnt = jnp.sum(sel, axis=1)                                       # (B, 1)
    gmp = jnp.max(jnp.where(sel > 0.0, x_in, jnp.float32(-1e30)), axis=1)
    gmp = jnp.where(cnt > 0.0, gmp, 0.0)                             # (B, F)
    gap = jnp.sum(x_in, axis=1) / jnp.maximum(cnt, 1.0)              # (B, F)
    return jnp.concatenate([gmp, gap], axis=-1)                      # (B, 2F)


# ----------------------------------------------------------------------------
# Pallas kernels
# ----------------------------------------------------------------------------
def _conv_kernel(x_ref, adj_ref, gate_ref, wr_ref, we_ref, b_ref, h_ref):
    _, h = _conv_math(x_ref[0], adj_ref[0], gate_ref[0],
                      wr_ref[0], we_ref[0], b_ref[0])
    h_ref[0] = h


def _conv_readout_kernel(x_ref, adj_ref, gate_ref, sel_ref,
                         wr_ref, we_ref, b_ref, h_ref, r_ref):
    x_in, h = _conv_math(x_ref[0], adj_ref[0], gate_ref[0],
                         wr_ref[0], we_ref[0], b_ref[0])
    h_ref[0] = h
    # readout of the *previous* pooled layer (shares x_in with the conv above)
    r_ref[0] = _readout_math(x_in, sel_ref[0])


def _readout_mlp_kernel(h_ref, gate_ref, sel_ref, racc_ref,
                        w0_ref, b0_ref, w1_ref, b1_ref,
                        w2_ref, b2_ref, w3_ref, b3_ref, o_ref):
    """Final per-view readout + branch concat + fused mlp0..mlp3 in VMEM."""
    n_views = h_ref.shape[0]
    parts = []
    for v in range(n_views):
        x_in = h_ref[v] * gate_ref[v]
        parts.append(racc_ref[v] + _readout_math(x_in, sel_ref[v]))
    x = jnp.concatenate(parts, axis=-1)                              # (B, 3*256)
    h = jnp.dot(x, w0_ref[...], preferred_element_type=jnp.float32)
    h = jnp.maximum(h + b0_ref[...], 0.0)
    # TODO(synk): F.dropout(p=0.5) between layers — identity in eval mode.
    h = jnp.dot(h, w1_ref[...], preferred_element_type=jnp.float32)
    h = jnp.maximum(h + b1_ref[...], 0.0)
    h = jnp.dot(h, w2_ref[...], preferred_element_type=jnp.float32)
    h = jnp.maximum(h + b2_ref[...], 0.0)
    o_ref[...] = jnp.dot(h, w3_ref[...],
                         preferred_element_type=jnp.float32) + b3_ref[...]


# ----------------------------------------------------------------------------
# pallas_call wrappers
# ----------------------------------------------------------------------------
def branch_conv(x, adj, gate, w_root, w_rel, b):
    V, B, N, Fp = x.shape
    C = w_root.shape[-1]
    return pl.pallas_call(
        _conv_kernel,
        grid=(V,),
        in_specs=[
            pl.BlockSpec((1, B, N, Fp), lambda v: (v, 0, 0, 0)),
            pl.BlockSpec((1, B, N, N), lambda v: (v, 0, 0, 0)),
            pl.BlockSpec((1, B, N, 1), lambda v: (v, 0, 0, 0)),
            pl.BlockSpec((1, Fp, C), lambda v: (v, 0, 0)),
            pl.BlockSpec((1, Fp, C), lambda v: (v, 0, 0)),
            pl.BlockSpec((1, 1, C), lambda v: (v, 0, 0)),
        ],
        out_specs=pl.BlockSpec((1, B, N, C), lambda v: (v, 0, 0, 0)),
        out_shape=jax.ShapeDtypeStruct((V, B, N, C), jnp.float32),
        compiler_params=pltpu.CompilerParams(dimension_semantics=("parallel",)),
    )(x, adj, gate, w_root, w_rel, b)


def branch_conv_readout(x, adj, gate, sel_f, w_root, w_rel, b):
    V, B, N, Cin = x.shape
    C = w_root.shape[-1]
    return pl.pallas_call(
        _conv_readout_kernel,
        grid=(V,),
        in_specs=[
            pl.BlockSpec((1, B, N, Cin), lambda v: (v, 0, 0, 0)),
            pl.BlockSpec((1, B, N, N), lambda v: (v, 0, 0, 0)),
            pl.BlockSpec((1, B, N, 1), lambda v: (v, 0, 0, 0)),
            pl.BlockSpec((1, B, N, 1), lambda v: (v, 0, 0, 0)),
            pl.BlockSpec((1, Cin, C), lambda v: (v, 0, 0)),
            pl.BlockSpec((1, Cin, C), lambda v: (v, 0, 0)),
            pl.BlockSpec((1, 1, C), lambda v: (v, 0, 0)),
        ],
        out_specs=[
            pl.BlockSpec((1, B, N, C), lambda v: (v, 0, 0, 0)),
            pl.BlockSpec((1, B, 2 * Cin), lambda v: (v, 0, 0)),
        ],
        out_shape=(jax.ShapeDtypeStruct((V, B, N, C), jnp.float32),
                   jax.ShapeDtypeStruct((V, B, 2 * Cin), jnp.float32)),
        compiler_params=pltpu.CompilerParams(dimension_semantics=("parallel",)),
    )(x, adj, gate, sel_f, w_root, w_rel, b)


def readout_mlp(h, gate, sel_f, r_acc, params):
    B = h.shape[1]
    n_cat = params["mlp3_w"].shape[1]
    return pl.pallas_call(
        _readout_mlp_kernel,
        out_shape=jax.ShapeDtypeStruct((B, n_cat), jnp.float32),
    )(h, gate, sel_f, r_acc,
      params["mlp0_w"], params["mlp0_b"].reshape(1, -1),
      params["mlp1_w"], params["mlp1_b"].reshape(1, -1),
      params["mlp2_w"], params["mlp2_b"].reshape(1, -1),
      params["mlp3_w"], params["mlp3_b"].reshape(1, -1))


# ----------------------------------------------------------------------------
# TopKPooling (ratio=0.8) — node *selection* (argsort) kept in plain JAX glue;
# score = x.w/||w||, gate = tanh(score) on selected nodes, 0 otherwise.
# ----------------------------------------------------------------------------
def topk_gate(h, p, sel_prev, ratio=0.8):
    # h: (V,B,N,C) conv output, p: (V,C), sel_prev: (V,B,N) bool
    pn = p / jnp.linalg.norm(p, axis=-1, keepdims=True)
    score = jnp.einsum("vbnc,vc->vbn", h, pn)
    score = jnp.where(sel_prev, score, -jnp.inf)
    n_valid = jnp.sum(sel_prev, axis=-1)                             # (V, B)
    k = jnp.ceil(ratio * n_valid.astype(jnp.float32)).astype(jnp.int32)
    order = jnp.argsort(-score, axis=-1)
    rank = jnp.argsort(order, axis=-1)
    sel = (rank < k[..., None]) & sel_prev
    gate = jnp.where(sel, jnp.tanh(score), 0.0).astype(jnp.float32)
    return gate, sel


# ----------------------------------------------------------------------------
# Full forward
# ----------------------------------------------------------------------------
def multi_view_gcn_forward(params, x, adj, mask):
    """x:(V,B,N,F)  adj:(V,B,N,N)  mask:(V,B,N) bool  ->  (B, nCategories)."""
    V, B, N, F = x.shape
    f_pad = params["conv0_wr"].shape[1]
    if F < f_pad:                       # lane-dense conv0 operands (zero rows
        x = jnp.pad(x, ((0, 0), (0, 0), (0, 0), (0, f_pad - F)))     # in W match)

    sel = mask                                             # current node set
    gate = mask.astype(jnp.float32)[..., None]             # (V, B, N, 1)

    # layer 0: conv only (nothing to read out yet)
    h = branch_conv(x, adj, gate,
                    params["conv0_wr"], params["conv0_we"], params["conv0_b"])
    gate2d, sel = topk_gate(h, params["pool0_p"], sel)
    gate = gate2d[..., None]

    # layers 1, 2: conv fused with the readout of the previous pooled layer
    r_acc = None
    for layer in (1, 2):
        h, r_prev = branch_conv_readout(
            h, adj, gate, sel.astype(jnp.float32)[..., None],
            params[f"conv{layer}_wr"], params[f"conv{layer}_we"],
            params[f"conv{layer}_b"])
        r_acc = r_prev if r_acc is None else r_acc + r_prev
        gate2d, sel = topk_gate(h, params[f"pool{layer}_p"], sel)
        gate = gate2d[..., None]

    # final readout (layer 2) + branch concat + 4-layer MLP, all in one kernel
    return readout_mlp(h, gate, sel.astype(jnp.float32)[..., None],
                       r_acc, params)


# ----------------------------------------------------------------------------
# Deterministic parameter init (synthetic; shapes match the torch module,
# stacked over the 3 branches and zero-padded to lane-dense contraction dims)
# ----------------------------------------------------------------------------
def _lin_init(key, din, dout):
    kw, kb = jax.random.split(key)
    s = 1.0 / math.sqrt(din)
    w = jax.random.uniform(kw, (din, dout), jnp.float32, -s, s)
    b = jax.random.uniform(kb, (dout,), jnp.float32, -s, s)
    return w, b


def init_params(key, n_features, n_categories, hidden=128):
    kb_all, k_m0, k_m1, k_m2, k_m3 = jax.random.split(key, 5)
    branch_keys = jax.random.split(kb_all, 3)
    f_pad0 = ((n_features + 127) // 128) * 128
    dims = [(n_features, f_pad0, hidden), (hidden, hidden, hidden),
            (hidden, hidden, hidden)]

    wr = [[] for _ in range(3)]
    we = [[] for _ in range(3)]
    bb = [[] for _ in range(3)]
    pp = [[] for _ in range(3)]
    for v in range(3):
        bk = jax.random.split(branch_keys[v], 9)
        for l, (din, dpad, dout) in enumerate(dims):
            w_root, _ = _lin_init(bk[3 * l], din, dout)
            w_rel, b = _lin_init(bk[3 * l + 1], din, dout)
            wr[l].append(jnp.zeros((dpad, dout), jnp.float32).at[:din].set(w_root))
            we[l].append(jnp.zeros((dpad, dout), jnp.float32).at[:din].set(w_rel))
            bb[l].append(b.reshape(1, dout))
            pp[l].append(jax.random.normal(bk[3 * l + 2], (dout,), jnp.float32))

    params = {}
    for l in range(3):
        params[f"conv{l}_wr"] = jnp.stack(wr[l])       # (3, dpad, 128)
        params[f"conv{l}_we"] = jnp.stack(we[l])       # (3, dpad, 128)
        params[f"conv{l}_b"] = jnp.stack(bb[l])        # (3, 1, 128)
        params[f"pool{l}_p"] = jnp.stack(pp[l])        # (3, 128)
    params["mlp0_w"], params["mlp0_b"] = _lin_init(k_m0, 3 * 2 * hidden, 2 * 2 * hidden)
    params["mlp1_w"], params["mlp1_b"] = _lin_init(k_m1, 2 * 2 * hidden, hidden)
    params["mlp2_w"], params["mlp2_b"] = _lin_init(k_m2, hidden, 64)
    params["mlp3_w"], params["mlp3_b"] = _lin_init(k_m3, 64, n_categories)
    return params


# ----------------------------------------------------------------------------
if __name__ == "__main__":
    n_features, n_categories = 16, 4
    V, B, N = 3, 2, 16  # 3 views, 2 graphs per view, 16 nodes each (dense-pad)

    key = jax.random.PRNGKey(0)
    k_data, k_params = jax.random.split(key)
    kx, ka = jax.random.split(k_data)

    x = jax.random.normal(kx, (V, B, N, n_features), dtype=jnp.float32)
    adj = jax.random.bernoulli(ka, 0.3, (V, B, N, N)).astype(jnp.float32)
    mask = jnp.ones((V, B, N), dtype=jnp.bool_)

    params = init_params(k_params, n_features, n_categories)

    fwd = jax.jit(multi_view_gcn_forward)
    out = jax.block_until_ready(fwd(params, x, adj, mask))

    assert out.shape == (B, n_categories), out.shape
    assert bool(jnp.all(jnp.isfinite(out)))
    print("KERNEL_OK")
</pallas_src>

<mosaic_0001>
module attributes {stable_mosaic.version = 11 : i64} {
  func.func @_conv_kernel(%arg0: i32, %arg1: memref<1x2x16x128xf32, #tpu.memory_space<vmem>>, %arg2: memref<1x2x16x16xf32, #tpu.memory_space<vmem>>, %arg3: memref<1x2x16x1xf32, #tpu.memory_space<vmem>>, %arg4: memref<1x128x128xf32, #tpu.memory_space<vmem>>, %arg5: memref<1x128x128xf32, #tpu.memory_space<vmem>>, %arg6: memref<1x1x128xf32, #tpu.memory_space<vmem>>, %arg7: memref<1x2x16x128xf32, #tpu.memory_space<vmem>>) attributes {dimension_semantics = [#tpu.dimension_semantics<parallel>], iteration_bounds = array<i64: 3>, scalar_prefetch = 0 : i64, scratch_operands = 0 : i64, tpu.core_type = #tpu.core_type<tc>, window_params = [{transform_indices = @transform_0, window_bounds = array<i64: 1, 2, 16, 128>}, {transform_indices = @transform_1, window_bounds = array<i64: 1, 2, 16, 16>}, {transform_indices = @transform_2, window_bounds = array<i64: 1, 2, 16, 1>}, {transform_indices = @transform_3, window_bounds = array<i64: 1, 128, 128>}, {transform_indices = @transform_4, window_bounds = array<i64: 1, 128, 128>}, {transform_indices = @transform_5, window_bounds = array<i64: 1, 1, 128>}, {transform_indices = @transform_6, window_bounds = array<i64: 1, 2, 16, 128>}]} {
    %c0 = arith.constant 0 : index
    %c0_0 = arith.constant 0 : index
    %c0_1 = arith.constant 0 : index
    %c0_2 = arith.constant 0 : index
    %0 = vector.load %arg1[%c0, %c0_0, %c0_1, %c0_2] : memref<1x2x16x128xf32, #tpu.memory_space<vmem>>, vector<1x2x16x128xf32>
    %1 = vector.shape_cast %0 : vector<1x2x16x128xf32> to vector<2x16x128xf32>
    %c0_3 = arith.constant 0 : index
    %c0_4 = arith.constant 0 : index
    %c0_5 = arith.constant 0 : index
    %c0_6 = arith.constant 0 : index
    %2 = vector.load %arg2[%c0_3, %c0_4, %c0_5, %c0_6] : memref<1x2x16x16xf32, #tpu.memory_space<vmem>>, vector<1x2x16x16xf32>
    %3 = vector.shape_cast %2 : vector<1x2x16x16xf32> to vector<2x16x16xf32>
    %c0_7 = arith.constant 0 : index
    %c0_8 = arith.constant 0 : index
    %c0_9 = arith.constant 0 : index
    %c0_10 = arith.constant 0 : index
    %4 = vector.load %arg3[%c0_7, %c0_8, %c0_9, %c0_10] : memref<1x2x16x1xf32, #tpu.memory_space<vmem>>, vector<1x2x16x1xf32>
    %5 = vector.shape_cast %4 : vector<1x2x16x1xf32> to vector<2x16x1xf32>
    %c0_11 = arith.constant 0 : index
    %c0_12 = arith.constant 0 : index
    %c0_13 = arith.constant 0 : index
    %6 = vector.load %arg4[%c0_11, %c0_12, %c0_13] : memref<1x128x128xf32, #tpu.memory_space<vmem>>, vector<1x128x128xf32>
    %7 = vector.shape_cast %6 : vector<1x128x128xf32> to vector<128x128xf32>
    %c0_14 = arith.constant 0 : index
    %c0_15 = arith.constant 0 : index
    %c0_16 = arith.constant 0 : index
    %8 = vector.load %arg5[%c0_14, %c0_15, %c0_16] : memref<1x128x128xf32, #tpu.memory_space<vmem>>, vector<1x128x128xf32>
    %9 = vector.shape_cast %8 : vector<1x128x128xf32> to vector<128x128xf32>
    %c0_17 = arith.constant 0 : index
    %c0_18 = arith.constant 0 : index
    %c0_19 = arith.constant 0 : index
    %10 = vector.load %arg6[%c0_17, %c0_18, %c0_19] : memref<1x1x128xf32, #tpu.memory_space<vmem>>, vector<1x1x128xf32>
    %11 = vector.shape_cast %10 : vector<1x1x128xf32> to vector<1x128xf32>
    %12 = vector.broadcast %5 : vector<2x16x1xf32> to vector<2x16x128xf32>
    %13 = arith.mulf %1, %12 : vector<2x16x128xf32>
    "tpu.trace_start"() <{level = 10 : i32, message = "bij,bjf->bif"}> : () -> ()
    %cst = arith.constant dense<0.000000e+00> : vector<2x16x128xf32>
    %14 = tpu.matmul %3, %13, %cst {dimension_numbers = #tpu.dot_dimension_numbers<[2], [1], [1], [2], [0, 0, 0, 1, 1, 2], [0], [0]>} : vector<2x16x16xf32>, vector<2x16x128xf32>, vector<2x16x128xf32> -> vector<2x16x128xf32>
    "tpu.trace_stop"() : () -> ()
    %15 = vector.shape_cast %13 : vector<2x16x128xf32> to vector<32x128xf32>
    %cst_20 = arith.constant dense<0.000000e+00> : vector<32x128xf32>
    %16 = tpu.matmul %15, %7, %cst_20 {dimension_numbers = #tpu.dot_dimension_numbers<[1], [0], [0], [1], [0, 0, 1, 1], [], []>} : vector<32x128xf32>, vector<128x128xf32>, vector<32x128xf32> -> vector<32x128xf32>
    %17 = vector.shape_cast %14 : vector<2x16x128xf32> to vector<32x128xf32>
    %cst_21 = arith.constant dense<0.000000e+00> : vector<32x128xf32>
    %18 = tpu.matmul %17, %9, %cst_21 {dimension_numbers = #tpu.dot_dimension_numbers<[1], [0], [0], [1], [0, 0, 1, 1], [], []>} : vector<32x128xf32>, vector<128x128xf32>, vector<32x128xf32> -> vector<32x128xf32>
    %19 = arith.addf %16, %18 : vector<32x128xf32>
    %20 = vector.broadcast %11 : vector<1x128xf32> to vector<32x128xf32>
    %21 = arith.addf %19, %20 : vector<32x128xf32>
    %cst_22 = arith.constant 0.000000e+00 : f32
    %22 = vector.broadcast %cst_22 : f32 to vector<32x128xf32>
    %23 = arith.maximumf %21, %22 : vector<32x128xf32>
    %24 = vector.shape_cast %23 : vector<32x128xf32> to vector<2x16x128xf32>
    %c0_23 = arith.constant 0 : index
    %c0_24 = arith.constant 0 : index
    %c0_25 = arith.constant 0 : index
    %c0_26 = arith.constant 0 : index
    %25 = vector.load %arg7[%c0_23, %c0_24, %c0_25, %c0_26] : memref<1x2x16x128xf32, #tpu.memory_space<vmem>>, vector<1x2x16x128xf32>
    %26 = vector.shape_cast %25 : vector<1x2x16x128xf32> to vector<2x16x128xf32>
    %27 = vector.shape_cast %24 : vector<2x16x128xf32> to vector<1x2x16x128xf32>
    tpu.vector_store %arg7[%c0_23, %c0_24, %c0_25, %c0_26], %27 {strides = array<i32>} : memref<1x2x16x128xf32, #tpu.memory_space<vmem>>, vector<1x2x16x128xf32>,
    return
  }
  func.func @transform_0(%arg0: i32) -> (i32, i32, i32, i32) {
    %c0_i32 = arith.constant 0 : i32
    %c0_i32_0 = arith.constant 0 : i32
    %c0_i32_1 = arith.constant 0 : i32
    %c0_i32_2 = arith.constant 0 : i32
    return %arg0, %c0_i32, %c0_i32_0, %c0_i32_1 : i32, i32, i32, i32
  }
  func.func @transform_1(%arg0: i32) -> (i32, i32, i32, i32) {
    %c0_i32 = arith.constant 0 : i32
    %c0_i32_0 = arith.constant 0 : i32
    %c0_i32_1 = arith.constant 0 : i32
    %c0_i32_2 = arith.constant 0 : i32
    return %arg0, %c0_i32, %c0_i32_0, %c0_i32_1 : i32, i32, i32, i32
  }
  func.func @transform_2(%arg0: i32) -> (i32, i32, i32, i32) {
    %c0_i32 = arith.constant 0 : i32
    %c0_i32_0 = arith.constant 0 : i32
    %c0_i32_1 = arith.constant 0 : i32
    %c0_i32_2 = arith.constant 0 : i32
    return %arg0, %c0_i32, %c0_i32_0, %c0_i32_1 : i32, i32, i32, i32
  }
  func.func @transform_3(%arg0: i32) -> (i32, i32, i32) {
    %c0_i32 = arith.constant 0 : i32
    %c0_i32_0 = arith.constant 0 : i32
    %c0_i32_1 = arith.constant 0 : i32
    return %arg0, %c0_i32, %c0_i32_0 : i32, i32, i32
  }
  func.func @transform_4(%arg0: i32) -> (i32, i32, i32) {
    %c0_i32 = arith.constant 0 : i32
    %c0_i32_0 = arith.constant 0 : i32
    %c0_i32_1 = arith.constant 0 : i32
    return %arg0, %c0_i32, %c0_i32_0 : i32, i32, i32
  }
  func.func @transform_5(%arg0: i32) -> (i32, i32, i32) {
    %c0_i32 = arith.constant 0 : i32
    %c0_i32_0 = arith.constant 0 : i32
    %c0_i32_1 = arith.constant 0 : i32
    return %arg0, %c0_i32, %c0_i32_0 : i32, i32, i32
  }
  func.func @transform_6(%arg0: i32) -> (i32, i32, i32, i32) {
    %c0_i32 = arith.constant 0 : i32
    %c0_i32_0 = arith.constant 0 : i32
    %c0_i32_1 = arith.constant 0 : i32
    %c0_i32_2 = arith.constant 0 : i32
    return %arg0, %c0_i32, %c0_i32_0, %c0_i32_1 : i32, i32, i32, i32
  }
}

module attributes {stable_mosaic.version = 11 : i64} {
  func.func @_conv_readout_kernel(%arg0: i32, %arg1: memref<1x2x16x128xf32, #tpu.memory_space<vmem>>, %arg2: memref<1x2x16x16xf32, #tpu.memory_space<vmem>>, %arg3: memref<1x2x16x1xf32, #tpu.memory_space<vmem>>, %arg4: memref<1x2x16x1xf32, #tpu.memory_space<vmem>>, %arg5: memref<1x128x128xf32, #tpu.memory_space<vmem>>, %arg6: memref<1x128x128xf32, #tpu.memory_space<vmem>>, %arg7: memref<1x1x128xf32, #tpu.memory_space<vmem>>, %arg8: memref<1x2x16x128xf32, #tpu.memory_space<vmem>>, %arg9: memref<1x2x256xf32, #tpu.memory_space<vmem>>) attributes {dimension_semantics = [#tpu.dimension_semantics<parallel>], iteration_bounds = array<i64: 3>, scalar_prefetch = 0 : i64, scratch_operands = 0 : i64, tpu.core_type = #tpu.core_type<tc>, window_params = [{transform_indices = @transform_0, window_bounds = array<i64: 1, 2, 16, 128>}, {transform_indices = @transform_1, window_bounds = array<i64: 1, 2, 16, 16>}, {transform_indices = @transform_2, window_bounds = array<i64: 1, 2, 16, 1>}, {transform_indices = @transform_3, window_bounds = array<i64: 1, 2, 16, 1>}, {transform_indices = @transform_4, window_bounds = array<i64: 1, 128, 128>}, {transform_indices = @transform_5, window_bounds = array<i64: 1, 128, 128>}, {transform_indices = @transform_6, window_bounds = array<i64: 1, 1, 128>}, {transform_indices = @transform_7, window_bounds = array<i64: 1, 2, 16, 128>}, {transform_indices = @transform_8, window_bounds = array<i64: 1, 2, 256>}]} {
    %c0 = arith.constant 0 : index
    %c0_0 = arith.constant 0 : index
    %c0_1 = arith.constant 0 : index
    %c0_2 = arith.constant 0 : index
    %0 = vector.load %arg1[%c0, %c0_0, %c0_1, %c0_2] : memref<1x2x16x128xf32, #tpu.memory_space<vmem>>, vector<1x2x16x128xf32>
    %1 = vector.shape_cast %0 : vector<1x2x16x128xf32> to vector<2x16x128xf32>
    %c0_3 = arith.constant 0 : index
    %c0_4 = arith.constant 0 : index
    %c0_5 = arith.constant 0 : index
    %c0_6 = arith.constant 0 : index
    %2 = vector.load %arg2[%c0_3, %c0_4, %c0_5, %c0_6] : memref<1x2x16x16xf32, #tpu.memory_space<vmem>>, vector<1x2x16x16xf32>
    %3 = vector.shape_cast %2 : vector<1x2x16x16xf32> to vector<2x16x16xf32>
    %c0_7 = arith.constant 0 : index
    %c0_8 = arith.constant 0 : index
    %c0_9 = arith.constant 0 : index
    %c0_10 = arith.constant 0 : index
    %4 = vector.load %arg3[%c0_7, %c0_8, %c0_9, %c0_10] : memref<1x2x16x1xf32, #tpu.memory_space<vmem>>, vector<1x2x16x1xf32>
    %5 = vector.shape_cast %4 : vector<1x2x16x1xf32> to vector<2x16x1xf32>
    %c0_11 = arith.constant 0 : index
    %c0_12 = arith.constant 0 : index
    %c0_13 = arith.constant 0 : index
    %6 = vector.load %arg5[%c0_11, %c0_12, %c0_13] : memref<1x128x128xf32, #tpu.memory_space<vmem>>, vector<1x128x128xf32>
    %7 = vector.shape_cast %6 : vector<1x128x128xf32> to vector<128x128xf32>
    %c0_14 = arith.constant 0 : index
    %c0_15 = arith.constant 0 : index
    %c0_16 = arith.constant 0 : index
    %8 = vector.load %arg6[%c0_14, %c0_15, %c0_16] : memref<1x128x128xf32, #tpu.memory_space<vmem>>, vector<1x128x128xf32>
    %9 = vector.shape_cast %8 : vector<1x128x128xf32> to vector<128x128xf32>
    %c0_17 = arith.constant 0 : index
    %c0_18 = arith.constant 0 : index
    %c0_19 = arith.constant 0 : index
    %10 = vector.load %arg7[%c0_17, %c0_18, %c0_19] : memref<1x1x128xf32, #tpu.memory_space<vmem>>, vector<1x1x128xf32>
    %11 = vector.shape_cast %10 : vector<1x1x128xf32> to vector<1x128xf32>
    %12 = vector.broadcast %5 : vector<2x16x1xf32> to vector<2x16x128xf32>
    %13 = arith.mulf %1, %12 : vector<2x16x128xf32>
    "tpu.trace_start"() <{level = 10 : i32, message = "bij,bjf->bif"}> : () -> ()
    %cst = arith.constant dense<0.000000e+00> : vector<2x16x128xf32>
    %14 = tpu.matmul %3, %13, %cst {dimension_numbers = #tpu.dot_dimension_numbers<[2], [1], [1], [2], [0, 0, 0, 1, 1, 2], [0], [0]>} : vector<2x16x16xf32>, vector<2x16x128xf32>, vector<2x16x128xf32> -> vector<2x16x128xf32>
    "tpu.trace_stop"() : () -> ()
    %15 = vector.shape_cast %13 : vector<2x16x128xf32> to vector<32x128xf32>
    %cst_20 = arith.constant dense<0.000000e+00> : vector<32x128xf32>
    %16 = tpu.matmul %15, %7, %cst_20 {dimension_numbers = #tpu.dot_dimension_numbers<[1], [0], [0], [1], [0, 0, 1, 1], [], []>} : vector<32x128xf32>, vector<128x128xf32>, vector<32x128xf32> -> vector<32x128xf32>
    %17 = vector.shape_cast %14 : vector<2x16x128xf32> to vector<32x128xf32>
    %cst_21 = arith.constant dense<0.000000e+00> : vector<32x128xf32>
    %18 = tpu.matmul %17, %9, %cst_21 {dimension_numbers = #tpu.dot_dimension_numbers<[1], [0], [0], [1], [0, 0, 1, 1], [], []>} : vector<32x128xf32>, vector<128x128xf32>, vector<32x128xf32> -> vector<32x128xf32>
    %19 = arith.addf %16, %18 : vector<32x128xf32>
    %20 = vector.broadcast %11 : vector<1x128xf32> to vector<32x128xf32>
    %21 = arith.addf %19, %20 : vector<32x128xf32>
    %cst_22 = arith.constant 0.000000e+00 : f32
    %22 = vector.broadcast %cst_22 : f32 to vector<32x128xf32>
    %23 = arith.maximumf %21, %22 : vector<32x128xf32>
    %24 = vector.shape_cast %23 : vector<32x128xf32> to vector<2x16x128xf32>
    %c0_23 = arith.constant 0 : index
    %c0_24 = arith.constant 0 : index
    %c0_25 = arith.constant 0 : index
    %c0_26 = arith.constant 0 : index
    %25 = vector.load %arg8[%c0_23, %c0_24, %c0_25, %c0_26] : memref<1x2x16x128xf32, #tpu.memory_space<vmem>>, vector<1x2x16x128xf32>
    %26 = vector.shape_cast %25 : vector<1x2x16x128xf32> to vector<2x16x128xf32>
    %27 = vector.shape_cast %24 : vector<2x16x128xf32> to vector<1x2x16x128xf32>
    tpu.vector_store %arg8[%c0_23, %c0_24, %c0_25, %c0_26], %27 {strides = array<i32>} : memref<1x2x16x128xf32, #tpu.memory_space<vmem>>, vector<1x2x16x128xf32>,
    %c0_27 = arith.constant 0 : index
    %c0_28 = arith.constant 0 : index
    %c0_29 = arith.constant 0 : index
    %c0_30 = arith.constant 0 : index
    %28 = vector.load %arg4[%c0_27, %c0_28, %c0_29, %c0_30] : memref<1x2x16x1xf32, #tpu.memory_space<vmem>>, vector<1x2x16x1xf32>
    %29 = vector.shape_cast %28 : vector<1x2x16x1xf32> to vector<2x16x1xf32>
    %cst_31 = arith.constant dense<0.000000e+00> : vector<2x1xf32>
    %30 = vector.multi_reduction <add>, %29, %cst_31 [1] : vector<2x16x1xf32> to vector<2x1xf32>
    %cst_32 = arith.constant 0.000000e+00 : f32
    %31 = vector.broadcast %cst_32 : f32 to vector<2x16x1xf32>
    %32 = arith.cmpf ogt, %29, %31 : vector<2x16x1xf32>
    %cst_33 = arith.constant -1.000000e+30 : f32
    %33 = vector.shape_cast %32 : vector<2x16x1xi1> to vector<2x16x1xi1>
    %34 = vector.broadcast %33 : vector<2x16x1xi1> to vector<2x16x128xi1>
    %35 = vector.broadcast %cst_33 : f32 to vector<2x16x128xf32>
    %36 = arith.select %34, %13, %35 : vector<2x16x128xi1>, vector<2x16x128xf32>
    %cst_34 = arith.constant dense<0xFF800000> : vector<2x128xf32>
    %37 = vector.multi_reduction <maximumf>, %36, %cst_34 [1] : vector<2x16x128xf32> to vector<2x128xf32>
    %cst_35 = arith.constant 0.000000e+00 : f32
    %38 = vector.broadcast %cst_35 : f32 to vector<2x1xf32>
    %39 = arith.cmpf ogt, %30, %38 : vector<2x1xf32>
    %cst_36 = arith.constant 0.000000e+00 : f32
    %40 = vector.shape_cast %39 : vector<2x1xi1> to vector<2x1xi1>
    %41 = vector.broadcast %40 : vector<2x1xi1> to vector<2x128xi1>
    %42 = vector.broadcast %cst_36 : f32 to vector<2x128xf32>
    %43 = arith.select %41, %37, %42 : vector<2x128xi1>, vector<2x128xf32>
    %cst_37 = arith.constant dense<0.000000e+00> : vector<2x128xf32>
    %44 = vector.multi_reduction <add>, %13, %cst_37 [1] : vector<2x16x128xf32> to vector<2x128xf32>
    %cst_38 = arith.constant 1.000000e+00 : f32
    %45 = vector.broadcast %cst_38 : f32 to vector<2x1xf32>
    %46 = arith.maximumf %30, %45 : vector<2x1xf32>
    %47 = vector.broadcast %46 : vector<2x1xf32> to vector<2x128xf32>
    %48 = arith.divf %44, %47 : vector<2x128xf32>
    %49 = tpu.concatenate %43, %48 in 1 : vector<2x128xf32>, vector<2x128xf32> -> vector<2x256xf32>
    %c0_39 = arith.constant 0 : index
    %c0_40 = arith.constant 0 : index
    %c0_41 = arith.constant 0 : index
    %50 = vector.load %arg9[%c0_39, %c0_40, %c0_41] : memref<1x2x256xf32, #tpu.memory_space<vmem>>, vector<1x2x256xf32>
    %51 = vector.shape_cast %50 : vector<1x2x256xf32> to vector<2x256xf32>
    %52 = vector.shape_cast %49 : vector<2x256xf32> to vector<1x2x256xf32>
    tpu.vector_store %arg9[%c0_39, %c0_40, %c0_41], %52 {strides = array<i32>} : memref<1x2x256xf32, #tpu.memory_space<vmem>>, vector<1x2x256xf32>,
    return
  }
  func.func @transform_0(%arg0: i32) -> (i32, i32, i32, i32) {
    %c0_i32 = arith.constant 0 : i32
    %c0_i32_0 = arith.constant 0 : i32
    %c0_i32_1 = arith.constant 0 : i32
    %c0_i32_2 = arith.constant 0 : i32
    return %arg0, %c0_i32, %c0_i32_0, %c0_i32_1 : i32, i32, i32, i32
  }
  func.func @transform_1(%arg0: i32) -> (i32, i32, i32, i32) {
    %c0_i32 = arith.constant 0 : i32
    %c0_i32_0 = arith.constant 0 : i32
    %c0_i32_1 = arith.constant 0 : i32
    %c0_i32_2 = arith.constant 0 : i32
    return %arg0, %c0_i32, %c0_i32_0, %c0_i32_1 : i32, i32, i32, i32
  }
  func.func @transform_2(%arg0: i32) -> (i32, i32, i32, i32) {
    %c0_i32 = arith.constant 0 : i32
    %c0_i32_0 = arith.constant 0 : i32
    %c0_i32_1 = arith.constant 0 : i32
    %c0_i32_2 = arith.constant 0 : i32
    return %arg0, %c0_i32, %c0_i32_0, %c0_i32_1 : i32, i32, i32, i32
  }
  func.func @transform_3(%arg0: i32) -> (i32, i32, i32, i32) {
    %c0_i32 = arith.constant 0 : i32
    %c0_i32_0 = arith.constant 0 : i32
    %c0_i32_1 = arith.constant 0 : i32
    %c0_i32_2 = arith.constant 0 : i32
    return %arg0, %c0_i32, %c0_i32_0, %c0_i32_1 : i32, i32, i32, i32
  }
  func.func @transform_4(%arg0: i32) -> (i32, i32, i32) {
    %c0_i32 = arith.constant 0 : i32
    %c0_i32_0 = arith.constant 0 : i32
    %c0_i32_1 = arith.constant 0 : i32
    return %arg0, %c0_i32, %c0_i32_0 : i32, i32, i32
  }
  func.func @transform_5(%arg0: i32) -> (i32, i32, i32) {
    %c0_i32 = arith.constant 0 : i32
    %c0_i32_0 = arith.constant 0 : i32
    %c0_i32_1 = arith.constant 0 : i32
    return %arg0, %c0_i32, %c0_i32_0 : i32, i32, i32
  }
  func.func @transform_6(%arg0: i32) -> (i32, i32, i32) {
    %c0_i32 = arith.constant 0 : i32
    %c0_i32_0 = arith.constant 0 : i32
    %c0_i32_1 = arith.constant 0 : i32
    return %arg0, %c0_i32, %c0_i32_0 : i32, i32, i32
  }
  func.func @transform_7(%arg0: i32) -> (i32, i32, i32, i32) {
    %c0_i32 = arith.constant 0 : i32
    %c0_i32_0 = arith.constant 0 : i32
    %c0_i32_1 = arith.constant 0 : i32
    %c0_i32_2 = arith.constant 0 : i32
    return %arg0, %c0_i32, %c0_i32_0, %c0_i32_1 : i32, i32, i32, i32
  }
  func.func @transform_8(%arg0: i32) -> (i32, i32, i32) {
    %c0_i32 = arith.constant 0 : i32
    %c0_i32_0 = arith.constant 0 : i32
    %c0_i32_1 = arith.constant 0 : i32
    return %arg0, %c0_i32, %c0_i32_0 : i32, i32, i32
  }
}

module attributes {stable_mosaic.version = 11 : i64} {
  func.func @_readout_mlp_kernel(%arg0: memref<3x2x16x128xf32, #tpu.memory_space<vmem>>, %arg1: memref<3x2x16x1xf32, #tpu.memory_space<vmem>>, %arg2: memref<3x2x16x1xf32, #tpu.memory_space<vmem>>, %arg3: memref<3x2x256xf32, #tpu.memory_space<vmem>>, %arg4: memref<768x512xf32, #tpu.memory_space<vmem>>, %arg5: memref<1x512xf32, #tpu.memory_space<vmem>>, %arg6: memref<512x128xf32, #tpu.memory_space<vmem>>, %arg7: memref<1x128xf32, #tpu.memory_space<vmem>>, %arg8: memref<128x64xf32, #tpu.memory_space<vmem>>, %arg9: memref<1x64xf32, #tpu.memory_space<vmem>>, %arg10: memref<64x4xf32, #tpu.memory_space<vmem>>, %arg11: memref<1x4xf32, #tpu.memory_space<vmem>>, %arg12: memref<2x4xf32, #tpu.memory_space<vmem>>) attributes {dimension_semantics = [], scalar_prefetch = 0 : i64, scratch_operands = 0 : i64, tpu.core_type = #tpu.core_type<tc>} {
    %c0 = arith.constant 0 : index
    %c0_0 = arith.constant 0 : index
    %c0_1 = arith.constant 0 : index
    %c0_2 = arith.constant 0 : index
    %0 = vector.load %arg0[%c0, %c0_0, %c0_1, %c0_2] : memref<3x2x16x128xf32, #tpu.memory_space<vmem>>, vector<1x2x16x128xf32>
    %1 = vector.shape_cast %0 : vector<1x2x16x128xf32> to vector<2x16x128xf32>
    %c0_3 = arith.constant 0 : index
    %c0_4 = arith.constant 0 : index
    %c0_5 = arith.constant 0 : index
    %c0_6 = arith.constant 0 : index
    %2 = vector.load %arg1[%c0_3, %c0_4, %c0_5, %c0_6] : memref<3x2x16x1xf32, #tpu.memory_space<vmem>>, vector<1x2x16x1xf32>
    %3 = vector.shape_cast %2 : vector<1x2x16x1xf32> to vector<2x16x1xf32>
    %4 = vector.broadcast %3 : vector<2x16x1xf32> to vector<2x16x128xf32>
    %5 = arith.mulf %1, %4 : vector<2x16x128xf32>
    %c0_7 = arith.constant 0 : index
    %c0_8 = arith.constant 0 : index
    %c0_9 = arith.constant 0 : index
    %6 = vector.load %arg3[%c0_7, %c0_8, %c0_9] : memref<3x2x256xf32, #tpu.memory_space<vmem>>, vector<1x2x256xf32>
    %7 = vector.shape_cast %6 : vector<1x2x256xf32> to vector<2x256xf32>
    %c0_10 = arith.constant 0 : index
    %c0_11 = arith.constant 0 : index
    %c0_12 = arith.constant 0 : index
    %c0_13 = arith.constant 0 : index
    %8 = vector.load %arg2[%c0_10, %c0_11, %c0_12, %c0_13] : memref<3x2x16x1xf32, #tpu.memory_space<vmem>>, vector<1x2x16x1xf32>
    %9 = vector.shape_cast %8 : vector<1x2x16x1xf32> to vector<2x16x1xf32>
    %cst = arith.constant dense<0.000000e+00> : vector<2x1xf32>
    %10 = vector.multi_reduction <add>, %9, %cst [1] : vector<2x16x1xf32> to vector<2x1xf32>
    %cst_14 = arith.constant 0.000000e+00 : f32
    %11 = vector.broadcast %cst_14 : f32 to vector<2x16x1xf32>
    %12 = arith.cmpf ogt, %9, %11 : vector<2x16x1xf32>
    %cst_15 = arith.constant -1.000000e+30 : f32
    %13 = vector.shape_cast %12 : vector<2x16x1xi1> to vector<2x16x1xi1>
    %14 = vector.broadcast %13 : vector<2x16x1xi1> to vector<2x16x128xi1>
    %15 = vector.broadcast %cst_15 : f32 to vector<2x16x128xf32>
    %16 = arith.select %14, %5, %15 : vector<2x16x128xi1>, vector<2x16x128xf32>
    %cst_16 = arith.constant dense<0xFF800000> : vector<2x128xf32>
    %17 = vector.multi_reduction <maximumf>, %16, %cst_16 [1] : vector<2x16x128xf32> to vector<2x128xf32>
    %cst_17 = arith.constant 0.000000e+00 : f32
    %18 = vector.broadcast %cst_17 : f32 to vector<2x1xf32>
    %19 = arith.cmpf ogt, %10, %18 : vector<2x1xf32>
    %cst_18 = arith.constant 0.000000e+00 : f32
    %20 = vector.shape_cast %19 : vector<2x1xi1> to vector<2x1xi1>
    %21 = vector.broadcast %20 : vector<2x1xi1> to vector<2x128xi1>
    %22 = vector.broadcast %cst_18 : f32 to vector<2x128xf32>
    %23 = arith.select %21, %17, %22 : vector<2x128xi1>, vector<2x128xf32>
    %cst_19 = arith.constant dense<0.000000e+00> : vector<2x128xf32>
    %24 = vector.multi_reduction <add>, %5, %cst_19 [1] : vector<2x16x128xf32> to vector<2x128xf32>
    %cst_20 = arith.constant 1.000000e+00 : f32
    %25 = vector.broadcast %cst_20 : f32 to vector<2x1xf32>
    %26 = arith.maximumf %10, %25 : vector<2x1xf32>
    %27 = vector.broadcast %26 : vector<2x1xf32> to vector<2x128xf32>
    %28 = arith.divf %24, %27 : vector<2x128xf32>
    %29 = tpu.concatenate %23, %28 in 1 : vector<2x128xf32>, vector<2x128xf32> -> vector<2x256xf32>
    %30 = arith.addf %7, %29 : vector<2x256xf32>
    %c1 = arith.constant 1 : index
    %c0_21 = arith.constant 0 : index
    %c0_22 = arith.constant 0 : index
    %c0_23 = arith.constant 0 : index
    %31 = vector.load %arg0[%c1, %c0_21, %c0_22, %c0_23] : memref<3x2x16x128xf32, #tpu.memory_space<vmem>>, vector<1x2x16x128xf32>
    %32 = vector.shape_cast %31 : vector<1x2x16x128xf32> to vector<2x16x128xf32>
    %c1_24 = arith.constant 1 : index
    %c0_25 = arith.constant 0 : index
    %c0_26 = arith.constant 0 : index
    %c0_27 = arith.constant 0 : index
    %33 = vector.load %arg1[%c1_24, %c0_25, %c0_26, %c0_27] : memref<3x2x16x1xf32, #tpu.memory_space<vmem>>, vector<1x2x16x1xf32>
    %34 = vector.shape_cast %33 : vector<1x2x16x1xf32> to vector<2x16x1xf32>
    %35 = vector.broadcast %34 : vector<2x16x1xf32> to vector<2x16x128xf32>
    %36 = arith.mulf %32, %35 : vector<2x16x128xf32>
    %c1_28 = arith.constant 1 : index
    %c0_29 = arith.constant 0 : index
    %c0_30 = arith.constant 0 : index
    %37 = vector.load %arg3[%c1_28, %c0_29, %c0_30] : memref<3x2x256xf32, #tpu.memory_space<vmem>>, vector<1x2x256xf32>
    %38 = vector.shape_cast %37 : vector<1x2x256xf32> to vector<2x256xf32>
    %c1_31 = arith.constant 1 : index
    %c0_32 = arith.constant 0 : index
    %c0_33 = arith.constant 0 : index
    %c0_34 = arith.constant 0 : index
    %39 = vector.load %arg2[%c1_31, %c0_32, %c0_33, %c0_34] : memref<3x2x16x1xf32, #tpu.memory_space<vmem>>, vector<1x2x16x1xf32>
    %40 = vector.shape_cast %39 : vector<1x2x16x1xf32> to vector<2x16x1xf32>
    %cst_35 = arith.constant dense<0.000000e+00> : vector<2x1xf32>
    %41 = vector.multi_reduction <add>, %40, %cst_35 [1] : vector<2x16x1xf32> to vector<2x1xf32>
    %cst_36 = arith.constant 0.000000e+00 : f32
    %42 = vector.broadcast %cst_36 : f32 to vector<2x16x1xf32>
    %43 = arith.cmpf ogt, %40, %42 : vector<2x16x1xf32>
    %cst_37 = arith.constant -1.000000e+30 : f32
    %44 = vector.shape_cast %43 : vector<2x16x1xi1> to vector<2x16x1xi1>
    %45 = vector.broadcast %44 : vector<2x16x1xi1> to vector<2x16x128xi1>
    %46 = vector.broadcast %cst_37 : f32 to vector<2x16x128xf32>
    %47 = arith.select %45, %36, %46 : vector<2x16x128xi1>, vector<2x16x128xf32>
    %cst_38 = arith.constant dense<0xFF800000> : vector<2x128xf32>
    %48 = vector.multi_reduction <maximumf>, %47, %cst_38 [1] : vector<2x16x128xf32> to vector<2x128xf32>
    %cst_39 = arith.constant 0.000000e+00 : f32
    %49 = vector.broadcast %cst_39 : f32 to vector<2x1xf32>
    %50 = arith.cmpf ogt, %41, %49 : vector<2x1xf32>
    %cst_40 = arith.constant 0.000000e+00 : f32
    %51 = vector.shape_cast %50 : vector<2x1xi1> to vector<2x1xi1>
    %52 = vector.broadcast %51 : vector<2x1xi1> to vector<2x128xi1>
    %53 = vector.broadcast %cst_40 : f32 to vector<2x128xf32>
    %54 = arith.select %52, %48, %53 : vector<2x128xi1>, vector<2x128xf32>
    %cst_41 = arith.constant dense<0.000000e+00> : vector<2x128xf32>
    %55 = vector.multi_reduction <add>, %36, %cst_41 [1] : vector<2x16x128xf32> to vector<2x128xf32>
    %cst_42 = arith.constant 1.000000e+00 : f32
    %56 = vector.broadcast %cst_42 : f32 to vector<2x1xf32>
    %57 = arith.maximumf %41, %56 : vector<2x1xf32>
    %58 = vector.broadcast %57 : vector<2x1xf32> to vector<2x128xf32>
    %59 = arith.divf %55, %58 : vector<2x128xf32>
    %60 = tpu.concatenate %54, %59 in 1 : vector<2x128xf32>, vector<2x128xf32> -> vector<2x256xf32>
    %61 = arith.addf %38, %60 : vector<2x256xf32>
    %c2 = arith.constant 2 : index
    %c0_43 = arith.constant 0 : index
    %c0_44 = arith.constant 0 : index
    %c0_45 = arith.constant 0 : index
    %62 = vector.load %arg0[%c2, %c0_43, %c0_44, %c0_45] : memref<3x2x16x128xf32, #tpu.memory_space<vmem>>, vector<1x2x16x128xf32>
    %63 = vector.shape_cast %62 : vector<1x2x16x128xf32> to vector<2x16x128xf32>
    %c2_46 = arith.constant 2 : index
    %c0_47 = arith.constant 0 : index
    %c0_48 = arith.constant 0 : index
    %c0_49 = arith.constant 0 : index
    %64 = vector.load %arg1[%c2_46, %c0_47, %c0_48, %c0_49] : memref<3x2x16x1xf32, #tpu.memory_space<vmem>>, vector<1x2x16x1xf32>
    %65 = vector.shape_cast %64 : vector<1x2x16x1xf32> to vector<2x16x1xf32>
    %66 = vector.broadcast %65 : vector<2x16x1xf32> to vector<2x16x128xf32>
    %67 = arith.mulf %63, %66 : vector<2x16x128xf32>
    %c2_50 = arith.constant 2 : index
    %c0_51 = arith.constant 0 : index
    %c0_52 = arith.constant 0 : index
    %68 = vector.load %arg3[%c2_50, %c0_51, %c0_52] : memref<3x2x256xf32, #tpu.memory_space<vmem>>, vector<1x2x256xf32>
    %69 = vector.shape_cast %68 : vector<1x2x256xf32> to vector<2x256xf32>
    %c2_53 = arith.constant 2 : index
    %c0_54 = arith.constant 0 : index
    %c0_55 = arith.constant 0 : index
    %c0_56 = arith.constant 0 : index
    %70 = vector.load %arg2[%c2_53, %c0_54, %c0_55, %c0_56] : memref<3x2x16x1xf32, #tpu.memory_space<vmem>>, vector<1x2x16x1xf32>
    %71 = vector.shape_cast %70 : vector<1x2x16x1xf32> to vector<2x16x1xf32>
    %cst_57 = arith.constant dense<0.000000e+00> : vector<2x1xf32>
    %72 = vector.multi_reduction <add>, %71, %cst_57 [1] : vector<2x16x1xf32> to vector<2x1xf32>
    %cst_58 = arith.constant 0.000000e+00 : f32
    %73 = vector.broadcast %cst_58 : f32 to vector<2x16x1xf32>
    %74 = arith.cmpf ogt, %71, %73 : vector<2x16x1xf32>
    %cst_59 = arith.constant -1.000000e+30 : f32
    %75 = vector.shape_cast %74 : vector<2x16x1xi1> to vector<2x16x1xi1>
    %76 = vector.broadcast %75 : vector<2x16x1xi1> to vector<2x16x128xi1>
    %77 = vector.broadcast %cst_59 : f32 to vector<2x16x128xf32>
    %78 = arith.select %76, %67, %77 : vector<2x16x128xi1>, vector<2x16x128xf32>
    %cst_60 = arith.constant dense<0xFF800000> : vector<2x128xf32>
    %79 = vector.multi_reduction <maximumf>, %78, %cst_60 [1] : vector<2x16x128xf32> to vector<2x128xf32>
    %cst_61 = arith.constant 0.000000e+00 : f32
    %80 = vector.broadcast %cst_61 : f32 to vector<2x1xf32>
    %81 = arith.cmpf ogt, %72, %80 : vector<2x1xf32>
    %cst_62 = arith.constant 0.000000e+00 : f32
    %82 = vector.shape_cast %81 : vector<2x1xi1> to vector<2x1xi1>
    %83 = vector.broadcast %82 : vector<2x1xi1> to vector<2x128xi1>
    %84 = vector.broadcast %cst_62 : f32 to vector<2x128xf32>
    %85 = arith.select %83, %79, %84 : vector<2x128xi1>, vector<2x128xf32>
    %cst_63 = arith.constant dense<0.000000e+00> : vector<2x128xf32>
    %86 = vector.multi_reduction <add>, %67, %cst_63 [1] : vector<2x16x128xf32> to vector<2x128xf32>
    %cst_64 = arith.constant 1.000000e+00 : f32
    %87 = vector.broadcast %cst_64 : f32 to vector<2x1xf32>
    %88 = arith.maximumf %72, %87 : vector<2x1xf32>
    %89 = vector.broadcast %88 : vector<2x1xf32> to vector<2x128xf32>
    %90 = arith.divf %86, %89 : vector<2x128xf32>
    %91 = tpu.concatenate %85, %90 in 1 : vector<2x128xf32>, vector<2x128xf32> -> vector<2x256xf32>
    %92 = arith.addf %69, %91 : vector<2x256xf32>
    %93 = tpu.concatenate %30, %61, %92 in 1 : vector<2x256xf32>, vector<2x256xf32>, vector<2x256xf32> -> vector<2x768xf32>
    %c0_65 = arith.constant 0 : index
    %c0_66 = arith.constant 0 : index
    %94 = vector.load %arg4[%c0_65, %c0_66] : memref<768x512xf32, #tpu.memory_space<vmem>>, vector<768x512xf32>
    %cst_67 = arith.constant dense<0.000000e+00> : vector<2x512xf32>
    %95 = tpu.matmul %93, %94, %cst_67 {dimension_numbers = #tpu.dot_dimension_numbers<[1], [0], [0], [1], [0, 0, 1, 1], [], []>} : vector<2x768xf32>, vector<768x512xf32>, vector<2x512xf32> -> vector<2x512xf32>
    %c0_68 = arith.constant 0 : index
    %c0_69 = arith.constant 0 : index
    %96 = vector.load %arg5[%c0_68, %c0_69] : memref<1x512xf32, #tpu.memory_space<vmem>>, vector<1x512xf32>
    %97 = vector.broadcast %96 : vector<1x512xf32> to vector<2x512xf32>
    %98 = arith.addf %95, %97 : vector<2x512xf32>
    %cst_70 = arith.constant 0.000000e+00 : f32
    %99 = vector.broadcast %cst_70 : f32 to vector<2x512xf32>
    %100 = arith.maximumf %98, %99 : vector<2x512xf32>
    %c0_71 = arith.constant 0 : index
    %c0_72 = arith.constant 0 : index
    %101 = vector.load %arg6[%c0_71, %c0_72] : memref<512x128xf32, #tpu.memory_space<vmem>>, vector<512x128xf32>
    %cst_73 = arith.constant dense<0.000000e+00> : vector<2x128xf32>
    %102 = tpu.matmul %100, %101, %cst_73 {dimension_numbers = #tpu.dot_dimension_numbers<[1], [0], [0], [1], [0, 0, 1, 1], [], []>} : vector<2x512xf32>, vector<512x128xf32>, vector<2x128xf32> -> vector<2x128xf32>
    %c0_74 = arith.constant 0 : index
    %c0_75 = arith.constant 0 : index
    %103 = vector.load %arg7[%c0_74, %c0_75] : memref<1x128xf32, #tpu.memory_space<vmem>>, vector<1x128xf32>
    %104 = vector.broadcast %103 : vector<1x128xf32> to vector<2x128xf32>
    %105 = arith.addf %102, %104 : vector<2x128xf32>
    %cst_76 = arith.constant 0.000000e+00 : f32
    %106 = vector.broadcast %cst_76 : f32 to vector<2x128xf32>
    %107 = arith.maximumf %105, %106 : vector<2x128xf32>
    %c0_77 = arith.constant 0 : index
    %c0_78 = arith.constant 0 : index
    %108 = vector.load %arg8[%c0_77, %c0_78] : memref<128x64xf32, #tpu.memory_space<vmem>>, vector<128x64xf32>
    %cst_79 = arith.constant dense<0.000000e+00> : vector<2x64xf32>
    %109 = tpu.matmul %107, %108, %cst_79 {dimension_numbers = #tpu.dot_dimension_numbers<[1], [0], [0], [1], [0, 0, 1, 1], [], []>} : vector<2x128xf32>, vector<128x64xf32>, vector<2x64xf32> -> vector<2x64xf32>
    %c0_80 = arith.constant 0 : index
    %c0_81 = arith.constant 0 : index
    %110 = vector.load %arg9[%c0_80, %c0_81] : memref<1x64xf32, #tpu.memory_space<vmem>>, vector<1x64xf32>
    %111 = vector.broadcast %110 : vector<1x64xf32> to vector<2x64xf32>
    %112 = arith.addf %109, %111 : vector<2x64xf32>
    %cst_82 = arith.constant 0.000000e+00 : f32
    %113 = vector.broadcast %cst_82 : f32 to vector<2x64xf32>
    %114 = arith.maximumf %112, %113 : vector<2x64xf32>
    %c0_83 = arith.constant 0 : index
    %c0_84 = arith.constant 0 : index
    %115 = vector.load %arg10[%c0_83, %c0_84] : memref<64x4xf32, #tpu.memory_space<vmem>>, vector<64x4xf32>
    %cst_85 = arith.constant dense<0.000000e+00> : vector<2x4xf32>
    %116 = tpu.matmul %114, %115, %cst_85 {dimension_numbers = #tpu.dot_dimension_numbers<[1], [0], [0], [1], [0, 0, 1, 1], [], []>} : vector<2x64xf32>, vector<64x4xf32>, vector<2x4xf32> -> vector<2x4xf32>
    %c0_86 = arith.constant 0 : index
    %c0_87 = arith.constant 0 : index
    %117 = vector.load %arg11[%c0_86, %c0_87] : memref<1x4xf32, #tpu.memory_space<vmem>>, vector<1x4xf32>
    %118 = vector.broadcast %117 : vector<1x4xf32> to vector<2x4xf32>
    %119 = arith.addf %116, %118 : vector<2x4xf32>
    %c0_88 = arith.constant 0 : index
    %c0_89 = arith.constant 0 : index
    %120 = vector.load %arg12[%c0_88, %c0_89] : memref<2x4xf32, #tpu.memory_space<vmem>>, vector<2x4xf32>
    tpu.vector_store %arg12[%c0_88, %c0_89], %119 {strides = array<i32>} : memref<2x4xf32, #tpu.memory_space<vmem>>, vector<2x4xf32>,
    return
  }
}

</mosaic_0001>

<bundles_post_ra>
// kernel: multi_view_gcn_forward.4
= control target key start
LH: loop header
LB: loop body
LE: loop exit
PB: predicated region body
PF: predicated region fallthrough
CT: control target
= control target key end

     0   :  { %s1420_s0 = inlined_call_operand.vmem [shape: f32[3,2,16,128], index: 0, kind: input, shape index: {}]   ;;  %s1421_s1 = inlined_call_operand.hbm [shape: f32[3,2,16,16], index: 1, kind: input, shape index: {}]   ;;  %s1422_s2 = inlined_call_operand.vmem [shape: f32[3,2,16,1], index: 2, kind: input, shape index: {}]   ;;  %s1423_s3 = inlined_call_operand.hbm [shape: f32[3,128,128], index: 3, kind: input, shape index: {}]   ;;  %s1424_s4 = inlined_call_operand.hbm [shape: f32[3,128,128], index: 4, kind: input, shape index: {}]   ;;  %s1425_s5 = inlined_call_operand.hbm [shape: f32[3,1,128], index: 5, kind: input, shape index: {}]   ;;  %s1426_s6 = inlined_call_operand.vmem [shape: f32[3,2,16,128], index: 6, kind: output, shape index: {}]  }
   0x1   :  { %1432 = sst [smem:[#allocation14_spill]] %s1423_s3 }
   0x2   :  { %11 = vsyncpa [#allocation3], 0 }
   0x3   :  { %13 = vsyncpa [#allocation3 + $0x1], 0 }
   0x4   :  { %14 = vsyncpa [#allocation5], 0 }
   0x5   :  { %16 = vsyncpa [#allocation5 + $0x1], 0 }
   0x6   :  { %17 = vsyncpa [#allocation8], 0 }
   0x7   :  { %19 = vsyncpa [#allocation8 + $0x1], 0  ;;  %s1112_s21 = smov 0   ;;  %s1114_s22 = smov 0  }
   0x8   :  { %s1116_s23 = smov 0   ;;  %s1118_s24 = smov 0  }
   0x9 LB: > { %1433 = sst [smem:[#allocation12_spill]] %s1068_s23  ;;  %s1131_s25 = sadd.s32 4294967295, %s1072_s24   ;;  %s1072_s24 = sphi %s1118_s24, %s1445_s24   ;;  %s1068_s23 = sphi %s1116_s23, %s1442_s23   ;;  %s1064_s22 = sphi %s1114_s22, %s1444_s22   ;;  %s1060_s21 = sphi %s1112_s21, %s1443_s21  }
   0xa   : > { %s1134_s26 = sadd.s32 1, %s1072_s24   ;;  %s58_s28 = sadd.s32 1, %s1068_s23 }
   0xb   : > { %s55_s27 = ssub.s32 %s1072_s24, %s1134_s26  ;;  %p65_p1 = scmp.ne.s32.totalorder %s1068_s23, %s1064_s22 }
   0xc   : > { %p56_p0 = scmp.eq.s32.totalorder %s55_s27, 0  ;;  %p66_p2 = scmp.eq.s32.totalorder %s1072_s24, 0 }
   0xd   : > { %p71_p3 = scmp.ne.s32.totalorder %s1064_s22, %s1060_s21  ;;  %p72_p5 = scmp.eq.s32.totalorder %s1131_s25, 0 }
   0xe   : > { %s1144_s29 = scalar_select %p56_p0, %s1068_s23, %s58_s28  }
   0xf   : > { %p67_p4 = por %p66_p2, %p65_p1  ;;  %p871_p6 = scmp.lt.s32.totalorder %s1072_s24, 3 }
  0x10   : > { %1434 = sst [smem:[#allocation13_spill]] %s1144_s29  ;;  %p1148_p7 = por %p72_p5, %p71_p3 }
  0x11   : > { %s1153_s7 = sand.u32 1, %s1068_s23   ;;  %p1155_p8 = pnand %p871_p6, %p67_p4 }
  0x12   : > { %s263_s9 = sand.u32 1, %s1072_s24   ;;  %s790_s10 = sshll.u32 %s1153_s7, 7 }
  0x13   : > { %s813_s11 = sshll.u32 %s1072_s24, 7  ;;  %s1437_s3 = sld [smem:[#allocation14_spill]] }
  0x14   : > { %s267_s16 = scalar_lea.vmem [#allocation4], %s790_s10  ;;  %s1167_s18 = scalar_lea.sflag [#allocation5], %s263_s9 }
  0x15   : > { %s275_s17 = sshll.u32 %s267_s16, 4  ;;  %p914_p10 = pneg %p1155_p8  ;;  %s276_s17 = int_to_ptr.vmem [resolvable:$true] %s275_s17 }
  0x19   : > { %s272_s14 = scalar_lea.hbm %s1437_s3, %s813_s11  ;;  %s917_s28 = scalar_lea.hbm %s1437_s3, 384 }
  0x1a   : > { %s273_s15 = sshll.u32 %s272_s14, 4  ;;  %s274_s15 = int_to_ptr.hbm [resolvable:$true] %s273_s15 }
  0x1b   : > { %s910_s19 = sshra.s32 %s274_s15, 4  ;;  %s911_s19 = int_to_ptr.hbm [resolvable:$true] %s910_s19 }
  0x1c   : > { %s912_s20 = scalar_lea.hbm %s911_s19, 128  ;;  %p918_p13 = scmp.lt.s32.totalorder %s911_s19, %s1437_s3 }
  0x1d   : > { %p913_p9 = scmp.ne.s32.totalorder %s911_s19, %s912_s20  ;;  %p919_p0 = scmp.lt.s32.totalorder %s917_s28, %s912_s20 }
  0x1f   : > { %p915_p11 = pnand %p914_p10, %p913_p9  ;;  %p920_p1 = por %p919_p0, %p918_p13 }
  0x21   : > { %p916_p12 = pneg %p915_p11 }
  0x23   : > { %p921_p2 = pnand %p920_p1, %p916_p12 }
  0x25   : > { %924 = shalt.err (!%p921_p2)
}
  0x26   : > { %s1427_s9 = smov 128   ;;  %s1429_s14 = smov 8  }
  0x27   : > { %864 = dma.hbm_to_vmem [thread:$0]  (!%p1155_p8), %s274_s15, 2048, %s276_s17, %s1167_s18, %s1427_s9, %s1427_s9, %s1429_s14  }
  0x28   : > { %s294_s20 = scalar_lea.hbm %s1424_s4, %s813_s11  ;;  %s289_s27 = scalar_lea.vmem [#allocation6], %s790_s10 }
  0x29   : > { %s295_s21 = sshll.u32 %s294_s20, 4  ;;  %s297_s28 = sshll.u32 %s289_s27, 4  ;;  %s1191_s21 = int_to_ptr.hbm [resolvable:$true] %s295_s21  ;;  %s1193_s28 = int_to_ptr.vmem [resolvable:$true] %s297_s28 }
  0x2a   : > { %p796_p3 = scmp.ge.s32.totalorder %s1072_s24, 1  ;;  %p322_p4 = scmp.lt.s32.totalorder %s1072_s24, 4 }
  0x2b   : > { %s787_s12 = sshll.u32 %s1153_s7, 5  ;;  %s812_s15 = sshll.u32 %s1072_s24, 5 }
  0x2c   : > { %p1198_p5 = pnand %p796_p3, %p322_p4  ;;  %s237_s17 = scalar_lea.vmem [#allocation2], %s787_s12 }
  0x2d   : > { %s245_s11 = sshll.u32 %s237_s17, 4  ;;  %s242_s10 = scalar_lea.hbm %s1421_s1, %s812_s15  ;;  %s246_s11 = int_to_ptr.vmem [resolvable:$true] %s245_s11 }
  0x2e   : > { %s243_s20 = sshll.u32 %s242_s10, 4  ;;  %s234_s27 = scalar_lea.sflag [#allocation3], %s1153_s7  ;;  %s244_s20 = int_to_ptr.hbm [resolvable:$true] %s243_s20 }
  0x2f   : > { %s940_s9 = sshra.s32 %s244_s20, 4  ;;  %s947_s12 = scalar_lea.hbm %s1421_s1, 96  ;;  %s941_s9 = int_to_ptr.hbm [resolvable:$true] %s940_s9 }
  0x30   : > { %s942_s14 = scalar_lea.hbm %s941_s9, 32  ;;  %p948_p12 = scmp.lt.s32.totalorder %s941_s9, %s1421_s1 }
  0x31   : > { %p943_p6 = scmp.ne.s32.totalorder %s941_s9, %s942_s14  ;;  %p949_p13 = scmp.lt.s32.totalorder %s947_s12, %s942_s14 }
  0x33   : > { %p945_p9 = pnand %p943_p6, %p914_p10  ;;  %p950_p0 = por %p949_p13, %p948_p12 }
  0x35   : > { %p946_p11 = pneg %p945_p9 }
  0x37   : > { %p951_p1 = pnand %p950_p0, %p946_p11 }
  0x39   : > { %954 = shalt.err (!%p951_p1)
}
  0x3a   : > { %s1439_s15 = smov 8   ;;  %s1440_s16 = smov 128  }
  0x3b   : > { %861 = dma.hbm_to_vmem [thread:$0]  (!%p1155_p8), %s244_s20, 512, %s246_s11, %s234_s27, %s1440_s16, %s1440_s16, %s1439_s15  }
  0x3c   : > { %s970_s19 = sshra.s32 %s1191_s21, 4  ;;  %s977_s9 = scalar_lea.hbm %s1424_s4, 384  ;;  %s971_s19 = int_to_ptr.hbm [resolvable:$true] %s970_s19 }
  0x3d   : > { %s972_s3 = scalar_lea.hbm %s971_s19, 128  ;;  %p978_p6 = scmp.lt.s32.totalorder %s971_s19, %s1424_s4 }
  0x3e   : > { %p973_p2 = scmp.ne.s32.totalorder %s971_s19, %s972_s3  ;;  %p979_p9 = scmp.lt.s32.totalorder %s977_s9, %s972_s3 }
  0x40   : > { %p975_p3 = pnand %p973_p2, %p914_p10  ;;  %p980_p11 = por %p979_p9, %p978_p6 }
  0x42   : > { %p976_p4 = pneg %p975_p3 }
  0x44   : > { %p981_p12 = pnand %p980_p11, %p976_p4 }
  0x46   : > { %984 = shalt.err (!%p981_p12)
}
  0x47   : > { %867 = dma.hbm_to_vmem [thread:$0]  (!%p1155_p8), %s1191_s21, 2048, %s1193_s28, %s1167_s18, %s1440_s16, %s1440_s16, %s1439_s15  }
  0x48   : > { %s313_s27 = scalar_lea.hbm %s1425_s5, %s1072_s24  ;;  %s310_s12 = scalar_lea.vmem [#allocation7], %s1153_s7 }
  0x49   : > { %s317_s17 = sshll.u32 %s310_s12, 4  ;;  %s315_s19 = sshll.u32 %s313_s27, 4  ;;  %s318_s17 = int_to_ptr.vmem [resolvable:$true] %s317_s17  ;;  %s316_s19 = int_to_ptr.hbm [resolvable:$true] %s315_s19 }
  0x4a   : > { %s308_s3 = scalar_lea.sflag [#allocation8], %s1153_s7  ;;  %s1000_s23 = sshra.s32 %s316_s19, 4  ;;  %s1001_s23 = int_to_ptr.hbm [resolvable:$true] %s1000_s23 }
  0x4b   : > { %s1002_s29 = scalar_lea.hbm %s1001_s23, 1  ;;  %s1007_s21 = scalar_lea.hbm %s1425_s5, 3 }
  0x4c   : > { %p1003_p13 = scmp.ne.s32.totalorder %s1001_s23, %s1002_s29  ;;  %p1008_p2 = scmp.lt.s32.totalorder %s1001_s23, %s1425_s5 }
  0x4d   : > { %p1009_p3 = scmp.lt.s32.totalorder %s1007_s21, %s1002_s29 }
  0x4e   : > { %p1005_p0 = pnand %p1003_p13, %p914_p10 }
  0x4f   : > { %p1010_p4 = por %p1009_p3, %p1008_p2 }
  0x50   : > { %p1006_p1 = pneg %p1005_p0 }
  0x52   : > { %p1011_p6 = pnand %p1010_p4, %p1006_p1 }
  0x54   : > { %1014 = shalt.err (!%p1011_p6)
}
  0x55   : > { %870 = dma.hbm_to_vmem [thread:$0]  (!%p1155_p8), %s316_s19, 16, %s318_s17, %s308_s3  }
  0x56   : > { %326 = sbr.rel (%p1198_p5) target bundleno = 504 (0x1f8), region = 44  ;;  %s1259_s7 = sand.u32 (!%p1198_p5), 1, %s1064_s22  }
  0x57   : > { %s797_s15 = sshll.u32 (!%p1198_p5), %s1259_s7, 5  ;;  %s329_s16 = scalar_lea.sflag (!%p1198_p5), [#allocation3], %s1259_s7 }
  0x58   : > { %s1263_s14 = scalar_lea.vmem (!%p1198_p5), [#allocation2], %s797_s15 }
  0x5b   : > { %1047 = dma.done.wait (%p1148_p7), %s329_s16, 512  }
  0x5c   : > { %1049 = vsyncadd (%p1148_p7), %s329_s16, 4294966784  ;;  %s338_s8 = sand.u32 1, %s1131_s25   ;;  %s798_s13 = sshll.u32 %s1259_s7, 7 }
  0x5d   : > { %s339_s10 = scalar_lea.sflag [#allocation5], %s338_s8  ;;  %s1271_s11 = scalar_lea.vmem [#allocation4], %s798_s13 }
  0x5e   : > { %1051 = dma.done.wait (%p1148_p7), %s339_s10, 4096  }
  0x5f   : > { %1053 = vsyncadd (%p1148_p7), %s339_s10, 4294963200  ;;  %s1277_s20 = scalar_lea.vmem [#allocation6], %s798_s13  ;;  %s359_s27 = scalar_lea.sflag [#allocation8], %s1259_s7 }
  0x60   : > { %s361_s12 = scalar_lea.vmem [#allocation7], %s1259_s7 }
  0x61   : > { %1055 = dma.done.wait (%p1148_p7), %s359_s27, 16  }
  0x62   : > { %1057 = vsyncadd (%p1148_p7), %s359_s27, 4294967280  ;;  %p415_p8 = scmp.lt.s32.totalorder %s1131_s25, 2  ;;  %v1076_v0 = vmov 0   ;;  %v457_v3 = vld [vmem:[%s1271_s11 + $0x78] sm:$0xff]  ;;  %v1295_v4 = vld [vmem:[%s1271_s11 + $0x70] sm:$0xff]  ;;  %vm499_vm0 = vcmask 130048  }
  0x63   : > { %908 = vset.pattern.permute.xlu1 %v1076_v0  ;;  %907 = vset.pattern.permute.xlu0 %v1076_v0  ;;  %v1298_v5 = vld [vmem:[%s1271_s11 + $0x68] sm:$0xff]  ;;  %v1302_v6 = vld [vmem:[%s1271_s11 + $0x60] sm:$0xff]  ;;  %v1306_v9 = vld [vmem:[%s1271_s11 + $0x58] sm:$0xff] }
  0x64   : > { %s1447_s25 = smov (!%p415_p8, %s1131_s25), 2  ;;  %834 = vmatpush.msra.mxu3 %v457_v3  ;;  %v1310_v10 = vld [vmem:[%s1271_s11 + $0x50] sm:$0xff]  ;;  %v1314_v11 = vld [vmem:[%s1271_s11 + $0x48] sm:$0xff]  ;;  %v1318_v12 = vld [vmem:[%s1271_s11 + $0x40] sm:$0xff] }
  0x65   : > { %s1287_s17 = sshll.u32 %s1447_s25, 5  ;;  %v1322_v13 = vld [vmem:[%s1271_s11 + $0x38] sm:$0xff]  ;;  %v1326_v14 = vld [vmem:[%s1271_s11 + $0x30] sm:$0xff]  ;;  %v1330_v15 = vld [vmem:[%s1271_s11 + $0x28] sm:$0xff] }
  0x66   : > { %s424_s30 = scalar_lea.vmem %s1422_s2, %s1287_s17  ;;  %835 = vmatpush.msra.mxu3 %v1295_v4  ;;  %v1334_v16 = vld [vmem:[%s1271_s11 + $0x20] sm:$0xff]  ;;  %v1338_v17 = vld [vmem:[%s1271_s11 + $0x18] sm:$0xff]  ;;  %v1342_v18 = vld [vmem:[%s1271_s11 + $0x10] sm:$0xff]  ;;  %s419_s29 = scalar_lea.vmem %s1420_s0, %s1287_s17 }
  0x67   : > { %v441_v1 = vld [vmem:[%s424_s30 + $0x18] sm:$0xff]  ;;  %v439_v2 = vld [vmem:[%s424_s30 + $0x8] sm:$0xff]  ;;  %v440_v7 = vld [vmem:[%s424_s30 + $0x10] sm:$0xff]  ;;  %s429_s21 = scalar_lea.vmem %s1426_s6, %s1287_s17 }
  0x68   : > { %492 = vperm.xlu0 %907, %v441_v1   ;;  %482 = vperm.xlu1 %908, %v439_v2   ;;  %v438_v8 = vld [vmem:[%s424_s30] sm:$0xff]  ;;  %v1346_v19 = vld [vmem:[%s1271_s11 + $0x8] sm:$0xff]  ;;  %v433_v21 = vld [vmem:[%s419_s29 + $0x18] sm:$0xff] }
  0x69   : > { %836 = vmatpush.msra.mxu3 %v1298_v5  ;;  %v1351_v20 = vld [vmem:[%s1271_s11] sm:$0xff]  ;;  %v431_v22 = vld [vmem:[%s419_s29 + $0x8] sm:$0xff]  ;;  %v432_v27 = vld [vmem:[%s419_s29 + $0x10] sm:$0xff] }
  0x6a   : > { %v430_v28 = vld [vmem:[%s419_s29] sm:$0xff]  ;;  %v436_v34 = vld [vmem:[%s1263_s14 + $0x10] sm:$0xff]  ;;  %v473_v35 = vld [vmem:[%s1277_s20 + $0x78] sm:$0xff] }
  0x6b   : > { %837 = vmatpush.msra.mxu3 %v1302_v6  ;;  %v434_v33 = vld [vmem:[%s1263_s14] sm:$0xff]  ;;  %v472_v36 = vld [vmem:[%s1277_s20 + $0x70] sm:$0xff]  ;;  %818 = vmatpush.msra.mxu2 %v473_v35  ;;  %v471_v37 = vld [vmem:[%s1277_s20 + $0x68] sm:$0xff] }
  0x6c   : > { %v435_v38 = vld [vmem:[%s1263_s14 + $0x8] sm:$0xff]  ;;  %v437_v39 = vld [vmem:[%s1263_s14 + $0x18] sm:$0xff]  ;;  %v470_v40 = vld [vmem:[%s1277_s20 + $0x60] sm:$0xff] }
  0x6d   : > { %838 = vmatpush.msra.mxu3 %v1306_v9  ;;  %819 = vmatpush.msra.mxu2 %v472_v36  ;;  %v469_v41 = vld [vmem:[%s1277_s20 + $0x58] sm:$0xff]  ;;  %v468_v42 = vld [vmem:[%s1277_s20 + $0x50] sm:$0xff]  ;;  %v467_v43 = vld [vmem:[%s1277_s20 + $0x48] sm:$0xff] }
  0x6e   : > { %v466_v44 = vld [vmem:[%s1277_s20 + $0x40] sm:$0xff]  ;;  %v465_v45 = vld [vmem:[%s1277_s20 + $0x38] sm:$0xff]  ;;  %v464_v46 = vld [vmem:[%s1277_s20 + $0x30] sm:$0xff] }
  0x6f   : > { %839 = vmatpush.msra.mxu3 %v1310_v10  ;;  %820 = vmatpush.msra.mxu2 %v471_v37  ;;  %v463_v47 = vld [vmem:[%s1277_s20 + $0x28] sm:$0xff]  ;;  %v462_v48 = vld [vmem:[%s1277_s20 + $0x20] sm:$0xff]  ;;  %v461_v49 = vld [vmem:[%s1277_s20 + $0x18] sm:$0xff] }
  0x70   : > { %487 = vperm.xlu0 %907, %v440_v7   ;;  %477 = vperm.xlu1 %908, %v438_v8   ;;  %v460_v50 = vld [vmem:[%s1277_s20 + $0x10] sm:$0xff]  ;;  %v459_v51 = vld [vmem:[%s1277_s20 + $0x8] sm:$0xff]  ;;  %v458_v52 = vld [vmem:[%s1277_s20] sm:$0xff] }
  0x71   : > { %840 = vmatpush.msra.mxu3 %v1314_v11  ;;  %821 = vmatpush.msra.mxu2 %v470_v40  ;;  %v909_v58 = vld [vmem:[%s361_s12] ss:$0 sm:$0xff] }
  0x73   : > { %841 = vmatpush.msra.mxu3 %v1318_v12  ;;  %822 = vmatpush.msra.mxu2 %v469_v41 }
  0x75   : > { %842 = vmatpush.msra.mxu3 %v1322_v13  ;;  %823 = vmatpush.msra.mxu2 %v468_v42 }
  0x77   : > { %843 = vmatpush.msra.mxu3 %v1326_v14  ;;  %824 = vmatpush.msra.mxu2 %v467_v43 }
  0x79   : > { %844 = vmatpush.msra.mxu3 %v1330_v15  ;;  %825 = vmatpush.msra.mxu2 %v466_v44 }
  0x7b   : > { %845 = vmatpush.msra.mxu3 %v1334_v16  ;;  %826 = vmatpush.msra.mxu2 %v465_v45 }
  0x7d   : > { %846 = vmatpush.msra.mxu3 %v1338_v17  ;;  %827 = vmatpush.msra.mxu2 %v464_v46 }
  0x7f   : > { %847 = vmatpush.msra.mxu3 %v1342_v18  ;;  %828 = vmatpush.msra.mxu2 %v463_v47 }
  0x81   : > { %848 = vmatpush.msra.mxu3 %v1346_v19  ;;  %829 = vmatpush.msra.mxu2 %v462_v48 }
  0x83   : > { %849 = vmatpush.msra.mxu3 %v1351_v20  ;;  %830 = vmatpush.msra.mxu2 %v461_v49 }
  0x85   : > { %831 = vmatpush.msra.mxu2 %v460_v50 }
  0x87   : > { %832 = vmatpush.msra.mxu2 %v459_v51 }
  0x89   : > { %833 = vmatpush.msra.mxu2 %v458_v52 }
  0xda   : > { %v493_v23 = vpop.permute.xlu0 %492  ;;  %v483_v24 = vpop.permute.xlu1 %482 }
  0xdb   : > { %v498_v25 = vmul.f32 %v493_v23, %v433_v21  ;;  %v496_v26 = vmul.f32 %v483_v24, %v431_v22 }
  0xdd   : > { %549 = vmatpush.msra.mxu1 %v498_v25  ;;  %606 = vmatmul.f32.vlgmr.msra.gmra.mxu3 %v496_v26 }
  0xde   : > { %520 = vmatpush.msra.mxu0 %v496_v26 }
  0xe2   : > { %v488_v29 = vpop.permute.xlu0 %487  ;;  %v478_v30 = vpop.permute.xlu1 %477 }
  0xe3   : > { %v497_v31 = vmul.f32 %v488_v29, %v432_v27  ;;  %v1358_v32 = vmul.f32 %v478_v30, %v430_v28 }
  0xe5   : > { %521 = vmatpush.msra.mxu0 %v1358_v32  ;;  %550 = vmatpush.msra.mxu1 %v497_v31 }
  0xe6   : > { %609 = vmatmul.f32.gmra.mxu3 %v497_v31  ;;  %806 = vmatmul.msk.f32.vlgmr.msra.gmra.mxu0 %vm499_vm0, %v434_v33 }
  0xe7   : > { %808 = vmatmul.msk.f32.vlgmr.msra.gmra.mxu1 %vm499_vm0, %v436_v34  ;;  %558 = vmatpush.msrb.mxu0 %v473_v35 }
  0xe8   : > { %587 = vmatpush.msrb.mxu1 %v457_v3 }
  0xe9   : > { %559 = vmatpush.msrb.mxu0 %v472_v36 }
  0xea   : > { %588 = vmatpush.msrb.mxu1 %v1295_v4 }
  0xeb   : > { %560 = vmatpush.msrb.mxu0 %v471_v37 }
  0xec   : > { %589 = vmatpush.msrb.mxu1 %v1298_v5 }
  0xed   : > { %561 = vmatpush.msrb.mxu0 %v470_v40 }
  0xee   : > { %590 = vmatpush.msrb.mxu1 %v1302_v6  ;;  %612 = vmatmul.f32.gmra.mxu3 %v498_v25 }
  0xef   : > { %807 = vmatmul.msk.f32.gmra.mxu0 %vm499_vm0, %v435_v38  ;;  %809 = vmatmul.msk.f32.gmra.mxu1 %vm499_vm0, %v437_v39 }
  0xf0   : > { %591 = vmatpush.msrb.mxu1 %v1306_v9  ;;  %562 = vmatpush.msrb.mxu0 %v469_v41 }
  0xf2   : > { %592 = vmatpush.msrb.mxu1 %v1310_v10  ;;  %563 = vmatpush.msrb.mxu0 %v468_v42 }
  0xf4   : > { %593 = vmatpush.msrb.mxu1 %v1314_v11  ;;  %564 = vmatpush.msrb.mxu0 %v467_v43 }
  0xf6   : > { %594 = vmatpush.msrb.mxu1 %v1318_v12  ;;  %565 = vmatpush.msrb.mxu0 %v466_v44 }
  0xf8   : > { %595 = vmatpush.msrb.mxu1 %v1322_v13  ;;  %566 = vmatpush.msrb.mxu0 %v465_v45 }
  0xfa   : > { %596 = vmatpush.msrb.mxu1 %v1326_v14  ;;  %567 = vmatpush.msrb.mxu0 %v464_v46 }
  0xfc   : > { %597 = vmatpush.msrb.mxu1 %v1330_v15  ;;  %568 = vmatpush.msrb.mxu0 %v463_v47 }
  0xfe   : > { %598 = vmatpush.msrb.mxu1 %v1334_v16  ;;  %569 = vmatpush.msrb.mxu0 %v462_v48 }
 0x100   : > { %599 = vmatpush.msrb.mxu1 %v1338_v17  ;;  %570 = vmatpush.msrb.mxu0 %v461_v49 }
 0x102   : > { %600 = vmatpush.msrb.mxu1 %v1342_v18  ;;  %571 = vmatpush.msrb.mxu0 %v460_v50 }
 0x104   : > { %601 = vmatpush.msrb.mxu1 %v1346_v19  ;;  %572 = vmatpush.msrb.mxu0 %v459_v51 }
 0x106   : > { %602 = vmatpush.msrb.mxu1 %v1351_v20  ;;  %573 = vmatpush.msrb.mxu0 %v458_v52 }
 0x107   : > { %603 = vmatmul.f32.vlgmr.msrb.gmra.mxu1 %v1358_v32 }
 0x160   : > { %v607_v57 = vpop.f32.mrf.mxu3 }
 0x163   : > { %v523_v53 = vpop.f32.mrf.mxu0 }
 0x164   : > { %v552_v54 = vpop.f32.mrf.mxu1  ;;  %574 = vmatmul.f32.vlgmr.msrb.gmra.mxu0 %v523_v53 }
 0x165   : > { %580 = vmatmul.f32.vlgmr.msra.gmra.mxu2 %v552_v54 }
 0x169   : > { %v610_v63 = vpop.f32.mrf.mxu3 }
 0x16c   : > { %v526_v55 = vpop.f32.mrf.mxu0  ;;  %v555_v56 = vpop.f32.mrf.mxu1 }
 0x16d   : > { %577 = vmatmul.f32.gmra.mxu0 %v526_v55  ;;  %583 = vmatmul.f32.gmra.mxu2 %v555_v56 }
 0x171   : > { %v613_v9 = vpop.f32.mrf.mxu3 }
 0x184   : > { %v604_v59 = vpop.f32.mrf.mxu1 }
 0x1e1   : > { %v575_v60 = vpop.f32.mrf.mxu0 }
 0x1e2   : > { %v605_v61 = vadd.f32 %v604_v59, %v575_v60 }
 0x1e4   : > { %v619_v62 = vadd.f32 %v909_v58, %v605_v61 }
 0x1e6   : > { %v623_v0 = vmax.f32 %v619_v62, 0.0 }
 0x1e8   : > { %627 = vst [vmem:[%s429_s21] sm:$0xff] %v623_v0  ;;  %v581_v1 = vpop.f32.mrf.mxu2 }
 0x1e9   : > { %v611_v2 = vadd.f32 %v610_v63, %v581_v1 }
 0x1ea   : > { %v578_v3 = vpop.f32.mrf.mxu0 }
 0x1eb   : > { %v621_v4 = vadd.f32 %v909_v58, %v611_v2  ;;  %v608_v5 = vadd.f32 %v607_v57, %v578_v3 }
 0x1ed   : > { %v625_v6 = vmax.f32 %v621_v4, 0.0  ;;  %v620_v7 = vadd.f32 %v909_v58, %v608_v5 }
 0x1ef   : > { %629 = vst [vmem:[%s429_s21 + $0x10] sm:$0xff] %v625_v6  ;;  %v624_v8 = vmax.f32 %v620_v7, 0.0 }
 0x1f0   : > { %v584_v10 = vpop.f32.mrf.mxu2 }
 0x1f1   : > { %628 = vst [vmem:[%s429_s21 + $0x8] sm:$0xff] %v624_v8  ;;  %v614_v11 = vadd.f32 %v613_v9, %v584_v10 }
 0x1f3   : > { %v622_v12 = vadd.f32 %v909_v58, %v614_v11 }
 0x1f5   : > { %v626_v13 = vmax.f32 %v622_v12, 0.0 }
 0x1f7   : > { %630 = vst [vmem:[%s429_s21 + $0x18] sm:$0xff] %v626_v13 }
 0x1f8 PF: > { %s1441_s28 = sld [smem:[#allocation12_spill]]  ;;  %p22_p7 = scmp.ge.s32.totalorder %s1134_s26, 5  }
 0x1f9   : > { %s1442_s23 = sld [smem:[#allocation13_spill]]  ;;  %s1443_s21 = smov %s1064_s22 }
 0x1fa   : > { %s1445_s24 = smov %s1134_s26  ;;  %24 = sbr.rel (!%p22_p7) target bundleno = 9 (0x9), region = 127 }
 0x1fe   : > { %s1444_s22 = smov %s1441_s28 }
 0x1ff   :  { %652 = vsyncpa [#allocation3], 1 }
 0x200   :  { %654 = vsyncpa [#allocation3 + $0x1], 1 }
 0x201   :  { %655 = vsyncpa [#allocation5], 1 }
 0x202   :  { %657 = vsyncpa [#allocation5 + $0x1], 1 }
 0x203   :  { %658 = vsyncpa [#allocation8], 1 }
 0x204   :  { %660 = vsyncpa [#allocation8 + $0x1], 1 }

// kernel: multi_view_gcn_forward.5
= control target key start
LH: loop header
LB: loop body
LE: loop exit
PB: predicated region body
PF: predicated region fallthrough
CT: control target
= control target key end

     0   :  { %s1809_s0 = inlined_call_operand.vmem [shape: f32[3,2,16,128], index: 0, kind: input, shape index: {}]   ;;  %s1810_s1 = inlined_call_operand.hbm [shape: f32[3,2,16,16], index: 1, kind: input, shape index: {}]   ;;  %s1811_s2 = inlined_call_operand.vmem [shape: f32[3,2,16,1], index: 2, kind: input, shape index: {}]   ;;  %s1812_s3 = inlined_call_operand.vmem [shape: f32[3,2,16,1], index: 3, kind: input, shape index: {}]   ;;  %s1813_s4 = inlined_call_operand.hbm [shape: f32[3,128,128], index: 4, kind: input, shape index: {}]   ;;  %s1814_s5 = inlined_call_operand.hbm [shape: f32[3,128,128], index: 5, kind: input, shape index: {}]   ;;  %s1815_s6 = inlined_call_operand.hbm [shape: f32[3,1,128], index: 6, kind: input, shape index: {}]   ;;  %s1816_s7 = inlined_call_operand.vmem [shape: f32[3,2,16,128], index: 7, kind: output, shape index: {0}]   ;;  %s1817_s8 = inlined_call_operand.vmem [shape: f32[3,2,256], index: 8, kind: output, shape index: {1}]  }
   0x1   :  { %1826 = sst [smem:[#allocation15_spill]] %s1813_s4 }
   0x2   :  { %1827 = sst [smem:[#allocation16_spill]] %s1816_s7 }
   0x3   :  { %14 = vsyncpa [#allocation3], 0 }
   0x4   :  { %16 = vsyncpa [#allocation3 + $0x1], 0 }
   0x5   :  { %17 = vsyncpa [#allocation5], 0 }
   0x6   :  { %19 = vsyncpa [#allocation5 + $0x1], 0 }
   0x7   :  { %20 = vsyncpa [#allocation8], 0 }
   0x8   :  { %22 = vsyncpa [#allocation8 + $0x1], 0  ;;  %s1412_s27 = smov 0   ;;  %s1414_s28 = smov 0  }
   0x9   :  { %s1416_s29 = smov 0   ;;  %s1418_s30 = smov 0  }
   0xa LB: > { %1828 = sst [smem:[#allocation12_spill]] %s1358_s29  ;;  %s1431_s9 = sadd.s32 4294967295, %s1362_s30   ;;  %s1362_s30 = sphi %s1418_s30, %s1843_s30   ;;  %s1358_s29 = sphi %s1416_s29, %s1845_s29   ;;  %s1354_s28 = sphi %s1414_s28, %s1847_s28   ;;  %s1350_s27 = sphi %s1412_s27, %s1846_s27  }
   0xb   : > { %s1434_s10 = sadd.s32 1, %s1362_s30   ;;  %s61_s12 = sadd.s32 1, %s1358_s29 }
   0xc   : > { %1829 = sst [smem:[#allocation13_spill]] %s1434_s10  ;;  %s58_s11 = ssub.s32 %s1362_s30, %s1434_s10 }
   0xd   : > { %p59_p0 = scmp.eq.s32.totalorder %s58_s11, 0  ;;  %p68_p1 = scmp.ne.s32.totalorder %s1358_s29, %s1354_s28 }
   0xe   : > { %p69_p2 = scmp.eq.s32.totalorder %s1362_s30, 0  ;;  %p74_p3 = scmp.ne.s32.totalorder %s1354_s28, %s1350_s27 }
   0xf   : > { %s1444_s13 = scalar_select %p59_p0, %s1358_s29, %s61_s12  }
  0x10   : > { %p70_p4 = por %p69_p2, %p68_p1  ;;  %p75_p5 = scmp.eq.s32.totalorder %s1431_s9, 0 }
  0x11   : > { %1830 = sst [smem:[#allocation14_spill]] %s1444_s13  ;;  %p1156_p6 = scmp.lt.s32.totalorder %s1362_s30, 3 }
  0x12   : > { %p1448_p7 = por %p75_p5, %p74_p3  ;;  %s1453_s15 = sand.u32 1, %s1358_s29  }
  0x13   : > { %p1455_p8 = pnand %p1156_p6, %p70_p4  ;;  %s326_s17 = sand.u32 1, %s1362_s30  }
  0x14   : > { %s1818_s18 = sshll.u32 %s1453_s15, 7  ;;  %s1096_s19 = sshll.u32 %s1362_s30, 7 }
  0x15   : > { %s1833_s4 = sld [smem:[#allocation15_spill]]  ;;  %s330_s24 = scalar_lea.vmem [#allocation4], %s1818_s18 }
  0x16   : > { %s338_s25 = sshll.u32 %s330_s24, 4  ;;  %s1467_s26 = scalar_lea.sflag [#allocation5], %s326_s17  ;;  %s339_s25 = int_to_ptr.vmem [resolvable:$true] %s338_s25 }
  0x17   : > { %p1204_p10 = pneg %p1455_p8 }
  0x1b   : > { %s335_s22 = scalar_lea.hbm %s1833_s4, %s1096_s19  ;;  %s1207_s21 = scalar_lea.hbm %s1833_s4, 384 }
  0x1c   : > { %s336_s23 = sshll.u32 %s335_s22, 4  ;;  %s337_s23 = int_to_ptr.hbm [resolvable:$true] %s336_s23 }
  0x1d   : > { %s1200_s27 = sshra.s32 %s337_s23, 4  ;;  %s1201_s27 = int_to_ptr.hbm [resolvable:$true] %s1200_s27 }
  0x1e   : > { %s1202_s11 = scalar_lea.hbm %s1201_s27, 128  ;;  %p1208_p13 = scmp.lt.s32.totalorder %s1201_s27, %s1833_s4 }
  0x1f   : > { %p1203_p9 = scmp.ne.s32.totalorder %s1201_s27, %s1202_s11  ;;  %p1209_p0 = scmp.lt.s32.totalorder %s1207_s21, %s1202_s11 }
  0x21   : > { %p1205_p11 = pnand %p1204_p10, %p1203_p9  ;;  %p1210_p1 = por %p1209_p0, %p1208_p13 }
  0x23   : > { %p1206_p12 = pneg %p1205_p11 }
  0x25   : > { %p1211_p2 = pnand %p1210_p1, %p1206_p12 }
  0x27   : > { %1214 = shalt.err (!%p1211_p2)
}
  0x28   : > { %s1819_s17 = smov 128   ;;  %s1821_s18 = smov 8  }
  0x29   : > { %1149 = dma.hbm_to_vmem [thread:$0]  (!%p1455_p8), %s337_s23, 2048, %s339_s25, %s1467_s26, %s1819_s17, %s1819_s17, %s1821_s18  }
  0x2a   : > { %s357_s11 = scalar_lea.hbm %s1814_s5, %s1096_s19  ;;  %s1834_s21 = sshll.u32 %s1453_s15, 7 }
  0x2b   : > { %s358_s20 = sshll.u32 %s357_s11, 4  ;;  %s352_s22 = scalar_lea.vmem [#allocation6], %s1834_s21  ;;  %s1491_s20 = int_to_ptr.hbm [resolvable:$true] %s358_s20 }
  0x2c   : > { %s360_s24 = sshll.u32 %s352_s22, 4  ;;  %p1075_p3 = scmp.ge.s32.totalorder %s1362_s30, 1  ;;  %s1493_s24 = int_to_ptr.vmem [resolvable:$true] %s360_s24 }
  0x2d   : > { %p385_p4 = scmp.lt.s32.totalorder %s1362_s30, 4  ;;  %s1066_s4 = sshll.u32 %s1453_s15, 5 }
  0x2e   : > { %s1095_s23 = sshll.u32 %s1362_s30, 5  ;;  %s292_s25 = scalar_lea.vmem [#allocation2], %s1066_s4 }
  0x2f   : > { %p1498_p5 = pnand %p1075_p3, %p385_p4  ;;  %s300_s19 = sshll.u32 %s292_s25, 4  ;;  %s301_s19 = int_to_ptr.vmem [resolvable:$true] %s300_s19 }
  0x30   : > { %s297_s11 = scalar_lea.hbm %s1810_s1, %s1095_s23  ;;  %s289_s22 = scalar_lea.sflag [#allocation3], %s1453_s15 }
  0x31   : > { %s298_s21 = sshll.u32 %s297_s11, 4  ;;  %s1237_s4 = scalar_lea.hbm %s1810_s1, 96  ;;  %s299_s21 = int_to_ptr.hbm [resolvable:$true] %s298_s21 }
  0x32   : > { %s1230_s17 = sshra.s32 %s299_s21, 4  ;;  %s1231_s17 = int_to_ptr.hbm [resolvable:$true] %s1230_s17 }
  0x33   : > { %s1232_s18 = scalar_lea.hbm %s1231_s17, 32  ;;  %p1238_p12 = scmp.lt.s32.totalorder %s1231_s17, %s1810_s1 }
  0x34   : > { %p1233_p6 = scmp.ne.s32.totalorder %s1231_s17, %s1232_s18  ;;  %p1239_p13 = scmp.lt.s32.totalorder %s1237_s4, %s1232_s18 }
  0x36   : > { %p1235_p9 = pnand %p1233_p6, %p1204_p10  ;;  %p1240_p0 = por %p1239_p13, %p1238_p12 }
  0x38   : > { %p1236_p11 = pneg %p1235_p9 }
  0x3a   : > { %p1241_p1 = pnand %p1240_p0, %p1236_p11 }
  0x3c   : > { %1244 = shalt.err (!%p1241_p1)
}
  0x3d   : > { %s1836_s23 = smov 8   ;;  %s1837_s12 = smov 128  }
  0x3e   : > { %1146 = dma.hbm_to_vmem [thread:$0]  (!%p1455_p8), %s299_s21, 512, %s301_s19, %s289_s22, %s1837_s12, %s1837_s12, %s1836_s23  }
  0x3f   : > { %s1260_s27 = sshra.s32 %s1491_s20, 4  ;;  %s1267_s18 = scalar_lea.hbm %s1814_s5, 384  ;;  %s1261_s27 = int_to_ptr.hbm [resolvable:$true] %s1260_s27 }
  0x40   : > { %s1262_s29 = scalar_lea.hbm %s1261_s27, 128  ;;  %p1268_p6 = scmp.lt.s32.totalorder %s1261_s27, %s1814_s5 }
  0x41   : > { %p1263_p2 = scmp.ne.s32.totalorder %s1261_s27, %s1262_s29  ;;  %p1269_p9 = scmp.lt.s32.totalorder %s1267_s18, %s1262_s29 }
  0x43   : > { %p1265_p3 = pnand %p1263_p2, %p1204_p10  ;;  %p1270_p11 = por %p1269_p9, %p1268_p6 }
  0x45   : > { %p1266_p4 = pneg %p1265_p3 }
  0x47   : > { %p1271_p12 = pnand %p1270_p11, %p1266_p4 }
  0x49   : > { %1274 = shalt.err (!%p1271_p12)
}
  0x4a   : > { %1152 = dma.hbm_to_vmem [thread:$0]  (!%p1455_p8), %s1491_s20, 2048, %s1493_s24, %s1467_s26, %s1837_s12, %s1837_s12, %s1836_s23  }
  0x4b   : > { %s376_s22 = scalar_lea.hbm %s1815_s6, %s1362_s30  ;;  %s373_s4 = scalar_lea.vmem [#allocation7], %s1453_s15 }
  0x4c   : > { %s380_s25 = sshll.u32 %s373_s4, 4  ;;  %s378_s27 = sshll.u32 %s376_s22, 4  ;;  %s381_s25 = int_to_ptr.vmem [resolvable:$true] %s380_s25  ;;  %s379_s27 = int_to_ptr.hbm [resolvable:$true] %s378_s27 }
  0x4d   : > { %s371_s29 = scalar_lea.sflag [#allocation8], %s1453_s15  ;;  %s1290_s7 = sshra.s32 %s379_s27, 4  ;;  %s1291_s7 = int_to_ptr.hbm [resolvable:$true] %s1290_s7 }
  0x4e   : > { %s1292_s10 = scalar_lea.hbm %s1291_s7, 1  ;;  %s1297_s20 = scalar_lea.hbm %s1815_s6, 3 }
  0x4f   : > { %p1293_p13 = scmp.ne.s32.totalorder %s1291_s7, %s1292_s10  ;;  %p1298_p2 = scmp.lt.s32.totalorder %s1291_s7, %s1815_s6 }
  0x50   : > { %p1299_p3 = scmp.lt.s32.totalorder %s1297_s20, %s1292_s10 }
  0x51   : > { %p1295_p0 = pnand %p1293_p13, %p1204_p10 }
  0x52   : > { %p1300_p4 = por %p1299_p3, %p1298_p2 }
  0x53   : > { %p1296_p1 = pneg %p1295_p0 }
  0x55   : > { %p1301_p6 = pnand %p1300_p4, %p1296_p1 }
  0x57   : > { %1304 = shalt.err (!%p1301_p6)
}
  0x58   : > { %1155 = dma.hbm_to_vmem [thread:$0]  (!%p1455_p8), %s379_s27, 16, %s381_s25, %s371_s29  }
  0x59   : > { %389 = sbr.rel (%p1498_p5) target bundleno = 507 (0x1fb), region = 48  ;;  %s1559_s15 = sand.u32 (!%p1498_p5), 1, %s1354_s28  }
  0x5a   : > { %s1076_s23 = sshll.u32 (!%p1498_p5), %s1559_s15, 5  ;;  %s392_s12 = scalar_lea.sflag (!%p1498_p5), [#allocation3], %s1559_s15 }
  0x5b   : > { %s1563_s17 = scalar_lea.vmem (!%p1498_p5), [#allocation2], %s1076_s23 }
  0x5e   : > { %1337 = dma.done.wait (%p1448_p7), %s392_s12, 512  }
  0x5f   : > { %1339 = vsyncadd (%p1448_p7), %s392_s12, 4294966784  ;;  %s401_s13 = sand.u32 1, %s1431_s9   ;;  %s1077_s16 = sshll.u32 %s1559_s15, 7 }
  0x60   : > { %s402_s11 = scalar_lea.sflag [#allocation5], %s401_s13  ;;  %s1571_s19 = scalar_lea.vmem [#allocation4], %s1077_s16 }
  0x61   : > { %1341 = dma.done.wait (%p1448_p7), %s402_s11, 4096  }
  0x62   : > { %1343 = vsyncadd (%p1448_p7), %s402_s11, 4294963200  ;;  %s1577_s21 = scalar_lea.vmem [#allocation6], %s1077_s16  ;;  %s422_s22 = scalar_lea.sflag [#allocation8], %s1559_s15 }
  0x63   : > { %s424_s4 = scalar_lea.vmem [#allocation7], %s1559_s15 }
  0x64   : > { %1345 = dma.done.wait (%p1448_p7), %s422_s22, 16  }
  0x65   : > { %1347 = vsyncadd (%p1448_p7), %s422_s22, 4294967280  ;;  %p492_p8 = scmp.lt.s32.totalorder %s1431_s9, 2  ;;  %v1366_v0 = vmov 0   ;;  %vm722_vm0 = vcmask 7168   ;;  %v1604_v22 = vld [vmem:[%s1571_s19 + $0x78] sm:$0xff]  ;;  %v1607_v23 = vld [vmem:[%s1571_s19 + $0x70] sm:$0xff] }
  0x66   : > { %1193 = vset.pattern.permute.xlu1 %v1366_v0  ;;  %1192 = vset.pattern.permute.xlu0 %v1366_v0  ;;  %v1611_v26 = vld [vmem:[%s1571_s19 + $0x68] sm:$0xff]  ;;  %v1617_v31 = vld [vmem:[%s1571_s19 + $0x60] sm:$0xff]  ;;  %v1621_v33 = vld [vmem:[%s1571_s19 + $0x58] sm:$0xff]  ;;  %vm586_vm7 = vcmask 130048   ;;  %s1842_s16 = sld [smem:[#allocation16_spill]] }
  0x67   : > { %s1849_s9 = smov (!%p492_p8, %s1431_s9), 2  ;;  %1194 = vset.pattern.permute.xlu2 %v1366_v0  ;;  %1119 = vmatpush.msra.mxu3 %v1604_v22  ;;  %v1625_v35 = vld [vmem:[%s1571_s19 + $0x50] sm:$0xff]  ;;  %v1629_v36 = vld [vmem:[%s1571_s19 + $0x48] sm:$0xff]  ;;  %v1635_v40 = vld [vmem:[%s1571_s19 + $0x40] sm:$0xff] }
  0x68   : > { %s1593_s25 = sshll.u32 %s1849_s9, 5  ;;  %v1639_v41 = vld [vmem:[%s1571_s19 + $0x38] sm:$0xff]  ;;  %v1643_v42 = vld [vmem:[%s1571_s19 + $0x30] sm:$0xff]  ;;  %v1647_v43 = vld [vmem:[%s1571_s19 + $0x28] sm:$0xff]  ;;  %s1102_s30 = sshll.u32 %s1849_s9, 2 }
  0x69   : > { %s501_s14 = scalar_lea.vmem %s1811_s2, %s1593_s25  ;;  %s506_s18 = scalar_lea.vmem %s1812_s3, %s1593_s25  ;;  %1120 = vmatpush.msra.mxu3 %v1607_v23  ;;  %v1654_v46 = vld [vmem:[%s1571_s19 + $0x20] sm:$0xff]  ;;  %v1658_v47 = vld [vmem:[%s1571_s19 + $0x18] sm:$0xff]  ;;  %v1662_v48 = vld [vmem:[%s1571_s19 + $0x10] sm:$0xff] }
  0x6a   : > { %v528_v1 = vld [vmem:[%s501_s14 + $0x18] sm:$0xff]  ;;  %v526_v2 = vld [vmem:[%s501_s14 + $0x8] sm:$0xff]  ;;  %v718_v3 = vld [vmem:[%s506_s18] sm:$0xff]  ;;  %s496_s24 = scalar_lea.vmem %s1809_s0, %s1593_s25 }
  0x6b   : > { %579 = vperm.xlu0 %1192, %v528_v1   ;;  %569 = vperm.xlu1 %1193, %v526_v2   ;;  %v719_v4 = vld [vmem:[%s506_s18 + $0x8] sm:$0xff]  ;;  %v723_v5 = vsel %vm722_vm0, %v718_v3, 0.0  ;;  %v720_v7 = vld [vmem:[%s506_s18 + $0x10] sm:$0xff]  ;;  %v721_v8 = vld [vmem:[%s506_s18 + $0x18] sm:$0xff]  ;;  %vm741_vm1 = vcmp.gt.f32.partialorder %v718_v3, 0.0 }
  0x6c   : > { %v724_v6 = vsel %vm722_vm0, %v719_v4, 0.0  ;;  %v732_v10 = vsel %vm722_vm0, %v720_v7, 0.0  ;;  %v733_v11 = vsel %vm722_vm0, %v721_v8, 0.0  ;;  %v527_v14 = vld [vmem:[%s501_s14 + $0x10] sm:$0xff]  ;;  %v525_v15 = vld [vmem:[%s501_s14] sm:$0xff]  ;;  %vm742_vm2 = vcmp.gt.f32.partialorder %v719_v4, 0.0  ;;  %1121 = vmatpush.msra.mxu3 %v1611_v26  ;;  %s511_s11 = scalar_lea.vmem %s1842_s16, %s1593_s25 }
  0x6d   : > { %v725_v9 = vadd.f32 %v724_v6, %v723_v5  ;;  %v734_v13 = vadd.f32 %v733_v11, %v732_v10  ;;  %v745_v27 = vsel %vm741_vm1, 1, %v1366_v0  ;;  %v746_v28 = vsel %vm742_vm2, 1, %v1366_v0  ;;  %v1666_v49 = vld [vmem:[%s1571_s19 + $0x8] sm:$0xff]  ;;  %v1670_v50 = vld [vmem:[%s1571_s19] sm:$0xff]  ;;  %v520_v52 = vld [vmem:[%s496_s24 + $0x18] sm:$0xff] }
  0x6e   : > { %1122 = vmatpush.msra.mxu3 %v1617_v31  ;;  %vm744_vm3 = vcmp.gt.f32.partialorder %v721_v8, 0.0  ;;  %vm743_vm5 = vcmp.gt.f32.partialorder %v720_v7, 0.0  ;;  %v518_v53 = vld [vmem:[%s496_s24 + $0x8] sm:$0xff]  ;;  %v519_v59 = vld [vmem:[%s496_s24 + $0x10] sm:$0xff]  ;;  %v517_v60 = vld [vmem:[%s496_s24] sm:$0xff] }
  0x6f   : > { %v726_v12 = vrot.slane %v725_v9, 4  ;;  %v735_v17 = vrot.slane %v734_v13, 4  ;;  %v748_v37 = vsel %vm744_vm3, 1, %v1366_v0  ;;  %v747_v44 = vsel %vm743_vm5, 1, %v1366_v0  ;;  %v521_v3 = vld [vmem:[%s1563_s17] sm:$0xff]  ;;  %v523_v4 = vld [vmem:[%s1563_s17 + $0x10] sm:$0xff] }
  0x70   : > { %1123 = vmatpush.msra.mxu3 %v1621_v33  ;;  %v560_v11 = vld [vmem:[%s1577_s21 + $0x78] sm:$0xff] }
  0x71   : > { %v727_v16 = vadd.f32 %v726_v12, %v725_v9  ;;  %v736_v19 = vadd.f32 %v735_v17, %v734_v13  ;;  %v559_v12 = vld [vmem:[%s1577_s21 + $0x70] sm:$0xff]  ;;  %1103 = vmatpush.msra.mxu2 %v560_v11 }
  0x72   : > { %1124 = vmatpush.msra.mxu3 %v1625_v35 }
  0x73   : > { %574 = vperm.xlu0 %1192, %v527_v14   ;;  %564 = vperm.xlu1 %1193, %v525_v15   ;;  %v728_v18 = vrot.slane %v727_v16, 2  ;;  %v737_v21 = vrot.slane %v736_v19, 2  ;;  %v558_v15 = vld [vmem:[%s1577_s21 + $0x68] sm:$0xff] }
  0x74   : > { %1125 = vmatpush.msra.mxu3 %v1629_v36  ;;  %1104 = vmatpush.msra.mxu2 %v559_v12 }
  0x75   : > { %v729_v20 = vadd.f32 %v728_v18, %v727_v16  ;;  %v738_v25 = vadd.f32 %v737_v21, %v736_v19  ;;  %v524_v21 = vld [vmem:[%s1563_s17 + $0x18] sm:$0xff] }
  0x76   : > { %1126 = vmatpush.msra.mxu3 %v1635_v40  ;;  %1105 = vmatpush.msra.mxu2 %v558_v15 }
  0x77   : > { %v730_v24 = vrot.slane %v729_v20, 1  ;;  %v739_v30 = vrot.slane %v738_v25, 1 }
  0x78   : > { %1127 = vmatpush.msra.mxu3 %v1639_v41 }
  0x79   : > { %v731_v29 = vadd.f32 %v730_v24, %v729_v20  ;;  %v740_v34 = vadd.f32 %v739_v30, %v738_v25  ;;  %v522_v20 = vld [vmem:[%s1563_s17 + $0x8] sm:$0xff]  ;;  %s516_s17 = scalar_lea.vmem %s1817_s8, %s1102_s30 }
  0x7a   : > { %1128 = vmatpush.msra.mxu3 %v1643_v42 }
  0x7b   : > { %750 = vperm.xlu0 %1192, %v745_v27   ;;  %753 = vperm.xlu1 %1193, %v746_v28   ;;  %v811_v32 = vmax.f32 %v731_v29, 1.0  ;;  %vm783_vm4 = vcmp.gt.f32.partialorder %v731_v29, 0.0  ;;  %v812_v39 = vmax.f32 %v740_v34, 1.0  ;;  %vm784_vm6 = vcmp.gt.f32.partialorder %v740_v34, 0.0 }
  0x7c   : > { %v785_v38 = vsel %vm783_vm4, 1, %v1366_v0  ;;  %1129 = vmatpush.msra.mxu3 %v1647_v43  ;;  %v786_v45 = vsel %vm784_vm6, 1, %v1366_v0  ;;  %vm855_vm4 = vcmask 1041409  }
  0x7d   : > { %815 = vperm.xlu2 %1194, %v811_v32  }
  0x7e   : > { %1130 = vmatpush.msra.mxu3 %v1654_v46 }
  0x80   : > { %1131 = vmatpush.msra.mxu3 %v1658_v47 }
  0x82   : > { %1132 = vmatpush.msra.mxu3 %v1662_v48 }
  0x83   : > { %759 = vperm.xlu0 %1192, %v748_v37   ;;  %788 = vperm.xlu1 %1193, %v785_v38  }
  0x84   : > { %1133 = vmatpush.msra.mxu3 %v1666_v49 }
  0x85   : > { %820 = vperm.xlu2 %1194, %v812_v39  }
  0x86   : > { %1134 = vmatpush.msra.mxu3 %v1670_v50 }
  0x8d   : > { %756 = vperm.xlu2 %1194, %v747_v44  }
  0x95   : > { %791 = vperm.xlu2 %1194, %v786_v45   ;;  %v555_v45 = vld [vmem:[%s1577_s21 + $0x50] sm:$0xff] }
  0xd7   : > { %v1673_v51 = vpop.permute.xlu2 %815 }
  0xd8   : > { %1196 = vrcp.f32 %v1673_v51  ;;  %vm828_vm10 = vweird.f32 %v1673_v51 }
  0xdd   : > { %v580_v54 = vpop.permute.xlu0 %579  ;;  %v570_v55 = vpop.permute.xlu1 %569 }
  0xde   : > { %v1679_v56 = vmul.f32 %v580_v54, %v520_v52  ;;  %v583_v57 = vmul.f32 %v570_v55, %v518_v53  ;;  %v1686_v61 = vpop.eup %1196 }
  0xdf   : > { %v1682_v58 = vpop.permute.xlu2 %820  ;;  %v824_v7 = vmul.f32 %v1686_v61, %v1673_v51  ;;  %vm829_vm11 = vweird.f32 %v1686_v61 }
  0xe0   : > { %1198 = vrcp.f32 %v1682_v58  ;;  %636 = vmatpush.msra.mxu1 %v1679_v56  ;;  %693 = vmatmul.f32.vlgmr.msra.gmra.mxu3 %v583_v57  ;;  %vm843_vm12 = vweird.f32 %v1682_v58  ;;  %v849_v39 = vand.u32 2147483648, %v1682_v58  ;;  %vm1738_vm15 = vmor %vm828_vm10, %vm829_vm11  ;;  %v847_v55 = vand.u32 2147483647, %v1682_v58 }
  0xe1   : > { %607 = vmatpush.msra.mxu0 %v583_v57  ;;  %v825_v16 = vsub.f32 1.0, %v824_v7 }
  0xe2   : > { %vm848_vm3 = vcmp.eq.f32.partialorder %v847_v55, 8.507059e+37 }
  0xe3   : > { %v826_v29 = vmul.f32 %v1686_v61, %v825_v16 }
  0xe5   : > { %v575_v62 = vpop.permute.xlu0 %574  ;;  %v565_v63 = vpop.permute.xlu1 %564  ;;  %v827_v52 = vadd.f32 %v1686_v61, %v826_v29 }
  0xe6   : > { %v1688_v0 = vpop.eup %1198  ;;  %v1690_v1 = vmul.f32 %v575_v62, %v519_v59  ;;  %v1692_v2 = vmul.f32 %v565_v63, %v517_v60 }
  0xe7   : > { %v839_v8 = vmul.f32 %v1688_v0, %v1682_v58  ;;  %v757_v32 = vpop.permute.xlu2 %756  ;;  %vm844_vm13 = vweird.f32 %v1688_v0  ;;  %v831_v7 = vsel %vm1738_vm15, %v1686_v61, %v827_v52 }
  0xe8   : > { %v804_v5 = vadd.f32 %v1679_v56, %v1690_v1  ;;  %v797_v6 = vadd.f32 %v583_v57, %v1692_v2  ;;  %608 = vmatpush.msra.mxu0 %v1692_v2  ;;  %637 = vmatpush.msra.mxu1 %v1690_v1  ;;  %vm763_vm14 = vcmp.eq.s32.totalorder %v757_v32, 1  ;;  %vm1750_vm0 = vmor %vm843_vm12, %vm844_vm13 }
  0xe9   : > { %696 = vmatmul.f32.gmra.mxu3 %v1690_v1  ;;  %1089 = vmatmul.msk.f32.vlgmr.msra.gmra.mxu0 %vm586_vm7, %v521_v3  ;;  %v840_v17 = vsub.f32 1.0, %v839_v8  ;;  %v552_v8 = vld [vmem:[%s1577_s21 + $0x38] sm:$0xff] }
  0xea   : > { %v805_v9 = vrot.slane %v804_v5, 4  ;;  %v798_v10 = vrot.slane %v797_v6, 4  ;;  %1091 = vmatmul.msk.f32.vlgmr.msra.gmra.mxu1 %vm586_vm7, %v523_v4  ;;  %645 = vmatpush.msrb.mxu0 %v560_v11  ;;  %v850_v4 = vor.u32 1.1754944e-38, %v849_v39 }
  0xeb   : > { %674 = vmatpush.msrb.mxu1 %v1604_v22  ;;  %v841_v30 = vmul.f32 %v1688_v0, %v840_v17 }
  0xec   : > { %v806_v13 = vadd.f32 %v805_v9, %v804_v5  ;;  %v799_v14 = vadd.f32 %v798_v10, %v797_v6  ;;  %646 = vmatpush.msrb.mxu0 %v559_v12  ;;  %v553_v6 = vld [vmem:[%s1577_s21 + $0x40] sm:$0xff] }
  0xed   : > { %675 = vmatpush.msrb.mxu1 %v1607_v23  ;;  %v751_v18 = vpop.permute.xlu0 %750  ;;  %v754_v19 = vpop.permute.xlu1 %753  ;;  %v557_v23 = vld [vmem:[%s1577_s21 + $0x60] sm:$0xff]  ;;  %v842_v54 = vadd.f32 %v1688_v0, %v841_v30 }
  0xee   : > { %vm761_vm8 = vcmp.eq.s32.totalorder %v751_v18, 1  ;;  %vm762_vm9 = vcmp.eq.s32.totalorder %v754_v19, 1  ;;  %v807_v24 = vrot.slane %v806_v13, 2  ;;  %v800_v22 = vrot.slane %v799_v14, 2  ;;  %647 = vmatpush.msrb.mxu0 %v558_v15  ;;  %1106 = vmatpush.msra.mxu2 %v557_v23  ;;  %v549_v18 = vld [vmem:[%s1577_s21 + $0x20] sm:$0xff] }
  0xef   : > { %v765_v25 = vsel %vm761_vm8, %v1692_v2, -1e+30  ;;  %v766_v27 = vsel %vm762_vm9, %v583_v57, -1e+30  ;;  %676 = vmatpush.msrb.mxu1 %v1611_v26  ;;  %v556_v26 = vld [vmem:[%s1577_s21 + $0x58] sm:$0xff]  ;;  %v792_v16 = vpop.permute.xlu2 %791 }
  0xf0   : > { %v769_v28 = vmax.f32 %v765_v25, %v766_v27  ;;  %v808_v37 = vadd.f32 %v807_v24, %v806_v13  ;;  %v801_v38 = vadd.f32 %v800_v22, %v799_v14  ;;  %648 = vmatpush.msrb.mxu0 %v557_v23  ;;  %1107 = vmatpush.msra.mxu2 %v556_v26  ;;  %v550_v14 = vld [vmem:[%s1577_s21 + $0x28] sm:$0xff]  ;;  %vm794_vm5 = vcmp.eq.s32.totalorder %v792_v16, 1  ;;  %v547_v22 = vld [vmem:[%s1577_s21 + $0x10] sm:$0xff]  ;;  %v545_v23 = vld [vmem:[%s1577_s21] sm:$0xff] }
  0xf1   : > { %677 = vmatpush.msrb.mxu1 %v1617_v31  ;;  %699 = vmatmul.f32.gmra.mxu3 %v1679_v56  ;;  %v834_v31 = vand.u32 2147483648, %v1673_v51 }
  0xf2   : > { %v770_v34 = vrot.slane %v769_v28, 4  ;;  %1090 = vmatmul.msk.f32.gmra.mxu0 %vm586_vm7, %v522_v20  ;;  %1092 = vmatmul.msk.f32.gmra.mxu1 %vm586_vm7, %v524_v21  ;;  %v809_v62 = vrot.slane %v808_v37, 1  ;;  %v802_v63 = vrot.slane %v801_v38, 1  ;;  %v548_v21 = vld [vmem:[%s1577_s21 + $0x18] sm:$0xff]  ;;  %vm861_vm7 = vcmask 1041408  }
  0xf3   : > { %678 = vmatpush.msrb.mxu1 %v1621_v33  ;;  %v832_v33 = vand.u32 2147483647, %v1673_v51  ;;  %649 = vmatpush.msrb.mxu0 %v556_v26  ;;  %v554_v51 = vld [vmem:[%s1577_s21 + $0x48] sm:$0xff]  ;;  %v835_v58 = vor.u32 1.1754944e-38, %v834_v31 }
  0xf4   : > { %v771_v44 = vmax.f32 %v769_v28, %v770_v34  ;;  %1108 = vmatpush.msra.mxu2 %v555_v45  ;;  %v803_v9 = vadd.f32 %v802_v63, %v801_v38  ;;  %v810_v10 = vadd.f32 %v809_v62, %v808_v37 }
  0xf5   : > { %679 = vmatpush.msrb.mxu1 %v1625_v35  ;;  %v760_v57 = vpop.permute.xlu0 %759  ;;  %v767_v35 = vsel %vm763_vm14, %v1690_v1, -1e+30  ;;  %650 = vmatpush.msrb.mxu0 %v555_v45  ;;  %vm833_vm2 = vcmp.eq.f32.partialorder %v832_v33, 8.507059e+37  ;;  %v846_v1 = vsel %vm1750_vm0, %v1688_v0, %v842_v54  ;;  %v551_v0 = vld [vmem:[%s1577_s21 + $0x30] sm:$0xff] }
  0xf6   : > { %v772_v60 = vrot.slane %v771_v44, 2  ;;  %vm764_vm1 = vcmp.eq.s32.totalorder %v760_v57, 1  ;;  %1109 = vmatpush.msra.mxu2 %v554_v51  ;;  %v836_v61 = vsel %vm833_vm2, %v835_v58, %v831_v7  ;;  %v851_v11 = vsel %vm848_vm3, %v850_v4, %v846_v1 }
  0xf7   : > { %v768_v3 = vsel %vm764_vm1, %v1679_v56, -1e+30  ;;  %680 = vmatpush.msrb.mxu1 %v1629_v36  ;;  %651 = vmatpush.msrb.mxu0 %v554_v51  ;;  %v852_v15 = vmul.f32 %v851_v11, %v810_v10 }
  0xf8   : > { %v776_v5 = vmax.f32 %v767_v35, %v768_v3  ;;  %v773_v56 = vmax.f32 %v771_v44, %v772_v60  ;;  %1110 = vmatpush.msra.mxu2 %v553_v6 }
  0xf9   : > { %681 = vmatpush.msrb.mxu1 %v1635_v40  ;;  %652 = vmatpush.msrb.mxu0 %v553_v6 }
  0xfa   : > { %v777_v36 = vrot.slane %v776_v5, 4  ;;  %v774_v13 = vrot.slane %v773_v56, 1  ;;  %1111 = vmatpush.msra.mxu2 %v552_v8 }
  0xfb   : > { %682 = vmatpush.msrb.mxu1 %v1639_v41  ;;  %653 = vmatpush.msrb.mxu0 %v552_v8  ;;  %v837_v41 = vmul.f32 %v836_v61, %v803_v9 }
  0xfc   : > { %v778_v12 = vmax.f32 %v776_v5, %v777_v36  ;;  %1112 = vmatpush.msra.mxu2 %v551_v0  ;;  %v775_v19 = vmax.f32 %v773_v56, %v774_v13 }
  0xfd   : > { %683 = vmatpush.msrb.mxu1 %v1643_v42  ;;  %654 = vmatpush.msrb.mxu0 %v551_v0  ;;  %v789_v42 = vpop.permute.xlu1 %788 }
  0xfe   : > { %v779_v40 = vrot.slane %v778_v12, 2  ;;  %1113 = vmatpush.msra.mxu2 %v550_v14  ;;  %vm793_vm6 = vcmp.eq.s32.totalorder %v789_v42, 1 }
  0xff   : > { %684 = vmatpush.msrb.mxu1 %v1647_v43  ;;  %655 = vmatpush.msrb.mxu0 %v550_v14  ;;  %v859_v43 = vsel %vm855_vm4, %v852_v15, %v837_v41 }
 0x100   : > { %v780_v17 = vmax.f32 %v778_v12, %v779_v40  ;;  %1114 = vmatpush.msra.mxu2 %v549_v18  ;;  %v860_v25 = vrot.slane %v859_v43, 6 }
 0x101   : > { %685 = vmatpush.msrb.mxu1 %v1654_v46  ;;  %656 = vmatpush.msrb.mxu0 %v549_v18  ;;  %v795_v46 = vsel %vm793_vm6, %v775_v19, 0.0 }
 0x102   : > { %v781_v20 = vrot.slane %v780_v17, 1  ;;  %1115 = vmatpush.msra.mxu2 %v548_v21 }
 0x103   : > { %686 = vmatpush.msrb.mxu1 %v1658_v47  ;;  %657 = vmatpush.msrb.mxu0 %v548_v21 }
 0x104   : > { %v782_v24 = vmax.f32 %v780_v17, %v781_v20  ;;  %1116 = vmatpush.msra.mxu2 %v547_v22 }
 0x105   : > { %687 = vmatpush.msrb.mxu1 %v1662_v48  ;;  %658 = vmatpush.msrb.mxu0 %v547_v22  ;;  %v546_v48 = vld [vmem:[%s1577_s21 + $0x8] sm:$0xff] }
 0x106   : > { %v796_v47 = vsel %vm794_vm5, %v782_v24, 0.0  ;;  %1117 = vmatpush.msra.mxu2 %v546_v48 }
 0x107   : > { %v856_v27 = vsel %vm855_vm4, %v796_v47, %v795_v46  ;;  %688 = vmatpush.msrb.mxu1 %v1666_v49  ;;  %659 = vmatpush.msrb.mxu0 %v546_v48 }
 0x108   : > { %v862_v28 = vsel %vm861_vm7, %v856_v27, %v860_v25  ;;  %1118 = vmatpush.msra.mxu2 %v545_v23 }
 0x109   : > { %864 = vst [vmem:[%s516_s17] sm:$0xf] %v862_v28  ;;  %689 = vmatpush.msrb.mxu1 %v1670_v50  ;;  %660 = vmatpush.msrb.mxu0 %v545_v23  ;;  %v1195_v50 = vld [vmem:[%s424_s4] ss:$0 sm:$0xff] }
 0x10a   : > { %690 = vmatmul.f32.vlgmr.msrb.gmra.mxu1 %v1692_v2 }
 0x163   : > { %v694_v34 = vpop.f32.mrf.mxu3 }
 0x166   : > { %v610_v29 = vpop.f32.mrf.mxu0 }
 0x167   : > { %v639_v30 = vpop.f32.mrf.mxu1  ;;  %661 = vmatmul.f32.vlgmr.msrb.gmra.mxu0 %v610_v29 }
 0x168   : > { %667 = vmatmul.f32.vlgmr.msra.gmra.mxu2 %v639_v30 }
 0x16c   : > { %v697_v31 = vpop.f32.mrf.mxu3 }
 0x16f   : > { %v613_v49 = vpop.f32.mrf.mxu0  ;;  %v642_v32 = vpop.f32.mrf.mxu1 }
 0x170   : > { %664 = vmatmul.f32.gmra.mxu0 %v613_v49  ;;  %670 = vmatmul.f32.gmra.mxu2 %v642_v32 }
 0x174   : > { %v700_v59 = vpop.f32.mrf.mxu3 }
 0x187   : > { %v691_v2 = vpop.f32.mrf.mxu1 }
 0x1e4   : > { %v662_v26 = vpop.f32.mrf.mxu0 }
 0x1e5   : > { %v692_v37 = vadd.f32 %v691_v2, %v662_v26 }
 0x1e7   : > { %v706_v38 = vadd.f32 %v1195_v50, %v692_v37 }
 0x1e9   : > { %v710_v39 = vmax.f32 %v706_v38, 0.0 }
 0x1eb   : > { %714 = vst [vmem:[%s511_s11] sm:$0xff] %v710_v39  ;;  %v668_v44 = vpop.f32.mrf.mxu2 }
 0x1ec   : > { %v698_v45 = vadd.f32 %v697_v31, %v668_v44 }
 0x1ed   : > { %v665_v52 = vpop.f32.mrf.mxu0 }
 0x1ee   : > { %v708_v53 = vadd.f32 %v1195_v50, %v698_v45  ;;  %v695_v33 = vadd.f32 %v694_v34, %v665_v52 }
 0x1f0   : > { %v712_v54 = vmax.f32 %v708_v53, 0.0  ;;  %v707_v55 = vadd.f32 %v1195_v50, %v695_v33 }
 0x1f2   : > { %716 = vst [vmem:[%s511_s11 + $0x10] sm:$0xff] %v712_v54  ;;  %v711_v57 = vmax.f32 %v707_v55, 0.0 }
 0x1f3   : > { %v671_v60 = vpop.f32.mrf.mxu2 }
 0x1f4   : > { %715 = vst [vmem:[%s511_s11 + $0x8] sm:$0xff] %v711_v57  ;;  %v701_v51 = vadd.f32 %v700_v59, %v671_v60 }
 0x1f6   : > { %v709_v62 = vadd.f32 %v1195_v50, %v701_v51 }
 0x1f8   : > { %v713_v63 = vmax.f32 %v709_v62, 0.0 }
 0x1fa   : > { %717 = vst [vmem:[%s511_s11 + $0x18] sm:$0xff] %v713_v63 }
 0x1fb PF: > { %s1843_s30 = sld [smem:[#allocation13_spill]]  ;;  %s1846_s27 = smov %s1354_s28 }
 0x1fc   : > { %s1844_s15 = sld [smem:[#allocation12_spill]] }
 0x1fd   : > { %s1845_s29 = sld [smem:[#allocation14_spill]] }
 0x201   : > { %p25_p7 = scmp.ge.s32.totalorder %s1843_s30, 5  }
 0x202   : > { %s1847_s28 = smov %s1844_s15 }
 0x203   :  { %27 = sbr.rel (!%p25_p7) target bundleno = 10 (0xa), region = 146 }
 0x208   :  { %902 = vsyncpa [#allocation3], 1 }
 0x209   :  { %904 = vsyncpa [#allocation3 + $0x1], 1 }
 0x20a   :  { %905 = vsyncpa [#allocation5], 1 }
 0x20b   :  { %907 = vsyncpa [#allocation5 + $0x1], 1 }
 0x20c   :  { %908 = vsyncpa [#allocation8], 1 }
 0x20d   :  { %910 = vsyncpa [#allocation8 + $0x1], 1 }

// kernel: multi_view_gcn_forward.7
= control target key start
LH: loop header
LB: loop body
LE: loop exit
PB: predicated region body
PF: predicated region fallthrough
CT: control target
= control target key end

     0   :  { %17 = vsyncpa [#allocation3], 0  ;;  %s3661_s0 = inlined_call_operand.vmem [shape: f32[3,2,16,128], index: 0, kind: input, shape index: {}]   ;;  %s3662_s1 = inlined_call_operand.vmem [shape: f32[3,2,16,1], index: 1, kind: input, shape index: {}]   ;;  %s3663_s2 = inlined_call_operand.vmem [shape: f32[3,2,16,1], index: 2, kind: input, shape index: {}]   ;;  %s3664_s3 = inlined_call_operand.vmem [shape: f32[3,2,256], index: 3, kind: input, shape index: {}]   ;;  %s3665_s4 = inlined_call_operand.vmem [shape: f32[768,512], index: 4, kind: input, shape index: {}]   ;;  %s3666_s5 = inlined_call_operand.vmem [shape: f32[1,512], index: 5, kind: input, shape index: {}]   ;;  %s3667_s6 = inlined_call_operand.hbm [shape: f32[512,128], index: 6, kind: input, shape index: {}]   ;;  %s3668_s7 = inlined_call_operand.vmem [shape: f32[1,128], index: 7, kind: input, shape index: {}]   ;;  %s3669_s8 = inlined_call_operand.vmem [shape: f32[128,64], index: 8, kind: input, shape index: {}]   ;;  %s3670_s9 = inlined_call_operand.vmem [shape: f32[1,64], index: 9, kind: input, shape index: {}]   ;;  %s3671_s10 = inlined_call_operand.vmem [shape: f32[64,4], index: 10, kind: input, shape index: {}]   ;;  %s3672_s11 = inlined_call_operand.vmem [shape: f32[1,4], index: 11, kind: input, shape index: {}]   ;;  %s3673_s12 = inlined_call_operand.hbm [shape: f32[2,4], index: 12, kind: output, shape index: {}]  }
   0x1   :  { %18 = vsyncpa [#allocation4], 0  ;;  %s35_s23 = sshll.u32 %s3667_s6, 4  ;;  %s1843_s24 = smov [#allocation2]   ;;  %s36_s23 = int_to_ptr.hbm [resolvable:$true] %s35_s23 }
   0x2   :  { %s37_s25 = sshll.u32 %s1843_s24, 4  ;;  %s1844_s26 = smov 128   ;;  %s38_s25 = int_to_ptr.vmem [resolvable:$true] %s37_s25 }
   0x3   :  { %s1845_s27 = smov 8  }
   0x4   :  { %43 = dma.hbm_to_vmem [thread:$0]  %s36_s23, 8192, %s38_s25, [#allocation3], %s1844_s26, %s1844_s26, %s1845_s27  }
   0x5   :  { %1839 = dma.done.wait [#allocation3], 8192  }
   0x6   :  { %1840 = vsyncadd [#allocation3], 4294959104  ;;  %v1846_v0 = vmov 0   ;;  %vm95_vm0 = vcmask 7168   ;;  %v64_v1 = vld [vmem:[%s3662_s1 + $0x10] sm:$0xff]  ;;  %v62_v2 = vld [vmem:[%s3662_s1] sm:$0xff] }
   0x7   :  { %1774 = vset.pattern.permute.xlu2 %v1846_v0  ;;  %1773 = vset.pattern.permute.xlu1 %v1846_v0  ;;  %v91_v3 = vld [vmem:[%s3663_s2] sm:$0xff]  ;;  %v94_v5 = vld [vmem:[%s3663_s2 + $0x18] sm:$0xff]  ;;  %v93_v8 = vld [vmem:[%s3663_s2 + $0x10] sm:$0xff] }
   0x8   :  { %1775 = vset.pattern.permute.xlu0 %v1846_v0  ;;  %78 = vperm.xlu2 %1774, %v64_v1   ;;  %vm114_vm1 = vcmp.gt.f32.partialorder %v91_v3, 0.0  ;;  %v96_v4 = vsel %vm95_vm0, %v91_v3, 0.0  ;;  %v106_v7 = vsel %vm95_vm0, %v94_v5, 0.0  ;;  %v92_v9 = vld [vmem:[%s3663_s2 + $0x8] sm:$0xff]  ;;  %v1943_v10 = vld [vmem:[%s3663_s2 + $0x30] sm:$0xff]  ;;  %v105_v11 = vsel %vm95_vm0, %v93_v8, 0.0 }
   0x9   :  { %68 = vperm.xlu1 %1773, %v62_v2   ;;  %v118_v6 = vsel %vm114_vm1, 1, %v1846_v0  ;;  %v97_v12 = vsel %vm95_vm0, %v92_v9, 0.0  ;;  %v1950_v13 = vld [vmem:[%s3663_s2 + $0x38] sm:$0xff]  ;;  %v1955_v14 = vld [vmem:[%s3663_s2 + $0x20] sm:$0xff]  ;;  %v107_v15 = vadd.f32 %v106_v7, %v105_v11  ;;  %v1960_v17 = vld [vmem:[%s3663_s2 + $0x28] sm:$0xff]  ;;  %vm117_vm2 = vcmp.gt.f32.partialorder %v94_v5, 0.0 }
   0xa   :  { %123 = vperm.xlu0 %1775, %v118_v6   ;;  %v98_v16 = vadd.f32 %v97_v12, %v96_v4  ;;  %v65_v18 = vld [vmem:[%s3662_s1 + $0x18] sm:$0xff]  ;;  %v288_v19 = vsel %vm95_vm0, %v1943_v10, 0.0  ;;  %v289_v20 = vsel %vm95_vm0, %v1950_v13, 0.0  ;;  %v279_v21 = vsel %vm95_vm0, %v1955_v14, 0.0  ;;  %v63_v22 = vld [vmem:[%s3662_s1 + $0x8] sm:$0xff]  ;;  %v1980_v37 = vld [vmem:[%s3663_s2 + $0x40] sm:$0xff] }
   0xb   :  { %v108_v23 = vrot.slane %v107_v15, 4  ;;  %v290_v25 = vadd.f32 %v289_v20, %v288_v19  ;;  %v280_v26 = vsel %vm95_vm0, %v1960_v17, 0.0  ;;  %v121_v28 = vsel %vm117_vm2, 1, %v1846_v0  ;;  %v1985_v38 = vld [vmem:[%s3663_s2 + $0x48] sm:$0xff]  ;;  %v1999_v62 = vld [vmem:[%s3663_s2 + $0x50] sm:$0xff]  ;;  %v2004_v63 = vld [vmem:[%s3663_s2 + $0x58] sm:$0xff] }
   0xc   :  { %v99_v24 = vrot.slane %v98_v16, 4  ;;  %v281_v27 = vadd.f32 %v280_v26, %v279_v21  ;;  %vm116_vm3 = vcmp.gt.f32.partialorder %v93_v8, 0.0  ;;  %vm115_vm4 = vcmp.gt.f32.partialorder %v92_v9, 0.0  ;;  %v1747_v7 = vld [vmem:[%s3662_s1 + $0x30] sm:$0xff]  ;;  %v1746_v8 = vld [vmem:[%s3662_s1 + $0x28] sm:$0xff]  ;;  %v1745_v11 = vld [vmem:[%s3662_s1 + $0x20] sm:$0xff] }
   0xd   :  { %v109_v29 = vadd.f32 %v108_v23, %v107_v15  ;;  %v291_v31 = vrot.slane %v290_v25, 4  ;;  %v120_v42 = vsel %vm116_vm3, 1, %v1846_v0  ;;  %v119_v43 = vsel %vm115_vm4, 1, %v1846_v0  ;;  %v1748_v21 = vld [vmem:[%s3662_s1 + $0x38] sm:$0xff] }
   0xe   :  { %v100_v30 = vadd.f32 %v99_v24, %v98_v16  ;;  %v282_v32 = vrot.slane %v281_v27, 4  ;;  %v460_v47 = vsel %vm95_vm0, %v1980_v37, 0.0  ;;  %v461_v48 = vsel %vm95_vm0, %v1985_v38, 0.0 }
   0xf   :  { %v110_v33 = vrot.slane %v109_v29, 2  ;;  %v292_v35 = vadd.f32 %v291_v31, %v290_v25  ;;  %v462_v54 = vadd.f32 %v461_v48, %v460_v47  ;;  %v469_v3 = vsel %vm95_vm0, %v1999_v62, 0.0  ;;  %v1758_v31 = vld [vmem:[%s3662_s1 + $0x40] sm:$0xff] }
  0x10   :  { %83 = vperm.xlu2 %1774, %v65_v18   ;;  %v101_v34 = vrot.slane %v100_v30, 2  ;;  %v283_v36 = vadd.f32 %v282_v32, %v281_v27  ;;  %v470_v4 = vsel %vm95_vm0, %v2004_v63, 0.0  ;;  %vm298_vm5 = vcmp.gt.f32.partialorder %v1960_v17, 0.0  ;;  %v666_v47 = vld [vmem:[%s3665_s4 + $0x180] sm:$0xff] }
  0x11   :  { %73 = vperm.xlu1 %1773, %v63_v22   ;;  %v293_v40 = vrot.slane %v292_v35, 2  ;;  %v111_v41 = vadd.f32 %v110_v33, %v109_v29  ;;  %v463_v61 = vrot.slane %v462_v54, 4  ;;  %v471_v5 = vadd.f32 %v470_v4, %v469_v3  ;;  %v730_v48 = vld [vmem:[%s3665_s4 + $0x380] sm:$0xff] }
  0x12   :  { %132 = vperm.xlu0 %1775, %v121_v28   ;;  %v102_v39 = vadd.f32 %v101_v34, %v100_v30  ;;  %v284_v44 = vrot.slane %v283_v36, 2  ;;  %vm297_vm6 = vcmp.gt.f32.partialorder %v1955_v14, 0.0  ;;  %v302_v18 = vsel %vm298_vm5, 1, %v1846_v0  ;;  %v1759_v30 = vld [vmem:[%s3662_s1 + $0x48] sm:$0xff]  ;;  %v1761_v34 = vld [vmem:[%s3662_s1 + $0x58] sm:$0xff]  ;;  %v638_v4 = vld [vmem:[%s3665_s4 + $0xa0] sm:$0xff] }
  0x13   :  { %v294_v46 = vadd.f32 %v293_v40, %v292_v35  ;;  %v112_v52 = vrot.slane %v111_v41, 1  ;;  %v464_v2 = vadd.f32 %v463_v61, %v462_v54  ;;  %v472_v9 = vrot.slane %v471_v5, 4  ;;  %v710_v61 = vld [vmem:[%s3665_s4 + $0x2e0] sm:$0xff] }
  0x14   :  { %v103_v45 = vrot.slane %v102_v39, 1  ;;  %v285_v49 = vadd.f32 %v284_v44, %v283_v36  ;;  %v301_v19 = vsel %vm297_vm6, 1, %v1846_v0  ;;  %vm300_vm7 = vcmp.gt.f32.partialorder %v1950_v13, 0.0  ;;  %v738_v44 = vld [vmem:[%s3665_s4 + $0x3c0] sm:$0xff] }
  0x15   :  { %v295_v51 = vrot.slane %v294_v46, 1  ;;  %v113_v58 = vadd.f32 %v112_v52, %v111_v41  ;;  %v465_v6 = vrot.slane %v464_v2, 2  ;;  %v473_v15 = vadd.f32 %v472_v9, %v471_v5  ;;  %v678_v41 = vld [vmem:[%s3665_s4 + $0x1e0] sm:$0xff] }
  0x16   :  { %v104_v50 = vadd.f32 %v103_v45, %v102_v39  ;;  %v286_v53 = vrot.slane %v285_v49, 1  ;;  %v304_v23 = vsel %vm300_vm7, 1, %v1846_v0  ;;  %vm299_vm8 = vcmp.gt.f32.partialorder %v1943_v10, 0.0  ;;  %v1760_v10 = vld [vmem:[%s3662_s1 + $0x50] sm:$0xff]  ;;  %1012 = vmatpush.msra.mxu0 %v678_v41  ;;  %v670_v45 = vld [vmem:[%s3665_s4 + $0x1a0] sm:$0xff]  ;;  %s1847_s1 = smov [#allocation5]  }
  0x17   :  { %v296_v56 = vadd.f32 %v295_v51, %v294_v46  ;;  %v185_v1 = vmax.f32 %v113_v58, 1.0  ;;  %v466_v12 = vadd.f32 %v465_v6, %v464_v2  ;;  %v474_v20 = vrot.slane %v473_v15, 2  ;;  %v734_v46 = vld [vmem:[%s3665_s4 + $0x3a0] sm:$0xff]  ;;  %s1729_s18 = sshll.u32 %s1847_s1, 4  ;;  %s1730_s18 = int_to_ptr.vmem [resolvable:$true] %s1729_s18 }
  0x18   :  { %129 = vperm.xlu2 %1774, %v120_v42   ;;  %v184_v55 = vmax.f32 %v104_v50, 1.0  ;;  %v1993_v57 = vadd.f32 %v286_v53, %v285_v49  ;;  %v303_v25 = vsel %vm299_vm8, 1, %v1846_v0  ;;  %vm157_vm9 = vcmp.gt.f32.partialorder %v113_v58, 0.0  ;;  %v742_v42 = vld [vmem:[%s3665_s4 + $0x3e0] sm:$0xff] }
  0x19   :  { %126 = vperm.xlu1 %1773, %v119_v43   ;;  %v368_v59 = vmax.f32 %v296_v56, 1.0  ;;  %v467_v16 = vrot.slane %v466_v12, 1  ;;  %v475_v17 = vadd.f32 %v474_v20, %v473_v15  ;;  %vm156_vm10 = vcmp.gt.f32.partialorder %v104_v50, 0.0  ;;  %1032 = vmatpush.msra.mxu1 %v742_v42  ;;  %v662_v49 = vld [vmem:[%s3665_s4 + $0x160] sm:$0xff] }
  0x1a   :  { %188 = vperm.xlu0 %1775, %v184_v55   ;;  %v367_v60 = vmax.f32 %v1993_v57, 1.0  ;;  %v159_v27 = vsel %vm157_vm9, 1, %v1846_v0  ;;  %v158_v13 = vsel %vm156_vm10, 1, %v1846_v0  ;;  %vm340_vm11 = vcmp.gt.f32.partialorder %v296_v56, 0.0  ;;  %v726_v50 = vld [vmem:[%s3665_s4 + $0x360] sm:$0xff] }
  0x1b   :  { %v468_v22 = vadd.f32 %v467_v16, %v466_v12  ;;  %v476_v24 = vrot.slane %v475_v17, 1  ;;  %v342_v29 = vsel %vm340_vm11, 1, %v1846_v0  ;;  %vm479_vm12 = vcmp.gt.f32.partialorder %v1985_v38, 0.0  ;;  %1033 = vmatpush.msra.mxu1 %v738_v44  ;;  %v658_v51 = vld [vmem:[%s3665_s4 + $0x140] sm:$0xff]  ;;  %v61_v12 = vld [vmem:[%s3661_s0 + $0x18] sm:$0xff] }
  0x1c   :  { %vm478_vm13 = vcmp.gt.f32.partialorder %v1980_v37, 0.0  ;;  %v483_v32 = vsel %vm479_vm12, 1, %v1846_v0  ;;  %vm339_vm14 = vcmp.gt.f32.partialorder %v1993_v57, 0.0  ;;  %vm481_vm15 = vcmp.gt.f32.partialorder %v2004_v63, 0.0  ;;  %v722_v52 = vld [vmem:[%s3665_s4 + $0x340] sm:$0xff] }
  0x1d   :  { %v548_v14 = vmax.f32 %v468_v22, 1.0  ;;  %v477_v26 = vadd.f32 %v476_v24, %v475_v17  ;;  %v482_v33 = vsel %vm478_vm13, 1, %v1846_v0  ;;  %v341_v35 = vsel %vm339_vm14, 1, %v1846_v0  ;;  %1034 = vmatpush.msra.mxu1 %v734_v46  ;;  %v654_v55 = vld [vmem:[%s3665_s4 + $0x120] sm:$0xff] }
  0x1e   :  { %v485_v36 = vsel %vm481_vm15, 1, %v1846_v0  ;;  %vm480_vm0 = vcmp.gt.f32.partialorder %v1999_v62, 0.0  ;;  %vm520_vm2 = vcmp.gt.f32.partialorder %v468_v22, 0.0  ;;  %v718_v56 = vld [vmem:[%s3665_s4 + $0x320] sm:$0xff]  ;;  %vm228_vm15 = vcmask 1041409  }
  0x1f   :  { %v549_v28 = vmax.f32 %v477_v26, 1.0  ;;  %v484_v37 = vsel %vm480_vm0, 1, %v1846_v0  ;;  %vm521_vm1 = vcmp.gt.f32.partialorder %v477_v26, 0.0  ;;  %v522_v39 = vsel %vm520_vm2, 1, %v1846_v0  ;;  %1035 = vmatpush.msra.mxu1 %v730_v48  ;;  %v650_v58 = vld [vmem:[%s3665_s4 + $0x100] sm:$0xff] }
  0x20   :  { %376 = vperm.xlu2 %1774, %v368_v59   ;;  %v523_v38 = vsel %vm521_vm1, 1, %v1846_v0  ;;  %v674_v0 = vld [vmem:[%s3665_s4 + $0x1c0] sm:$0xff]  ;;  %vm234_vm2 = vcmask 1041408  }
  0x21   :  { %371 = vperm.xlu1 %1773, %v367_v60   ;;  %1013 = vmatpush.msra.mxu0 %v674_v0  ;;  %v714_v59 = vld [vmem:[%s3665_s4 + $0x300] sm:$0xff] }
  0x22   :  { %193 = vperm.xlu0 %1775, %v185_v1   ;;  %1036 = vmatpush.msra.mxu1 %v726_v50  ;;  %v646_v60 = vld [vmem:[%s3665_s4 + $0xe0] sm:$0xff] }
  0x23   :  { %1014 = vmatpush.msra.mxu0 %v670_v45  ;;  %v642_v63 = vld [vmem:[%s3665_s4 + $0xc0] sm:$0xff] }
  0x24   :  { %1037 = vmatpush.msra.mxu1 %v722_v52  ;;  %v706_v1 = vld [vmem:[%s3665_s4 + $0x2c0] sm:$0xff] }
  0x25   :  { %1015 = vmatpush.msra.mxu0 %v666_v47  ;;  %v702_v5 = vld [vmem:[%s3665_s4 + $0x2a0] sm:$0xff] }
  0x26   :  { %1038 = vmatpush.msra.mxu1 %v718_v56  ;;  %v634_v6 = vld [vmem:[%s3665_s4 + $0x80] sm:$0xff] }
  0x27   :  { %1016 = vmatpush.msra.mxu0 %v662_v49  ;;  %v806_v9 = vld [vmem:[%s3665_s4 + $0x5e0] sm:$0xff] }
  0x28   :  { %260 = vperm.xlu2 %1774, %v1747_v7   ;;  %1039 = vmatpush.msra.mxu1 %v714_v59  ;;  %v698_v7 = vld [vmem:[%s3665_s4 + $0x280] sm:$0xff] }
  0x29   :  { %255 = vperm.xlu1 %1773, %v1746_v8   ;;  %1017 = vmatpush.msra.mxu0 %v658_v51  ;;  %v60_v8 = vld [vmem:[%s3661_s0 + $0x10] sm:$0xff]  ;;  %v630_v15 = vld [vmem:[%s3665_s4 + $0x60] sm:$0xff] }
  0x2a   :  { %250 = vperm.xlu0 %1775, %v1745_v11   ;;  %1040 = vmatpush.msra.mxu1 %v710_v61  ;;  %v870_v11 = vld [vmem:[%s3665_s4 + $0x7e0] sm:$0xff] }
  0x2b   :  { %1018 = vmatpush.msra.mxu0 %v654_v55  ;;  %1052 = vmatpush.msra.mxu2 %v806_v9  ;;  %v694_v16 = vld [vmem:[%s3665_s4 + $0x260] sm:$0xff] }
  0x2c   :  { %1041 = vmatpush.msra.mxu1 %v706_v1  ;;  %1072 = vmatpush.msra.mxu3 %v870_v11  ;;  %v866_v20 = vld [vmem:[%s3665_s4 + $0x7c0] sm:$0xff] }
  0x2d   :  { %1019 = vmatpush.msra.mxu0 %v650_v58  ;;  %v690_v22 = vld [vmem:[%s3665_s4 + $0x240] sm:$0xff] }
  0x2e   :  { %1042 = vmatpush.msra.mxu1 %v702_v5  ;;  %1073 = vmatpush.msra.mxu3 %v866_v20  ;;  %v862_v24 = vld [vmem:[%s3665_s4 + $0x7a0] sm:$0xff] }
  0x2f   :  { %1020 = vmatpush.msra.mxu0 %v646_v60  ;;  %v786_v41 = vld [vmem:[%s3665_s4 + $0x540] sm:$0xff] }
  0x30   :  { %309 = vperm.xlu2 %1774, %v302_v18   ;;  %1043 = vmatpush.msra.mxu1 %v698_v7  ;;  %v850_v42 = vld [vmem:[%s3665_s4 + $0x740] sm:$0xff] }
  0x31   :  { %306 = vperm.xlu1 %1773, %v301_v19   ;;  %1021 = vmatpush.msra.mxu0 %v642_v63  ;;  %v802_v19 = vld [vmem:[%s3665_s4 + $0x5c0] sm:$0xff] }
  0x32   :  { %265 = vperm.xlu0 %1775, %v1748_v21   ;;  %1044 = vmatpush.msra.mxu1 %v694_v16  ;;  %v626_v21 = vld [vmem:[%s3665_s4 + $0x40] sm:$0xff] }
  0x33   :  { %1022 = vmatpush.msra.mxu0 %v638_v4  ;;  %1053 = vmatpush.msra.mxu2 %v802_v19  ;;  %v994_v44 = vld [vmem:[%s3665_s4 + $0xbc0] sm:$0xff] }
  0x34   :  { %1045 = vmatpush.msra.mxu1 %v690_v22  ;;  %1074 = vmatpush.msra.mxu3 %v862_v24  ;;  %v782_v46 = vld [vmem:[%s3665_s4 + $0x520] sm:$0xff] }
  0x35   :  { %1023 = vmatpush.msra.mxu0 %v634_v6  ;;  %v846_v47 = vld [vmem:[%s3665_s4 + $0x720] sm:$0xff] }
  0x36   :  { %v926_v48 = vld [vmem:[%s3665_s4 + $0x9a0] sm:$0xff] }
  0x37   :  { %1024 = vmatpush.msra.mxu0 %v630_v15  ;;  %v990_v50 = vld [vmem:[%s3665_s4 + $0xba0] sm:$0xff] }
  0x38   :  { %552 = vperm.xlu2 %1774, %v548_v14   ;;  %v778_v55 = vld [vmem:[%s3665_s4 + $0x500] sm:$0xff] }
  0x39   :  { %315 = vperm.xlu1 %1773, %v304_v23   ;;  %1025 = vmatpush.msra.mxu0 %v626_v21  ;;  %v798_v23 = vld [vmem:[%s3665_s4 + $0x5a0] sm:$0xff] }
  0x3a   :  { %312 = vperm.xlu0 %1775, %v303_v25   ;;  %v58_v25 = vld [vmem:[%s3661_s0] sm:$0xff]  ;;  %1054 = vmatpush.msra.mxu2 %v798_v23 }
  0x3b   :  { %v922_v59 = vld [vmem:[%s3665_s4 + $0x980] sm:$0xff] }
  0x3c   :  { %v774_v63 = vld [vmem:[%s3665_s4 + $0x4e0] sm:$0xff] }
  0x3d   :  { %v838_v1 = vld [vmem:[%s3665_s4 + $0x6e0] sm:$0xff] }
  0x3e   :  { %v918_v5 = vld [vmem:[%s3665_s4 + $0x960] sm:$0xff] }
  0x3f   :  { %v982_v6 = vld [vmem:[%s3665_s4 + $0xb60] sm:$0xff] }
  0x40   :  { %164 = vperm.xlu2 %1774, %v159_v27   ;;  %v622_v27 = vld [vmem:[%s3665_s4 + $0x20] sm:$0xff] }
  0x41   :  { %161 = vperm.xlu1 %1773, %v158_v13   ;;  %v686_v13 = vld [vmem:[%s3665_s4 + $0x220] sm:$0xff]  ;;  %1026 = vmatpush.msra.mxu0 %v622_v27 }
  0x42   :  { %557 = vperm.xlu0 %1775, %v549_v28   ;;  %1046 = vmatpush.msra.mxu1 %v686_v13  ;;  %v834_v11 = vld [vmem:[%s3665_s4 + $0x6c0] sm:$0xff] }
  0x43   :  { %v978_v16 = vld [vmem:[%s3665_s4 + $0xb40] sm:$0xff] }
  0x44   :  { %v766_v20 = vld [vmem:[%s3665_s4 + $0x4a0] sm:$0xff] }
  0x45   :  { %v830_v21 = vld [vmem:[%s3665_s4 + $0x6a0] sm:$0xff] }
  0x46   :  { %v910_v23 = vld [vmem:[%s3665_s4 + $0x920] sm:$0xff] }
  0x47   :  { %v974_v24 = vld [vmem:[%s3665_s4 + $0xb20] sm:$0xff] }
  0x48   :  { %441 = vperm.xlu2 %1774, %v1760_v10   ;;  %v794_v10 = vld [vmem:[%s3665_s4 + $0x580] sm:$0xff] }
  0x49   :  { %436 = vperm.xlu1 %1773, %v1759_v30   ;;  %v858_v30 = vld [vmem:[%s3665_s4 + $0x780] sm:$0xff]  ;;  %1055 = vmatpush.msra.mxu2 %v794_v10 }
  0x4a   :  { %431 = vperm.xlu0 %1775, %v1758_v31   ;;  %1075 = vmatpush.msra.mxu3 %v858_v30  ;;  %v618_v31 = vld [vmem:[%s3665_s4] sm:$0xff] }
  0x4b   :  { %1027 = vmatpush.msra.mxu0 %v618_v31  ;;  %v762_v13 = vld [vmem:[%s3665_s4 + $0x480] sm:$0xff] }
  0x4c   :  { %v826_v30 = vld [vmem:[%s3665_s4 + $0x680] sm:$0xff] }
  0x4d   :  { %v906_v31 = vld [vmem:[%s3665_s4 + $0x900] sm:$0xff] }
  0x50   :  { %490 = vperm.xlu2 %1774, %v483_v32   ;;  %v682_v32 = vld [vmem:[%s3665_s4 + $0x200] sm:$0xff] }
  0x51   :  { %487 = vperm.xlu1 %1773, %v482_v33   ;;  %1047 = vmatpush.msra.mxu1 %v682_v32  ;;  %v970_v32 = vld [vmem:[%s3665_s4 + $0xb00] sm:$0xff] }
  0x52   :  { %446 = vperm.xlu0 %1775, %v1761_v34   ;;  %v790_v34 = vld [vmem:[%s3665_s4 + $0x560] sm:$0xff] }
  0x53   :  { %1056 = vmatpush.msra.mxu2 %v790_v34  ;;  %v758_v34 = vld [vmem:[%s3665_s4 + $0x460] sm:$0xff] }
  0x55   :  { %1057 = vmatpush.msra.mxu2 %v786_v41 }
  0x57   :  { %1058 = vmatpush.msra.mxu2 %v782_v46  ;;  %v898_v46 = vld [vmem:[%s3665_s4 + $0x8c0] sm:$0xff] }
  0x58   :  { %344 = vperm.xlu2 %1774, %v341_v35   ;;  %v854_v35 = vld [vmem:[%s3665_s4 + $0x760] sm:$0xff] }
  0x59   :  { %496 = vperm.xlu1 %1773, %v485_v36   ;;  %v934_v36 = vld [vmem:[%s3665_s4 + $0x9e0] sm:$0xff]  ;;  %1076 = vmatpush.msra.mxu3 %v854_v35 }
  0x5a   :  { %493 = vperm.xlu0 %1775, %v484_v37   ;;  %1092 = vmatpush.msrb.mxu0 %v934_v36  ;;  %v822_v35 = vld [vmem:[%s3665_s4 + $0x660] sm:$0xff] }
  0x5b   :  { %1077 = vmatpush.msra.mxu3 %v850_v42  ;;  %1059 = vmatpush.msra.mxu2 %v778_v55  ;;  %v750_v55 = vld [vmem:[%s3665_s4 + $0x420] sm:$0xff] }
  0x5d   :  { %1078 = vmatpush.msra.mxu3 %v846_v47  ;;  %1060 = vmatpush.msra.mxu2 %v774_v63  ;;  %v958_v63 = vld [vmem:[%s3665_s4 + $0xaa0] sm:$0xff] }
  0x60   :  { %528 = vperm.xlu2 %1774, %v523_v38  }
  0x61   :  { %525 = vperm.xlu1 %1773, %v522_v39   ;;  %v998_v39 = vld [vmem:[%s3665_s4 + $0xbe0] sm:$0xff] }
  0x62   :  { %347 = vperm.xlu0 %1775, %v342_v29   ;;  %v2057_v40 = vpop.permute.xlu2 %78  ;;  %v59_v29 = vld [vmem:[%s3661_s0 + $0x8] sm:$0xff]  ;;  %1112 = vmatpush.msrb.mxu1 %v998_v39  ;;  %v966_v39 = vld [vmem:[%s3665_s4 + $0xae0] sm:$0xff] }
  0x63   :  { %v88_v17 = vmul.f32 %v2057_v40, %v60_v8 }
  0x64   :  { %1113 = vmatpush.msrb.mxu1 %v994_v44  ;;  %v754_v44 = vld [vmem:[%s3665_s4 + $0x440] sm:$0xff] }
  0x66   :  { %1114 = vmatpush.msrb.mxu1 %v990_v50  ;;  %v962_v50 = vld [vmem:[%s3665_s4 + $0xac0] sm:$0xff] }
  0x6a   :  { %v2065_v43 = vpop.permute.xlu2 %83 }
  0x6b   :  { %v89_v14 = vmul.f32 %v2065_v43, %v61_v12  ;;  %v930_v43 = vld [vmem:[%s3665_s4 + $0x9c0] sm:$0xff] }
  0x6c   :  { %1093 = vmatpush.msrb.mxu0 %v930_v43  ;;  %v914_v12 = vld [vmem:[%s3665_s4 + $0x940] sm:$0xff] }
  0x6d   :  { %v177_v33 = vadd.f32 %v89_v14, %v88_v17 }
  0x6e   :  { %1094 = vmatpush.msrb.mxu0 %v926_v48 }
  0x6f   :  { %v178_v45 = vrot.slane %v177_v33, 4 }
  0x70   :  { %1095 = vmatpush.msrb.mxu0 %v922_v59  ;;  %v727_v59 = vld [vmem:[%s3665_s4 + $0x368] sm:$0xff] }
  0x71   :  { %v179_v60 = vadd.f32 %v178_v45, %v177_v33  ;;  %v818_v45 = vld [vmem:[%s3665_s4 + $0x640] sm:$0xff] }
  0x72   :  { %v2097_v53 = vpop.permute.xlu2 %129  ;;  %1096 = vmatpush.msrb.mxu0 %v918_v5  ;;  %v810_v5 = vld [vmem:[%s3665_s4 + $0x600] sm:$0xff] }
  0x73   :  { %vm136_vm3 = vcmp.eq.s32.totalorder %v2097_v53, 1  ;;  %v842_v53 = vld [vmem:[%s3665_s4 + $0x700] sm:$0xff]  ;;  %v180_v19 = vrot.slane %v179_v60, 2 }
  0x74   :  { %v140_v52 = vsel %vm136_vm3, %v88_v17, -1e+30  ;;  %1079 = vmatpush.msra.mxu3 %v842_v53  ;;  %1097 = vmatpush.msrb.mxu0 %v914_v12  ;;  %v679_v12 = vld [vmem:[%s3665_s4 + $0x1e8] sm:$0xff] }
  0x75   :  { %v2343_v33 = vadd.f32 %v180_v19, %v179_v60  ;;  %v950_v19 = vld [vmem:[%s3665_s4 + $0xa60] sm:$0xff] }
  0x76   :  { %1080 = vmatpush.msra.mxu3 %v838_v1  ;;  %1098 = vmatpush.msrb.mxu0 %v910_v23 }
  0x78   :  { %1081 = vmatpush.msra.mxu3 %v834_v11  ;;  %1099 = vmatpush.msrb.mxu0 %v906_v31  ;;  %v954_v11 = vld [vmem:[%s3665_s4 + $0xa80] sm:$0xff] }
  0x7a   :  { %v2129_v2 = vpop.permute.xlu2 %376  ;;  %1082 = vmatpush.msra.mxu3 %v830_v21  ;;  %v675_v21 = vld [vmem:[%s3665_s4 + $0x1c8] sm:$0xff] }
  0x7b   :  { %v2099_v54 = vpop.permute.xlu1 %68 }
  0x7c   :  { %v2107_v57 = vpop.permute.xlu0 %123  ;;  %v86_v37 = vmul.f32 %v2099_v54, %v58_v25  ;;  %1083 = vmatpush.msra.mxu3 %v826_v30 }
  0x7d   :  { %vm134_vm6 = vcmp.eq.s32.totalorder %v2107_v57, 1  ;;  %v770_v57 = vld [vmem:[%s3665_s4 + $0x4c0] sm:$0xff] }
  0x7e   :  { %1061 = vmatpush.msra.mxu2 %v770_v57  ;;  %1084 = vmatpush.msra.mxu3 %v822_v35  ;;  %v735_v35 = vld [vmem:[%s3665_s4 + $0x3a8] sm:$0xff] }
  0x80   :  { %1062 = vmatpush.msra.mxu2 %v766_v20  ;;  %1085 = vmatpush.msra.mxu3 %v818_v45  ;;  %v667_v45 = vld [vmem:[%s3665_s4 + $0x188] sm:$0xff] }
  0x82   :  { %v2196_v28 = vpop.permute.xlu2 %260  ;;  %1063 = vmatpush.msra.mxu2 %v762_v13  ;;  %v882_v13 = vld [vmem:[%s3665_s4 + $0x840] sm:$0xff] }
  0x83   :  { %v2121_v62 = vpop.permute.xlu1 %73 }
  0x84   :  { %v2131_v3 = vpop.permute.xlu0 %132  ;;  %v87_v38 = vmul.f32 %v2121_v62, %v59_v29  ;;  %v986_v62 = vld [vmem:[%s3665_s4 + $0xb80] sm:$0xff]  ;;  %1064 = vmatpush.msra.mxu2 %v758_v34  ;;  %v671_v34 = vld [vmem:[%s3665_s4 + $0x1a8] sm:$0xff] }
  0x85   :  { %vm137_vm4 = vcmp.eq.s32.totalorder %v2131_v3, 1  ;;  %v138_v3 = vsel %vm134_vm6, %v86_v37, -1e+30  ;;  %1115 = vmatpush.msrb.mxu1 %v986_v62 }
  0x86   :  { %v170_v0 = vadd.f32 %v87_v38, %v86_v37  ;;  %v141_v54 = vsel %vm137_vm4, %v89_v14, -1e+30  ;;  %1065 = vmatpush.msra.mxu2 %v754_v44 }
  0x87   :  { %v149_v7 = vmax.f32 %v140_v52, %v141_v54  ;;  %1116 = vmatpush.msrb.mxu1 %v982_v6  ;;  %v182_v52 = vrot.slane %v2343_v33, 1  ;;  %v890_v6 = vld [vmem:[%s3665_s4 + $0x880] sm:$0xff] }
  0x88   :  { %v171_v56 = vrot.slane %v170_v0, 4  ;;  %1066 = vmatpush.msra.mxu2 %v750_v55 }
  0x89   :  { %1117 = vmatpush.msrb.mxu1 %v978_v16  ;;  %v150_v25 = vrot.slane %v149_v7, 4  ;;  %v183_v30 = vadd.f32 %v182_v52, %v2343_v33  ;;  %v1744_v33 = vld [vmem:[%s3661_s0 + $0x38] sm:$0xff]  ;;  %v874_v52 = vld [vmem:[%s3665_s4 + $0x800] sm:$0xff] }
  0x8a   :  { %v2278_v61 = vpop.permute.xlu2 %309  ;;  %v172_v15 = vadd.f32 %v171_v56, %v170_v0  ;;  %v814_v56 = vld [vmem:[%s3665_s4 + $0x620] sm:$0xff] }
  0x8b   :  { %v2163_v18 = vpop.permute.xlu1 %126  ;;  %1118 = vmatpush.msrb.mxu1 %v974_v24  ;;  %v2359_v41 = vmax.f32 %v149_v7, %v150_v25  ;;  %1086 = vmatpush.msra.mxu3 %v814_v56  ;;  %v1741_v25 = vld [vmem:[%s3661_s0 + $0x20] sm:$0xff]  ;;  %vm318_vm4 = vcmp.eq.s32.totalorder %v2278_v61, 1  ;;  %v651_v61 = vld [vmem:[%s3665_s4 + $0x108] sm:$0xff] }
  0x8c   :  { %v2188_v26 = vpop.permute.xlu0 %188  ;;  %vm135_vm5 = vcmp.eq.s32.totalorder %v2163_v18, 1  ;;  %v173_v29 = vrot.slane %v172_v15, 2 }
  0x8d   :  { %1779 = vrcp.f32 %v2188_v26  ;;  %v139_v58 = vsel %vm135_vm5, %v87_v38, -1e+30  ;;  %1119 = vmatpush.msrb.mxu1 %v970_v32  ;;  %v902_v38 = vld [vmem:[%s3665_s4 + $0x8e0] sm:$0xff]  ;;  %v152_v1 = vrot.slane %v2359_v41, 2  ;;  %vm201_vm11 = vweird.f32 %v2188_v26  ;;  %1087 = vmatpush.msra.mxu3 %v810_v5  ;;  %v1742_v32 = vld [vmem:[%s3661_s0 + $0x28] sm:$0xff] }
  0x8e   :  { %v142_v8 = vmax.f32 %v138_v3, %v139_v58  ;;  %1100 = vmatpush.msrb.mxu0 %v902_v38  ;;  %v174_v47 = vadd.f32 %v173_v29, %v172_v15  ;;  %v894_v58 = vld [vmem:[%s3665_s4 + $0x8a0] sm:$0xff]  ;;  %v743_v15 = vld [vmem:[%s3665_s4 + $0x3e8] sm:$0xff] }
  0x8f   :  { %1120 = vmatpush.msrb.mxu1 %v966_v39  ;;  %v153_v24 = vmax.f32 %v2359_v41, %v152_v1  ;;  %1152 = vmatpush.msrb.mxu3 %v743_v15  ;;  %v946_v29 = vld [vmem:[%s3665_s4 + $0xa40] sm:$0xff]  ;;  %v723_v1 = vld [vmem:[%s3665_s4 + $0x348] sm:$0xff] }
  0x90   :  { %v143_v27 = vrot.slane %v142_v8, 4  ;;  %1101 = vmatpush.msrb.mxu0 %v898_v46  ;;  %v175_v7 = vrot.slane %v174_v47, 1  ;;  %v878_v38 = vld [vmem:[%s3665_s4 + $0x820] sm:$0xff]  ;;  %v731_v46 = vld [vmem:[%s3665_s4 + $0x388] sm:$0xff] }
  0x91   :  { %1121 = vmatpush.msrb.mxu1 %v962_v50  ;;  %v942_v39 = vld [vmem:[%s3665_s4 + $0xa20] sm:$0xff] }
  0x92   :  { %v2361_v42 = vmax.f32 %v142_v8, %v143_v27  ;;  %v2363_v43 = vpop.permute.xlu2 %552  ;;  %v205_v8 = vand.u32 2147483647, %v2188_v26  ;;  %1102 = vmatpush.msrb.mxu0 %v894_v58  ;;  %v176_v31 = vadd.f32 %v175_v7, %v174_v47  ;;  %v655_v7 = vld [vmem:[%s3665_s4 + $0x128] sm:$0xff] }
  0x93   :  { %v2228_v40 = vpop.permute.xlu1 %371  ;;  %v2259_v51 = vpop.eup %1779  ;;  %1122 = vmatpush.msrb.mxu1 %v958_v63  ;;  %v659_v63 = vld [vmem:[%s3665_s4 + $0x148] sm:$0xff] }
  0x94   :  { %v2254_v49 = vpop.permute.xlu0 %193  ;;  %v197_v4 = vmul.f32 %v2259_v51, %v2188_v26  ;;  %vm202_vm9 = vweird.f32 %v2259_v51  ;;  %v145_v3 = vrot.slane %v2361_v42, 2  ;;  %1103 = vmatpush.msrb.mxu0 %v890_v6  ;;  %vm206_vm14 = vcmp.eq.f32.partialorder %v205_v8, 8.507059e+37  ;;  %v719_v8 = vld [vmem:[%s3665_s4 + $0x328] sm:$0xff] }
  0x95   :  { %1781 = vrcp.f32 %v2254_v49  ;;  %vm216_vm8 = vweird.f32 %v2254_v49  ;;  %v222_v54 = vand.u32 2147483648, %v2254_v49  ;;  %v220_v60 = vand.u32 2147483647, %v2254_v49  ;;  %vm2436_vm12 = vmor %vm201_vm11, %vm202_vm9  ;;  %1123 = vmatpush.msrb.mxu1 %v954_v11 }
  0x96   :  { %v198_v22 = vsub.f32 1.0, %v197_v4  ;;  %1783 = vrcp.f32 %v2129_v2  ;;  %v207_v4 = vand.u32 2147483648, %v2188_v26  ;;  %v146_v27 = vmax.f32 %v2361_v42, %v145_v3 }
  0x97   :  { %v223_v16 = vor.u32 1.1754944e-38, %v222_v54  ;;  %vm221_vm13 = vcmp.eq.f32.partialorder %v220_v60, 8.507059e+37  ;;  %1124 = vmatpush.msrb.mxu1 %v950_v19  ;;  %v938_v54 = vld [vmem:[%s3665_s4 + $0xa00] sm:$0xff]  ;;  %1785 = vrcp.f32 %v2228_v40 }
  0x98   :  { %v199_v36 = vmul.f32 %v2259_v51, %v198_v22  ;;  %v739_v22 = vld [vmem:[%s3665_s4 + $0x3c8] sm:$0xff]  ;;  %v147_v50 = vrot.slane %v146_v27, 1  ;;  %1787 = vrcp.f32 %v2363_v43 }
  0x99   :  { %1153 = vmatpush.msrb.mxu3 %v739_v22  ;;  %1125 = vmatpush.msrb.mxu1 %v946_v29 }
  0x9a   :  { %v200_v53 = vadd.f32 %v2259_v51, %v199_v36  ;;  %v148_v5 = vmax.f32 %v146_v27, %v147_v50  ;;  %v647_v27 = vld [vmem:[%s3665_s4 + $0xe8] sm:$0xff] }
  0x9b   :  { %v2299_v9 = vpop.permute.xlu1 %255  ;;  %v2313_v18 = vpop.eup %1781  ;;  %1154 = vmatpush.msrb.mxu3 %v735_v35  ;;  %1126 = vmatpush.msrb.mxu1 %v942_v39  ;;  %v1755_v35 = vld [vmem:[%s3661_s0 + $0x48] sm:$0xff] }
  0x9c   :  { %v212_v17 = vmul.f32 %v2313_v18, %v2254_v49  ;;  %v2323_v14 = vpop.permute.xlu0 %250  ;;  %vm217_vm7 = vweird.f32 %v2313_v18  ;;  %v746_v49 = vld [vmem:[%s3665_s4 + $0x400] sm:$0xff]  ;;  %v204_v20 = vsel %vm2436_vm12, %v2259_v51, %v200_v53  ;;  %v269_v56 = vmul.f32 %v1742_v32, %v2299_v9  ;;  %v663_v53 = vld [vmem:[%s3665_s4 + $0x168] sm:$0xff] }
  0x9d   :  { %vm2398_vm10 = vmor %vm216_vm8, %vm217_vm7  ;;  %1067 = vmatpush.msra.mxu2 %v746_v49  ;;  %v268_v42 = vmul.f32 %v1741_v25, %v2323_v14  ;;  %v154_v14 = vrot.slane %v153_v24, 1  ;;  %1155 = vmatpush.msrb.mxu3 %v731_v46  ;;  %vm399_vm7 = vweird.f32 %v2129_v2 }
  0x9e   :  { %v213_v10 = vsub.f32 1.0, %v212_v17  ;;  %v208_v17 = vor.u32 1.1754944e-38, %v207_v4  ;;  %1127 = vmatpush.msrb.mxu1 %v938_v54  ;;  %v322_v26 = vsel %vm318_vm4, %v269_v56, -1e+30  ;;  %v635_v54 = vld [vmem:[%s3665_s4 + $0x88] sm:$0xff] }
  0x9f   :  { %1132 = vmatpush.msrb.mxu2 %v679_v12  ;;  %v353_v9 = vadd.f32 %v269_v56, %v268_v42  ;;  %v155_v4 = vmax.f32 %v153_v24, %v154_v14  ;;  %1156 = vmatpush.msrb.mxu3 %v727_v59  ;;  %v807_v59 = vld [vmem:[%s3665_s4 + $0x5e8] sm:$0xff] }
  0xa0   :  { %v214_v37 = vmul.f32 %v2313_v18, %v213_v10  ;;  %v2468_v10 = vpop.eup %1783  ;;  %v209_v36 = vsel %vm206_vm14, %v208_v17, %v204_v20  ;;  %v715_v20 = vld [vmem:[%s3665_s4 + $0x308] sm:$0xff]  ;;  %vm384_vm14 = vweird.f32 %v2228_v40 }
  0xa1   :  { %1133 = vmatpush.msrb.mxu2 %v675_v21  ;;  %v395_v47 = vmul.f32 %v2468_v10, %v2129_v2  ;;  %v210_v55 = vmul.f32 %v209_v36, %v176_v31  ;;  %1157 = vmatpush.msrb.mxu3 %v723_v1  ;;  %v2543_v15 = vpop.eup %1785  ;;  %v643_v31 = vld [vmem:[%s3665_s4 + $0xc8] sm:$0xff]  ;;  %vm400_vm8 = vweird.f32 %v2468_v10 }
  0xa2   :  { %v215_v48 = vadd.f32 %v2313_v18, %v214_v37  ;;  %v165_v37 = vpop.permute.xlu2 %164  ;;  %v380_v29 = vmul.f32 %v2543_v15, %v2228_v40  ;;  %vm2610_vm9 = vmor %vm399_vm7, %vm400_vm8  ;;  %v631_v1 = vld [vmem:[%s3665_s4 + $0x68] sm:$0xff]  ;;  %vm385_vm11 = vweird.f32 %v2543_v15 }
  0xa3   :  { %v2366_v0 = vpop.permute.xlu1 %306  ;;  %1134 = vmatpush.msrb.mxu2 %v671_v34  ;;  %vm167_vm1 = vcmp.eq.s32.totalorder %v165_v37, 1  ;;  %v396_v3 = vsub.f32 1.0, %v395_v47  ;;  %1158 = vmatpush.msrb.mxu3 %v719_v8  ;;  %v707_v37 = vld [vmem:[%s3665_s4 + $0x2c8] sm:$0xff] }
  0xa4   :  { %v2403_v62 = vpop.permute.xlu0 %265  ;;  %v219_v57 = vsel %vm2398_vm10, %v2313_v18, %v215_v48  ;;  %v886_v18 = vld [vmem:[%s3665_s4 + $0x860] sm:$0xff]  ;;  %v1743_v48 = vld [vmem:[%s3661_s0 + $0x30] sm:$0xff]  ;;  %vm317_vm0 = vcmp.eq.s32.totalorder %v2366_v0, 1  ;;  %v381_v46 = vsub.f32 1.0, %v380_v29 }
  0xa5   :  { %v224_v23 = vsel %vm221_vm13, %v223_v16, %v219_v57  ;;  %1104 = vmatpush.msrb.mxu0 %v886_v18  ;;  %v2512_v58 = vmul.f32 %v1744_v33, %v2403_v62  ;;  %1135 = vmatpush.msrb.mxu2 %v667_v45  ;;  %v270_v60 = vmul.f32 %v1743_v48, %v2196_v28  ;;  %v321_v28 = vsel %vm317_vm0, %v268_v42, -1e+30  ;;  %v90_v0 = vld [vmem:[%s3664_s3] sm:$0xf]  ;;  %v639_v42 = vld [vmem:[%s3665_s4 + $0xa8] sm:$0xff]  ;;  %v2594_v45 = vpop.eup %1787 }
  0xa6   :  { %v225_v41 = vmul.f32 %v224_v23, %v183_v30  ;;  %v169_v57 = vsel %vm167_vm1, %v155_v4, 0.0  ;;  %v354_v16 = vrot.slane %v353_v9, 4  ;;  %v325_v22 = vmax.f32 %v321_v28, %v322_v26  ;;  %1159 = vmatpush.msrb.mxu3 %v715_v20  ;;  %v691_v20 = vld [vmem:[%s3665_s4 + $0x248] sm:$0xff]  ;;  %vm2728_vm1 = vmor %vm384_vm14, %vm385_vm11 }
  0xa7   :  { %1105 = vmatpush.msrb.mxu0 %v882_v13  ;;  %1136 = vmatpush.msrb.mxu2 %v663_v53  ;;  %v360_v6 = vadd.f32 %v2512_v58, %v270_v60  ;;  %v397_v23 = vmul.f32 %v2468_v10, %v396_v3  ;;  %v711_v13 = vld [vmem:[%s3665_s4 + $0x2e8] sm:$0xff]  ;;  %v403_v48 = vand.u32 2147483647, %v2129_v2  ;;  %v382_v4 = vmul.f32 %v2543_v15, %v381_v46 }
  0xa8   :  { %v232_v62 = vsel %vm228_vm15, %v225_v41, %v210_v55  ;;  %v355_v30 = vadd.f32 %v354_v16, %v353_v9  ;;  %v326_v32 = vrot.slane %v325_v22, 4  ;;  %1160 = vmatpush.msrb.mxu3 %v711_v13  ;;  %v1754_v41 = vld [vmem:[%s3661_s0 + $0x40] sm:$0xff]  ;;  %v699_v55 = vld [vmem:[%s3665_s4 + $0x288] sm:$0xff]  ;;  %vm565_vm0 = vweird.f32 %v2363_v43 }
  0xa9   :  { %1106 = vmatpush.msrb.mxu0 %v878_v38  ;;  %v233_v12 = vrot.slane %v232_v62, 6  ;;  %1137 = vmatpush.msrb.mxu2 %v659_v63  ;;  %v361_v24 = vrot.slane %v360_v6, 4  ;;  %v398_v33 = vadd.f32 %v2468_v10, %v397_v23  ;;  %v405_v38 = vand.u32 2147483648, %v2129_v2  ;;  %v871_v63 = vld [vmem:[%s3665_s4 + $0x7e8] sm:$0xff]  ;;  %v1757_v23 = vld [vmem:[%s3661_s0 + $0x58] sm:$0xff] }
  0xaa   :  { %v2555_v21 = vpop.permute.xlu2 %441  ;;  %1161 = vmatpush.msrb.mxu3 %v707_v37  ;;  %v356_v14 = vrot.slane %v355_v30, 2  ;;  %v2614_v56 = vmax.f32 %v325_v22, %v326_v32  ;;  %v2624_v2 = vmul.f32 %v2594_v45, %v2363_v43  ;;  %v695_v3 = vld [vmem:[%s3665_s4 + $0x268] sm:$0xff]  ;;  %vm404_vm10 = vcmp.eq.f32.partialorder %v403_v48, 8.507059e+37 }
  0xab   :  { %v2459_v51 = vpop.permute.xlu1 %315  ;;  %1107 = vmatpush.msrb.mxu0 %v874_v52  ;;  %1138 = vmatpush.msrb.mxu2 %v655_v7  ;;  %v2583_v39 = vadd.f32 %v361_v24, %v360_v6  ;;  %v406_v9 = vor.u32 1.1754944e-38, %v405_v38  ;;  %v799_v24 = vld [vmem:[%s3665_s4 + $0x5a8] sm:$0xff] }
  0xac   :  { %v2490_v44 = vpop.permute.xlu0 %312  ;;  %vm320_vm6 = vcmp.eq.s32.totalorder %v2459_v51, 1  ;;  %v2643_v7 = vadd.f32 %v356_v14, %v355_v30  ;;  %v328_v26 = vrot.slane %v2614_v56, 2  ;;  %v562_v22 = vsub.f32 1.0, %v2624_v2  ;;  %v687_v32 = vld [vmem:[%s3665_s4 + $0x228] sm:$0xff] }
  0xad   :  { %vm319_vm5 = vcmp.eq.s32.totalorder %v2490_v44, 1  ;;  %1139 = vmatpush.msrb.mxu2 %v651_v61  ;;  %v703_v44 = vld [vmem:[%s3665_s4 + $0x2a8] sm:$0xff]  ;;  %v324_v47 = vsel %vm320_vm6, %v2512_v58, -1e+30  ;;  %v363_v62 = vrot.slane %v2583_v39, 2 }
  0xae   :  { %v323_v34 = vsel %vm319_vm5, %v270_v60, -1e+30  ;;  %1162 = vmatpush.msrb.mxu3 %v703_v44  ;;  %v402_v60 = vsel %vm2610_vm9, %v2468_v10, %v398_v33  ;;  %v627_v61 = vld [vmem:[%s3665_s4 + $0x48] sm:$0xff]  ;;  %v329_v44 = vmax.f32 %v2614_v56, %v328_v26  ;;  %v388_v14 = vand.u32 2147483647, %v2228_v40 }
  0xaf   :  { %1140 = vmatpush.msrb.mxu2 %v647_v27  ;;  %v332_v50 = vmax.f32 %v323_v34, %v324_v47  ;;  %v2681_v27 = vadd.f32 %v2543_v15, %v382_v4  ;;  %v2684_v13 = vadd.f32 %v363_v62, %v2583_v39  ;;  %v358_v34 = vrot.slane %v2643_v7, 1  ;;  %v795_v38 = vld [vmem:[%s3665_s4 + $0x588] sm:$0xff] }
  0xb0   :  { %1163 = vmatpush.msrb.mxu3 %v699_v55  ;;  %v859_v39 = vld [vmem:[%s3665_s4 + $0x788] sm:$0xff]  ;;  %v563_v55 = vmul.f32 %v2594_v45, %v562_v22  ;;  %v569_v51 = vand.u32 2147483647, %v2363_v43  ;;  %vm389_vm4 = vcmp.eq.f32.partialorder %v388_v14, 8.507059e+37 }
  0xb1   :  { %1141 = vmatpush.msrb.mxu2 %v643_v31  ;;  %v333_v8 = vrot.slane %v332_v50, 4  ;;  %v623_v31 = vld [vmem:[%s3665_s4 + $0x28] sm:$0xff]  ;;  %v365_v56 = vrot.slane %v2684_v13, 1 }
  0xb2   :  { %1164 = vmatpush.msrb.mxu3 %v695_v3  ;;  %v619_v47 = vld [vmem:[%s3665_s4 + $0x8] sm:$0xff]  ;;  %v2758_v26 = vadd.f32 %v2594_v45, %v563_v55 }
  0xb3   :  { %v162_v49 = vpop.permute.xlu1 %161  ;;  %1142 = vmatpush.msrb.mxu2 %v639_v42  ;;  %v683_v48 = vld [vmem:[%s3665_s4 + $0x208] sm:$0xff] }
  0xb4   :  { %vm166_vm3 = vcmp.eq.s32.totalorder %v162_v49, 1  ;;  %v2546_v19 = vpop.permute.xlu0 %557  ;;  %v491_v49 = vpop.permute.xlu2 %490  ;;  %1165 = vmatpush.msrb.mxu3 %v691_v20  ;;  %v787_v2 = vld [vmem:[%s3665_s4 + $0x548] sm:$0xff] }
  0xb5   :  { %v168_v11 = vsel %vm166_vm3, %v148_v5, 0.0  ;;  %1789 = vrcp.f32 %v2546_v19  ;;  %1143 = vmatpush.msrb.mxu2 %v635_v54  ;;  %vm499_vm12 = vcmp.eq.s32.totalorder %v491_v49, 1  ;;  %v855_v54 = vld [vmem:[%s3665_s4 + $0x768] sm:$0xff]  ;;  %vm566_vm3 = vweird.f32 %v2594_v45 }
  0xb6   :  { %v229_v18 = vsel %vm228_vm15, %v169_v57, %v168_v11  ;;  %v803_v57 = vld [vmem:[%s3665_s4 + $0x5c8] sm:$0xff]  ;;  %v2653_v11 = vsel %vm404_vm10, %v406_v9, %v402_v60  ;;  %1166 = vmatpush.msrb.mxu3 %v687_v32  ;;  %v571_v49 = vand.u32 2147483648, %v2363_v43  ;;  %vm2784_vm8 = vmor %vm565_vm0, %vm566_vm3  ;;  %vm580_vm9 = vweird.f32 %v2546_v19 }
  0xb7   :  { %v235_v17 = vsel %vm234_vm2, %v229_v18, %v233_v12  ;;  %v1756_v12 = vld [vmem:[%s3661_s0 + $0x50] sm:$0xff]  ;;  %1144 = vmatpush.msrb.mxu2 %v631_v1  ;;  %v851_v62 = vld [vmem:[%s3665_s4 + $0x748] sm:$0xff]  ;;  %v330_v1 = vrot.slane %v329_v44, 1 }
  0xb8   :  { %v237_v25 = vadd.f32 %v235_v17, %v90_v0  ;;  %v867_v0 = vld [vmem:[%s3665_s4 + $0x7c8] sm:$0xff]  ;;  %v2703_v42 = vmul.f32 %v1756_v12, %v2555_v21  ;;  %1167 = vmatpush.msrb.mxu3 %v683_v48  ;;  %v568_v48 = vsel %vm2784_vm8, %v2594_v45, %v2758_v26 }
  0xb9   :  { %1145 = vmatpush.msrb.mxu2 %v627_v61  ;;  %v779_v22 = vld [vmem:[%s3665_s4 + $0x508] sm:$0xff] }
  0xba   :  { %601 = vst [vmem:[#allocation1] ss:$4 sm:$0xff] %v237_v25  ;;  %v863_v25 = vld [vmem:[%s3665_s4 + $0x7a8] sm:$0xff] }
  0xbb   :  { %v437_v36 = vpop.permute.xlu1 %436  ;;  %v2636_v10 = vpop.eup %1789  ;;  %1146 = vmatpush.msrb.mxu2 %v623_v31  ;;  %v775_v31 = vld [vmem:[%s3665_s4 + $0x4e8] sm:$0xff] }
  0xbc   :  { %v432_v52 = vpop.permute.xlu0 %431  ;;  %v450_v58 = vmul.f32 %v1755_v35, %v437_v36  ;;  %v2669_v17 = vmul.f32 %v2636_v10, %v2546_v19  ;;  %v2693_v35 = vmax.f32 %v332_v50, %v333_v8  ;;  %v847_v8 = vld [vmem:[%s3665_s4 + $0x728] sm:$0xff]  ;;  %vm581_vm7 = vweird.f32 %v2636_v10 }
  0xbd   :  { %v449_v53 = vmul.f32 %v1754_v41, %v432_v52  ;;  %v390_v41 = vand.u32 2147483648, %v2228_v40  ;;  %v791_v52 = vld [vmem:[%s3665_s4 + $0x568] sm:$0xff]  ;;  %1147 = vmatpush.msrb.mxu2 %v619_v47  ;;  %vm2798_vm11 = vmor %vm580_vm9, %vm581_vm7 }
  0xbe   :  { %v503_v29 = vsel %vm499_vm12, %v450_v58, -1e+30  ;;  %v577_v21 = vsub.f32 1.0, %v2669_v17  ;;  %v335_v60 = vrot.slane %v2693_v35, 2  ;;  %v843_v17 = vld [vmem:[%s3665_s4 + $0x708] sm:$0xff]  ;;  %vm2808_vm12 = vcmp.eq.f32.partialorder %v569_v51, 8.507059e+37 }
  0xbf   :  { %v534_v5 = vadd.f32 %v450_v58, %v449_v53  ;;  %v839_v32 = vld [vmem:[%s3665_s4 + $0x6e8] sm:$0xff] }
  0xc0   :  { %v336_v20 = vmax.f32 %v2693_v35, %v335_v60  ;;  %v586_v35 = vand.u32 2147483648, %v2546_v19  ;;  %v819_v26 = vld [vmem:[%s3665_s4 + $0x648] sm:$0xff] }
  0xc1   :  { %v2639_v28 = vld.sshfl [vmem:[#allocation1] sm:$0xff pattern:$0x73625140]  ;;  %v2641_v6 = vld.sshfl [vmem:[#allocation1 + $0x8] sm:$0xff pattern:$0x73625140] }
  0xc2   :  { %1028 = vmatmul.f32.vlgmr.msra.gmra.mxu0 %v2639_v28  ;;  %1048 = vmatmul.f32.vlgmr.msra.gmra.mxu1 %v2641_v6  ;;  %v535_v16 = vrot.slane %v534_v5, 4  ;;  %v587_v45 = vor.u32 1.1754944e-38, %v586_v35 }
  0xc3   :  { %v488_v18 = vpop.permute.xlu1 %487  ;;  %1172 = vmatpush.msra.mxu0 %v807_v59  ;;  %1192 = vmatpush.msra.mxu1 %v871_v63  ;;  %v359_v59 = vadd.f32 %v358_v34, %v2643_v7  ;;  %v391_v63 = vor.u32 1.1754944e-38, %v390_v41  ;;  %v783_v7 = vld [vmem:[%s3665_s4 + $0x528] sm:$0xff] }
  0xc4   :  { %vm498_vm13 = vcmp.eq.s32.totalorder %v488_v18, 1  ;;  %v536_v36 = vadd.f32 %v535_v16, %v534_v5  ;;  %v447_v33 = vpop.permute.xlu0 %446  ;;  %v578_v5 = vmul.f32 %v2636_v10, %v577_v21  ;;  %v771_v41 = vld [vmem:[%s3665_s4 + $0x4c8] sm:$0xff]  ;;  %v572_v21 = vor.u32 1.1754944e-38, %v571_v49 }
  0xc5   :  { %v502_v30 = vsel %vm498_vm13, %v449_v53, -1e+30  ;;  %1173 = vmatpush.msra.mxu0 %v803_v57  ;;  %1193 = vmatpush.msra.mxu1 %v867_v0  ;;  %v2706_v46 = vmul.f32 %v1757_v23, %v447_v33  ;;  %v387_v53 = vsel %vm2728_vm1, %v2543_v15, %v2681_v27  ;;  %v366_v0 = vadd.f32 %v365_v56, %v2684_v13  ;;  %v345_v27 = vpop.permute.xlu2 %344 }
  0xc6   :  { %v506_v37 = vmax.f32 %v502_v30, %v503_v29  ;;  %v537_v9 = vrot.slane %v536_v36, 2  ;;  %v392_v57 = vsel %vm389_vm4, %v391_v63, %v387_v53  ;;  %v331_v23 = vmax.f32 %v329_v44, %v330_v1  ;;  %v763_v53 = vld [vmem:[%s3665_s4 + $0x488] sm:$0xff]  ;;  %v1749_v63 = vld [vmem:[%s3664_s3 + $0x4] sm:$0xf] }
  0xc7   :  { %1174 = vmatpush.msra.mxu0 %v799_v24  ;;  %1194 = vmatpush.msra.mxu1 %v863_v25  ;;  %v541_v58 = vadd.f32 %v2706_v46, %v2703_v42  ;;  %v393_v16 = vmul.f32 %v392_v57, %v359_v59  ;;  %v579_v13 = vadd.f32 %v2636_v10, %v578_v5  ;;  %vm349_vm10 = vcmp.eq.s32.totalorder %v345_v27, 1  ;;  %v827_v59 = vld [vmem:[%s3665_s4 + $0x688] sm:$0xff] }
  0xc8   :  { %v507_v50 = vrot.slane %v506_v37, 4  ;;  %v538_v18 = vadd.f32 %v537_v9, %v536_v36  ;;  %v408_v34 = vmul.f32 %v2653_v11, %v366_v0  ;;  %v337_v11 = vrot.slane %v336_v20, 1  ;;  %v811_v27 = vld [vmem:[%s3665_s4 + $0x608] sm:$0xff] }
  0xc9   :  { %1175 = vmatpush.msra.mxu0 %v795_v38  ;;  %1195 = vmatpush.msra.mxu1 %v859_v39  ;;  %v542_v4 = vrot.slane %v541_v58, 4  ;;  %v584_v38 = vand.u32 2147483647, %v2546_v19  ;;  %v351_v40 = vsel %vm349_vm10, %v331_v23, 0.0  ;;  %v573_v49 = vsel %vm2808_vm12, %v572_v21, %v568_v48  ;;  %v815_v23 = vld [vmem:[%s3665_s4 + $0x628] sm:$0xff]  ;;  %v680_v21 = vld [vmem:[%s3665_s4 + $0x1f0] sm:$0xff] }
  0xca   :  { %v508_v3 = vmax.f32 %v506_v37, %v507_v50  ;;  %v539_v39 = vrot.slane %v538_v18, 1  ;;  %v583_v50 = vsel %vm2798_vm11, %v2636_v10, %v579_v13  ;;  %v414_v51 = vsel %vm228_vm15, %v408_v34, %v393_v16  ;;  %v1762_v13 = vld [vmem:[%s3664_s3 + $0x8] sm:$0xf] }
  0xcb   :  { %v497_v15 = vpop.permute.xlu1 %496  ;;  %1176 = vmatpush.msra.mxu0 %v791_v52  ;;  %1196 = vmatpush.msra.mxu1 %v855_v54  ;;  %v543_v12 = vadd.f32 %v542_v4, %v541_v58  ;;  %v767_v52 = vld [vmem:[%s3665_s4 + $0x4a8] sm:$0xff]  ;;  %vm585_vm13 = vcmp.eq.f32.partialorder %v584_v38, 8.507059e+37  ;;  %v338_v58 = vmax.f32 %v336_v20, %v337_v11 }
  0xcc   :  { %vm501_vm5 = vcmp.eq.s32.totalorder %v497_v15, 1  ;;  %v494_v61 = vpop.permute.xlu0 %493  ;;  %v509_v24 = vrot.slane %v508_v3, 2  ;;  %v831_v54 = vld [vmem:[%s3665_s4 + $0x6a8] sm:$0xff]  ;;  %v540_v56 = vadd.f32 %v539_v39, %v538_v18  ;;  %v588_v60 = vsel %vm585_vm13, %v587_v45, %v583_v50  ;;  %v744_v50 = vld [vmem:[%s3665_s4 + $0x3f0] sm:$0xff] }
  0xcd   :  { %1177 = vmatpush.msra.mxu0 %v787_v2  ;;  %1197 = vmatpush.msra.mxu1 %v851_v62  ;;  %v544_v25 = vrot.slane %v543_v12, 2  ;;  %vm500_vm6 = vcmp.eq.s32.totalorder %v494_v61, 1  ;;  %v505_v29 = vsel %vm501_vm5, %v2706_v46, -1e+30  ;;  %v759_v4 = vld [vmem:[%s3665_s4 + $0x468] sm:$0xff]  ;;  %v529_v16 = vpop.permute.xlu2 %528  ;;  %v676_v45 = vld [vmem:[%s3665_s4 + $0x1d0] sm:$0xff] }
  0xce   :  { %v504_v30 = vsel %vm500_vm6, %v2703_v42, -1e+30  ;;  %v835_v42 = vld [vmem:[%s3665_s4 + $0x6c8] sm:$0xff]  ;;  %v510_v19 = vmax.f32 %v508_v3, %v509_v24  ;;  %v415_v3 = vrot.slane %v414_v51, 6  ;;  %v574_v57 = vmul.f32 %v573_v49, %v540_v56  ;;  %v736_v56 = vld [vmem:[%s3665_s4 + $0x3b0] sm:$0xff] }
  0xcf   :  { %1178 = vmatpush.msra.mxu0 %v783_v7  ;;  %1198 = vmatpush.msra.mxu1 %v847_v8  ;;  %v545_v36 = vadd.f32 %v544_v25, %v543_v12  ;;  %v513_v37 = vmax.f32 %v504_v30, %v505_v29  ;;  %v823_v15 = vld [vmem:[%s3665_s4 + $0x668] sm:$0xff]  ;;  %vm531_vm1 = vcmp.eq.s32.totalorder %v529_v16, 1 }
  0xd0   :  { %v511_v2 = vrot.slane %v510_v19, 1  ;;  %v755_v12 = vld [vmem:[%s3665_s4 + $0x448] sm:$0xff] }
  0xd1   :  { %1179 = vmatpush.msra.mxu0 %v779_v22  ;;  %1199 = vmatpush.msra.mxu1 %v843_v17  ;;  %v546_v46 = vrot.slane %v545_v36, 1  ;;  %v514_v47 = vrot.slane %v513_v37, 4  ;;  %v751_v17 = vld [vmem:[%s3665_s4 + $0x428] sm:$0xff] }
  0xd2   :  { %v512_v61 = vmax.f32 %v510_v19, %v511_v2  ;;  %v747_v25 = vld [vmem:[%s3665_s4 + $0x408] sm:$0xff]  ;;  %v664_v2 = vld [vmem:[%s3665_s4 + $0x170] sm:$0xff] }
  0xd3   :  { %1180 = vmatpush.msra.mxu0 %v775_v31  ;;  %1200 = vmatpush.msra.mxu1 %v839_v32  ;;  %v547_v55 = vadd.f32 %v546_v46, %v545_v36  ;;  %v515_v43 = vmax.f32 %v513_v37, %v514_v47  ;;  %v526_v7 = vpop.permute.xlu1 %525  ;;  %v935_v36 = vld [vmem:[%s3665_s4 + $0x9e8] sm:$0xff] }
  0xd4   :  { %v348_v10 = vpop.permute.xlu0 %347  ;;  %vm530_vm0 = vcmp.eq.s32.totalorder %v526_v7, 1  ;;  %v999_v37 = vld [vmem:[%s3665_s4 + $0xbe8] sm:$0xff]  ;;  %v720_v7 = vld [vmem:[%s3665_s4 + $0x330] sm:$0xff] }
  0xd5   :  { %1181 = vmatpush.msra.mxu0 %v771_v41  ;;  %1201 = vmatpush.msra.mxu1 %v835_v42  ;;  %v516_v9 = vrot.slane %v515_v43, 2  ;;  %vm350_vm14 = vcmp.eq.s32.totalorder %v348_v10, 1  ;;  %v589_v62 = vmul.f32 %v588_v60, %v547_v55  ;;  %v532_v31 = vsel %vm530_vm0, %v512_v61, 0.0  ;;  %v931_v39 = vld [vmem:[%s3665_s4 + $0x9c8] sm:$0xff]  ;;  %v740_v55 = vld [vmem:[%s3665_s4 + $0x3d0] sm:$0xff] }
  0xd6   :  { %v352_v1 = vsel %vm350_vm14, %v338_v58, 0.0  ;;  %v995_v11 = vld [vmem:[%s3665_s4 + $0xbc8] sm:$0xff]  ;;  %v712_v61 = vld [vmem:[%s3665_s4 + $0x2f0] sm:$0xff] }
  0xd7   :  { %1182 = vmatpush.msra.mxu0 %v767_v52  ;;  %1202 = vmatpush.msra.mxu1 %v831_v54  ;;  %v517_v5 = vmax.f32 %v515_v43, %v516_v9  ;;  %v411_v8 = vsel %vm228_vm15, %v352_v1, %v351_v40  ;;  %v595_v22 = vsel %vm228_vm15, %v589_v62, %v574_v57  ;;  %v927_v41 = vld [vmem:[%s3665_s4 + $0x9a8] sm:$0xff]  ;;  %v672_v40 = vld [vmem:[%s3665_s4 + $0x1b0] sm:$0xff] }
  0xd8   :  { %v416_v0 = vsel %vm234_vm2, %v411_v8, %v415_v3  ;;  %v596_v30 = vrot.slane %v595_v22, 6  ;;  %v991_v42 = vld [vmem:[%s3665_s4 + $0xba8] sm:$0xff]  ;;  %v728_v62 = vld [vmem:[%s3665_s4 + $0x370] sm:$0xff] }
  0xd9   :  { %1183 = vmatpush.msra.mxu0 %v763_v53  ;;  %1203 = vmatpush.msra.mxu1 %v827_v59  ;;  %v518_v18 = vrot.slane %v517_v5, 1  ;;  %v418_v20 = vadd.f32 %v1749_v63, %v416_v0  ;;  %v923_v44 = vld [vmem:[%s3665_s4 + $0x988] sm:$0xff]  ;;  %v668_v53 = vld [vmem:[%s3665_s4 + $0x190] sm:$0xff] }
  0xda   :  { %v987_v46 = vld [vmem:[%s3665_s4 + $0xb88] sm:$0xff]  ;;  %v732_v59 = vld [vmem:[%s3665_s4 + $0x390] sm:$0xff] }
  0xdb   :  { %1184 = vmatpush.msra.mxu0 %v759_v4  ;;  %1204 = vmatpush.msra.mxu1 %v823_v15  ;;  %v519_v24 = vmax.f32 %v517_v5, %v518_v18  ;;  %607 = vst [vmem:[#allocation1] ss:$4 sm:$0xff] %v418_v20  ;;  %v919_v47 = vld [vmem:[%s3665_s4 + $0x968] sm:$0xff]  ;;  %v660_v3 = vld [vmem:[%s3665_s4 + $0x150] sm:$0xff] }
  0xdc   :  { %v983_v19 = vld [vmem:[%s3665_s4 + $0xb68] sm:$0xff]  ;;  %v724_v4 = vld [vmem:[%s3665_s4 + $0x350] sm:$0xff] }
  0xdd   :  { %1185 = vmatpush.msra.mxu0 %v755_v12  ;;  %1205 = vmatpush.msra.mxu1 %v819_v26  ;;  %v533_v29 = vsel %vm531_vm1, %v519_v24, 0.0  ;;  %v915_v52 = vld [vmem:[%s3665_s4 + $0x948] sm:$0xff]  ;;  %v656_v5 = vld [vmem:[%s3665_s4 + $0x130] sm:$0xff] }
  0xde   :  { %v592_v32 = vsel %vm228_vm15, %v533_v29, %v532_v31  ;;  %v979_v54 = vld [vmem:[%s3665_s4 + $0xb48] sm:$0xff]  ;;  %v652_v0 = vld [vmem:[%s3665_s4 + $0x110] sm:$0xff]  ;;  %vm1698_vm15 = vcmask 523264  }
  0xdf   :  { %1186 = vmatpush.msra.mxu0 %v751_v17  ;;  %1206 = vmatpush.msra.mxu1 %v815_v23  ;;  %v597_v34 = vsel %vm234_vm2, %v592_v32, %v596_v30  ;;  %v911_v43 = vld [vmem:[%s3665_s4 + $0x928] sm:$0xff]  ;;  %v716_v12 = vld [vmem:[%s3665_s4 + $0x310] sm:$0xff]  ;;  %vm1722_vm2 = vcmask 25600  }
  0xe0   :  { %v599_v35 = vadd.f32 %v1762_v13, %v597_v34  ;;  %v975_v51 = vld [vmem:[%s3665_s4 + $0xb28] sm:$0xff]  ;;  %v648_v18 = vld [vmem:[%s3665_s4 + $0xf0] sm:$0xff] }
  0xe1   :  { %1187 = vmatpush.msra.mxu0 %v747_v25  ;;  %1207 = vmatpush.msra.mxu1 %v811_v27  ;;  %v907_v10 = vld [vmem:[%s3665_s4 + $0x908] sm:$0xff]  ;;  %v644_v17 = vld [vmem:[%s3665_s4 + $0xd0] sm:$0xff] }
  0xe2   :  { %v2872_v33 = vld.sshfl [vmem:[#allocation1] sm:$0xff pattern:$0x73625140]  ;;  %v2874_v38 = vld.sshfl [vmem:[#allocation1 + $0x8] sm:$0xff pattern:$0x73625140] }
  0xe3   :  { %1068 = vmatmul.f32.vlgmr.msra.gmra.mxu2 %v2872_v33  ;;  %613 = vst [vmem:[#allocation1] ss:$4 sm:$0xff] %v599_v35  ;;  %1088 = vmatmul.f32.vlgmr.msra.gmra.mxu3 %v2874_v38  ;;  %v971_v58 = vld [vmem:[%s3665_s4 + $0xb08] sm:$0xff]  ;;  %v708_v23 = vld [vmem:[%s3665_s4 + $0x2d0] sm:$0xff] }
  0xe4   :  { %1212 = vmatpush.msra.mxu2 %v935_v36  ;;  %1232 = vmatpush.msra.mxu3 %v999_v37  ;;  %v903_v60 = vld [vmem:[%s3665_s4 + $0x8e8] sm:$0xff]  ;;  %v640_v27 = vld [vmem:[%s3665_s4 + $0xb0] sm:$0xff] }
  0xe5   :  { %v967_v9 = vld [vmem:[%s3665_s4 + $0xae8] sm:$0xff]  ;;  %v704_v13 = vld [vmem:[%s3665_s4 + $0x2b0] sm:$0xff] }
  0xe6   :  { %1213 = vmatpush.msra.mxu2 %v931_v39  ;;  %1233 = vmatpush.msra.mxu3 %v995_v11  ;;  %v899_v63 = vld [vmem:[%s3665_s4 + $0x8c8] sm:$0xff]  ;;  %v636_v31 = vld [vmem:[%s3665_s4 + $0x90] sm:$0xff] }
  0xe7   :  { %v963_v1 = vld [vmem:[%s3665_s4 + $0xac8] sm:$0xff]  ;;  %v700_v32 = vld [vmem:[%s3665_s4 + $0x290] sm:$0xff] }
  0xe8   :  { %1214 = vmatpush.msra.mxu2 %v927_v41  ;;  %1234 = vmatpush.msra.mxu3 %v991_v42  ;;  %v895_v15 = vld [vmem:[%s3665_s4 + $0x8a8] sm:$0xff]  ;;  %v808_v34 = vld [vmem:[%s3665_s4 + $0x5f0] sm:$0xff] }
  0xe9   :  { %v959_v49 = vld [vmem:[%s3665_s4 + $0xaa8] sm:$0xff]  ;;  %v872_v35 = vld [vmem:[%s3665_s4 + $0x7f0] sm:$0xff] }
  0xea   :  { %1215 = vmatpush.msra.mxu2 %v923_v44  ;;  %1235 = vmatpush.msra.mxu3 %v987_v46  ;;  %v2902_v48 = vld.sshfl [vmem:[#allocation1] sm:$0xff pattern:$0x73625140]  ;;  %v2904_v14 = vld.sshfl [vmem:[#allocation1 + $0x8] sm:$0xff pattern:$0x73625140] }
  0xeb   :  { %1108 = vmatmul.f32.vlgmr.msrb.gmra.mxu0 %v2902_v48  ;;  %1128 = vmatmul.f32.vlgmr.msrb.gmra.mxu1 %v2904_v14  ;;  %v891_v8 = vld [vmem:[%s3665_s4 + $0x888] sm:$0xff]  ;;  %v632_v36 = vld [vmem:[%s3665_s4 + $0x70] sm:$0xff] }
  0xec   :  { %1148 = vmatmul.f32.vlgmr.msrb.gmra.mxu2 %v2639_v28  ;;  %1168 = vmatmul.f32.vlgmr.msrb.gmra.mxu3 %v2641_v6  ;;  %v955_v57 = vld [vmem:[%s3665_s4 + $0xa88] sm:$0xff]  ;;  %v696_v37 = vld [vmem:[%s3665_s4 + $0x270] sm:$0xff] }
  0xed   :  { %1216 = vmatpush.msra.mxu2 %v919_v47  ;;  %1236 = vmatpush.msra.mxu3 %v983_v19  ;;  %v887_v26 = vld [vmem:[%s3665_s4 + $0x868] sm:$0xff]  ;;  %v804_v39 = vld [vmem:[%s3665_s4 + $0x5d0] sm:$0xff] }
  0xee   :  { %1252 = vmatpush.msrb.mxu0 %v680_v21  ;;  %1272 = vmatpush.msrb.mxu1 %v744_v50  ;;  %v951_v16 = vld [vmem:[%s3665_s4 + $0xa68] sm:$0xff]  ;;  %v868_v11 = vld [vmem:[%s3665_s4 + $0x7d0] sm:$0xff] }
  0xef   :  { %1217 = vmatpush.msra.mxu2 %v915_v52  ;;  %1237 = vmatpush.msra.mxu3 %v979_v54  ;;  %v883_v20 = vld [vmem:[%s3665_s4 + $0x848] sm:$0xff]  ;;  %v628_v41 = vld [vmem:[%s3665_s4 + $0x50] sm:$0xff] }
  0xf0   :  { %1253 = vmatpush.msrb.mxu0 %v676_v45  ;;  %1273 = vmatpush.msrb.mxu1 %v740_v55  ;;  %v947_v22 = vld [vmem:[%s3665_s4 + $0xa48] sm:$0xff]  ;;  %v692_v42 = vld [vmem:[%s3665_s4 + $0x250] sm:$0xff] }
  0xf1   :  { %1218 = vmatpush.msra.mxu2 %v911_v43  ;;  %1238 = vmatpush.msra.mxu3 %v975_v51  ;;  %v879_v24 = vld [vmem:[%s3665_s4 + $0x828] sm:$0xff]  ;;  %v800_v44 = vld [vmem:[%s3665_s4 + $0x5b0] sm:$0xff] }
  0xf2   :  { %1254 = vmatpush.msrb.mxu0 %v672_v40  ;;  %1274 = vmatpush.msrb.mxu1 %v736_v56  ;;  %v943_v25 = vld [vmem:[%s3665_s4 + $0xa28] sm:$0xff]  ;;  %v864_v46 = vld [vmem:[%s3665_s4 + $0x7b0] sm:$0xff] }
  0xf3   :  { %1219 = vmatpush.msra.mxu2 %v907_v10  ;;  %1239 = vmatpush.msra.mxu3 %v971_v58  ;;  %v875_v29 = vld [vmem:[%s3665_s4 + $0x808] sm:$0xff]  ;;  %v624_v47 = vld [vmem:[%s3665_s4 + $0x30] sm:$0xff] }
  0xf4   :  { %1255 = vmatpush.msrb.mxu0 %v668_v53  ;;  %1275 = vmatpush.msrb.mxu1 %v732_v59  ;;  %v939_v30 = vld [vmem:[%s3665_s4 + $0xa08] sm:$0xff]  ;;  %v688_v19 = vld [vmem:[%s3665_s4 + $0x230] sm:$0xff] }
  0xf5   :  { %1188 = vmatmul.f32.vlgmr.msra.gmra.mxu0 %v2872_v33  ;;  %1208 = vmatmul.f32.vlgmr.msra.gmra.mxu1 %v2874_v38  ;;  %v796_v21 = vld [vmem:[%s3665_s4 + $0x590] sm:$0xff] }
  0xf6   :  { %1220 = vmatpush.msra.mxu2 %v903_v60  ;;  %1240 = vmatpush.msra.mxu3 %v967_v9  ;;  %v860_v50 = vld [vmem:[%s3665_s4 + $0x790] sm:$0xff] }
  0xf7   :  { %1256 = vmatpush.msrb.mxu0 %v664_v2  ;;  %1276 = vmatpush.msrb.mxu1 %v728_v62  ;;  %v620_v52 = vld [vmem:[%s3665_s4 + $0x10] sm:$0xff] }
  0xf8   :  { %1221 = vmatpush.msra.mxu2 %v899_v63  ;;  %1241 = vmatpush.msra.mxu3 %v963_v1  ;;  %v684_v54 = vld [vmem:[%s3665_s4 + $0x210] sm:$0xff] }
  0xf9   :  { %1257 = vmatpush.msrb.mxu0 %v660_v3  ;;  %1277 = vmatpush.msrb.mxu1 %v724_v4  ;;  %v792_v45 = vld [vmem:[%s3665_s4 + $0x570] sm:$0xff] }
  0xfa   :  { %1222 = vmatpush.msra.mxu2 %v895_v15  ;;  %1242 = vmatpush.msra.mxu3 %v959_v49  ;;  %v856_v55 = vld [vmem:[%s3665_s4 + $0x770] sm:$0xff] }
  0xfb   :  { %1258 = vmatpush.msrb.mxu0 %v656_v5  ;;  %1278 = vmatpush.msrb.mxu1 %v720_v7  ;;  %v936_v43 = vld [vmem:[%s3665_s4 + $0x9f0] sm:$0xff] }
  0xfc   :  { %1223 = vmatpush.msra.mxu2 %v891_v8  ;;  %1243 = vmatpush.msra.mxu3 %v955_v57  ;;  %v1000_v51 = vld [vmem:[%s3665_s4 + $0xbf0] sm:$0xff] }
  0xfd   :  { %1259 = vmatpush.msrb.mxu0 %v652_v0  ;;  %1279 = vmatpush.msrb.mxu1 %v716_v12  ;;  %v788_v40 = vld [vmem:[%s3665_s4 + $0x550] sm:$0xff] }
  0xfe   :  { %1224 = vmatpush.msra.mxu2 %v887_v26  ;;  %1244 = vmatpush.msra.mxu3 %v951_v16  ;;  %v852_v56 = vld [vmem:[%s3665_s4 + $0x750] sm:$0xff] }
  0xff   :  { %1260 = vmatpush.msrb.mxu0 %v648_v18  ;;  %1280 = vmatpush.msrb.mxu1 %v712_v61  ;;  %v932_v10 = vld [vmem:[%s3665_s4 + $0x9d0] sm:$0xff] }
 0x100   :  { %1225 = vmatpush.msra.mxu2 %v883_v20  ;;  %1245 = vmatpush.msra.mxu3 %v947_v22  ;;  %v996_v58 = vld [vmem:[%s3665_s4 + $0xbd0] sm:$0xff] }
 0x101   :  { %1261 = vmatpush.msrb.mxu0 %v644_v17  ;;  %1281 = vmatpush.msrb.mxu1 %v708_v23  ;;  %v784_v53 = vld [vmem:[%s3665_s4 + $0x530] sm:$0xff] }
 0x102   :  { %1226 = vmatpush.msra.mxu2 %v879_v24  ;;  %1246 = vmatpush.msra.mxu3 %v943_v25  ;;  %v848_v59 = vld [vmem:[%s3665_s4 + $0x730] sm:$0xff] }
 0x103   :  { %1262 = vmatpush.msrb.mxu0 %v640_v27  ;;  %1282 = vmatpush.msrb.mxu1 %v704_v13  ;;  %v928_v60 = vld [vmem:[%s3665_s4 + $0x9b0] sm:$0xff] }
 0x104   :  { %1227 = vmatpush.msra.mxu2 %v875_v29  ;;  %1247 = vmatpush.msra.mxu3 %v939_v30  ;;  %v992_v9 = vld [vmem:[%s3665_s4 + $0xbb0] sm:$0xff] }
 0x105   :  { %1263 = vmatpush.msrb.mxu0 %v636_v31  ;;  %1283 = vmatpush.msrb.mxu1 %v700_v32  ;;  %v780_v2 = vld [vmem:[%s3665_s4 + $0x510] sm:$0xff] }
 0x106   :  { %1228 = vmatmul.f32.vlgmr.msra.gmra.mxu2 %v2902_v48  ;;  %1248 = vmatmul.f32.vlgmr.msra.gmra.mxu3 %v2904_v14  ;;  %v844_v62 = vld [vmem:[%s3665_s4 + $0x710] sm:$0xff] }
 0x107   :  { %1292 = vmatpush.msrb.mxu2 %v808_v34  ;;  %1312 = vmatpush.msrb.mxu3 %v872_v35  ;;  %v924_v63 = vld [vmem:[%s3665_s4 + $0x990] sm:$0xff] }
 0x108   :  { %1264 = vmatpush.msrb.mxu0 %v632_v36  ;;  %1284 = vmatpush.msrb.mxu1 %v696_v37  ;;  %v988_v1 = vld [vmem:[%s3665_s4 + $0xb90] sm:$0xff] }
 0x109   :  { %1293 = vmatpush.msrb.mxu2 %v804_v39  ;;  %1313 = vmatpush.msrb.mxu3 %v868_v11  ;;  %v776_v3 = vld [vmem:[%s3665_s4 + $0x4f0] sm:$0xff] }
 0x10a   :  { %1265 = vmatpush.msrb.mxu0 %v628_v41  ;;  %1285 = vmatpush.msrb.mxu1 %v692_v42  ;;  %v840_v4 = vld [vmem:[%s3665_s4 + $0x6f0] sm:$0xff]  ;;  %v681_v41 = vld [vmem:[%s3665_s4 + $0x1f8] sm:$0xff] }
 0x10b   :  { %1294 = vmatpush.msrb.mxu2 %v800_v44  ;;  %1314 = vmatpush.msrb.mxu3 %v864_v46  ;;  %v920_v15 = vld [vmem:[%s3665_s4 + $0x970] sm:$0xff]  ;;  %v745_v42 = vld [vmem:[%s3665_s4 + $0x3f8] sm:$0xff] }
 0x10c   :  { %1266 = vmatpush.msrb.mxu0 %v624_v47  ;;  %1286 = vmatpush.msrb.mxu1 %v688_v19  ;;  %v984_v49 = vld [vmem:[%s3665_s4 + $0xb70] sm:$0xff]  ;;  %v677_v47 = vld [vmem:[%s3665_s4 + $0x1d8] sm:$0xff] }
 0x10d   :  { %1295 = vmatpush.msrb.mxu2 %v796_v21  ;;  %1315 = vmatpush.msrb.mxu3 %v860_v50  ;;  %v772_v5 = vld [vmem:[%s3665_s4 + $0x4d0] sm:$0xff]  ;;  %v741_v19 = vld [vmem:[%s3665_s4 + $0x3d8] sm:$0xff] }
 0x10e   :  { %1267 = vmatpush.msrb.mxu0 %v620_v52  ;;  %1287 = vmatpush.msrb.mxu1 %v684_v54  ;;  %v836_v7 = vld [vmem:[%s3665_s4 + $0x6d0] sm:$0xff]  ;;  %v673_v52 = vld [vmem:[%s3665_s4 + $0x1b8] sm:$0xff] }
 0x10f   :  { %1268 = vmatmul.f32.vlgmr.msrb.gmra.mxu0 %v2639_v28  ;;  %1288 = vmatmul.f32.vlgmr.msrb.gmra.mxu1 %v2641_v6  ;;  %v916_v8 = vld [vmem:[%s3665_s4 + $0x950] sm:$0xff]  ;;  %v737_v54 = vld [vmem:[%s3665_s4 + $0x3b8] sm:$0xff] }
 0x110   :  { %1296 = vmatpush.msrb.mxu2 %v792_v45  ;;  %1316 = vmatpush.msrb.mxu3 %v856_v55  ;;  %v980_v57 = vld [vmem:[%s3665_s4 + $0xb50] sm:$0xff] }
 0x111   :  { %1332 = vmatpush.msra.mxu0 %v936_v43  ;;  %1352 = vmatpush.msra.mxu1 %v1000_v51  ;;  %v768_v0 = vld [vmem:[%s3665_s4 + $0x4b0] sm:$0xff]  ;;  %v669_v43 = vld [vmem:[%s3665_s4 + $0x198] sm:$0xff] }
 0x112   :  { %1297 = vmatpush.msrb.mxu2 %v788_v40  ;;  %1317 = vmatpush.msrb.mxu3 %v852_v56  ;;  %v832_v12 = vld [vmem:[%s3665_s4 + $0x6b0] sm:$0xff]  ;;  %v733_v51 = vld [vmem:[%s3665_s4 + $0x398] sm:$0xff] }
 0x113   :  { %1333 = vmatpush.msra.mxu0 %v932_v10  ;;  %1353 = vmatpush.msra.mxu1 %v996_v58  ;;  %v912_v26 = vld [vmem:[%s3665_s4 + $0x930] sm:$0xff]  ;;  %v665_v10 = vld [vmem:[%s3665_s4 + $0x178] sm:$0xff] }
 0x114   :  { %1298 = vmatpush.msrb.mxu2 %v784_v53  ;;  %1318 = vmatpush.msrb.mxu3 %v848_v59  ;;  %v976_v16 = vld [vmem:[%s3665_s4 + $0xb30] sm:$0xff]  ;;  %v729_v58 = vld [vmem:[%s3665_s4 + $0x378] sm:$0xff] }
 0x115   :  { %1334 = vmatpush.msra.mxu0 %v928_v60  ;;  %1354 = vmatpush.msra.mxu1 %v992_v9  ;;  %v764_v18 = vld [vmem:[%s3665_s4 + $0x490] sm:$0xff]  ;;  %v809_v53 = vld [vmem:[%s3665_s4 + $0x5f8] sm:$0xff] }
 0x116   :  { %1299 = vmatpush.msrb.mxu2 %v780_v2  ;;  %1319 = vmatpush.msrb.mxu3 %v844_v62  ;;  %v828_v61 = vld [vmem:[%s3665_s4 + $0x690] sm:$0xff]  ;;  %v873_v59 = vld [vmem:[%s3665_s4 + $0x7f8] sm:$0xff] }
 0x117   :  { %1335 = vmatpush.msra.mxu0 %v924_v63  ;;  %1355 = vmatpush.msra.mxu1 %v988_v1  ;;  %v908_v20 = vld [vmem:[%s3665_s4 + $0x910] sm:$0xff]  ;;  %v661_v60 = vld [vmem:[%s3665_s4 + $0x158] sm:$0xff] }
 0x118   :  { %1300 = vmatpush.msrb.mxu2 %v776_v3  ;;  %1320 = vmatpush.msrb.mxu3 %v840_v4  ;;  %v972_v22 = vld [vmem:[%s3665_s4 + $0xb10] sm:$0xff]  ;;  %v725_v9 = vld [vmem:[%s3665_s4 + $0x358] sm:$0xff] }
 0x119   :  { %1336 = vmatpush.msra.mxu0 %v920_v15  ;;  %1356 = vmatpush.msra.mxu1 %v984_v49  ;;  %v760_v17 = vld [vmem:[%s3665_s4 + $0x470] sm:$0xff]  ;;  %v805_v2 = vld [vmem:[%s3665_s4 + $0x5d8] sm:$0xff] }
 0x11a   :  { %1301 = vmatpush.msrb.mxu2 %v772_v5  ;;  %1321 = vmatpush.msrb.mxu3 %v836_v7  ;;  %v824_v23 = vld [vmem:[%s3665_s4 + $0x670] sm:$0xff]  ;;  %v869_v62 = vld [vmem:[%s3665_s4 + $0x7d8] sm:$0xff] }
 0x11b   :  { %1337 = vmatpush.msra.mxu0 %v916_v8  ;;  %1357 = vmatpush.msra.mxu1 %v980_v57  ;;  %v904_v24 = vld [vmem:[%s3665_s4 + $0x8f0] sm:$0xff]  ;;  %v657_v63 = vld [vmem:[%s3665_s4 + $0x138] sm:$0xff] }
 0x11c   :  { %1302 = vmatpush.msrb.mxu2 %v768_v0  ;;  %1322 = vmatpush.msrb.mxu3 %v832_v12  ;;  %v968_v25 = vld [vmem:[%s3665_s4 + $0xaf0] sm:$0xff]  ;;  %v721_v1 = vld [vmem:[%s3665_s4 + $0x338] sm:$0xff] }
 0x11d   :  { %1338 = vmatpush.msra.mxu0 %v912_v26  ;;  %1358 = vmatpush.msra.mxu1 %v976_v16  ;;  %v756_v27 = vld [vmem:[%s3665_s4 + $0x450] sm:$0xff]  ;;  %v801_v3 = vld [vmem:[%s3665_s4 + $0x5b8] sm:$0xff] }
 0x11e   :  { %1303 = vmatpush.msrb.mxu2 %v764_v18  ;;  %1323 = vmatpush.msrb.mxu3 %v828_v61  ;;  %v820_v13 = vld [vmem:[%s3665_s4 + $0x650] sm:$0xff]  ;;  %v865_v4 = vld [vmem:[%s3665_s4 + $0x7b8] sm:$0xff] }
 0x11f   :  { %1339 = vmatpush.msra.mxu0 %v908_v20  ;;  %1359 = vmatpush.msra.mxu1 %v972_v22  ;;  %v900_v29 = vld [vmem:[%s3665_s4 + $0x8d0] sm:$0xff]  ;;  %v653_v15 = vld [vmem:[%s3665_s4 + $0x118] sm:$0xff] }
 0x120   :  { %1304 = vmatpush.msrb.mxu2 %v760_v17  ;;  %1324 = vmatpush.msrb.mxu3 %v824_v23  ;;  %v964_v30 = vld [vmem:[%s3665_s4 + $0xad0] sm:$0xff]  ;;  %v717_v49 = vld [vmem:[%s3665_s4 + $0x318] sm:$0xff] }
 0x121   :  { %1340 = vmatpush.msra.mxu0 %v904_v24  ;;  %1360 = vmatpush.msra.mxu1 %v968_v25  ;;  %v752_v31 = vld [vmem:[%s3665_s4 + $0x430] sm:$0xff]  ;;  %v797_v5 = vld [vmem:[%s3665_s4 + $0x598] sm:$0xff] }
 0x122   :  { %v816_v32 = vld [vmem:[%s3665_s4 + $0x630] sm:$0xff]  ;;  %1305 = vmatpush.msrb.mxu2 %v756_v27  ;;  %1325 = vmatpush.msrb.mxu3 %v820_v13  ;;  %v861_v7 = vld [vmem:[%s3665_s4 + $0x798] sm:$0xff] }
 0x123   :  { %v896_v34 = vld [vmem:[%s3665_s4 + $0x8b0] sm:$0xff]  ;;  %1341 = vmatpush.msra.mxu0 %v900_v29  ;;  %1361 = vmatpush.msra.mxu1 %v964_v30  ;;  %v649_v8 = vld [vmem:[%s3665_s4 + $0xf8] sm:$0xff] }
 0x124   :  { %v960_v35 = vld [vmem:[%s3665_s4 + $0xab0] sm:$0xff]  ;;  %1306 = vmatpush.msrb.mxu2 %v752_v31  ;;  %1326 = vmatpush.msrb.mxu3 %v816_v32  ;;  %v713_v57 = vld [vmem:[%s3665_s4 + $0x2f8] sm:$0xff] }
 0x125   :  { %v748_v36 = vld [vmem:[%s3665_s4 + $0x410] sm:$0xff]  ;;  %1342 = vmatpush.msra.mxu0 %v896_v34  ;;  %1362 = vmatpush.msra.mxu1 %v960_v35  ;;  %v793_v0 = vld [vmem:[%s3665_s4 + $0x578] sm:$0xff] }
 0x126   :  { %v812_v37 = vld [vmem:[%s3665_s4 + $0x610] sm:$0xff]  ;;  %1307 = vmatpush.msrb.mxu2 %v748_v36  ;;  %v857_v12 = vld [vmem:[%s3665_s4 + $0x778] sm:$0xff] }
 0x127   :  { %v892_v39 = vld [vmem:[%s3665_s4 + $0x890] sm:$0xff]  ;;  %1327 = vmatpush.msrb.mxu3 %v812_v37  ;;  %1308 = vmatmul.f32.vlgmr.msrb.gmra.mxu2 %v2872_v33  ;;  %v645_v26 = vld [vmem:[%s3665_s4 + $0xd8] sm:$0xff] }
 0x128   :  { %v956_v11 = vld [vmem:[%s3665_s4 + $0xa90] sm:$0xff]  ;;  %1343 = vmatpush.msra.mxu0 %v892_v39  ;;  %1328 = vmatmul.f32.vlgmr.msrb.gmra.mxu3 %v2874_v38  ;;  %v709_v16 = vld [vmem:[%s3665_s4 + $0x2d8] sm:$0xff] }
 0x129   :  { %1363 = vmatpush.msra.mxu1 %v956_v11  ;;  %v888_v44 = vld [vmem:[%s3665_s4 + $0x870] sm:$0xff]  ;;  %1372 = vmatpush.msra.mxu2 %v681_v41  ;;  %v789_v18 = vld [vmem:[%s3665_s4 + $0x558] sm:$0xff] }
 0x12a   :  { %v952_v46 = vld [vmem:[%s3665_s4 + $0xa70] sm:$0xff]  ;;  %1392 = vmatpush.msra.mxu3 %v745_v42  ;;  %1344 = vmatpush.msra.mxu0 %v888_v44  ;;  %v853_v61 = vld [vmem:[%s3665_s4 + $0x758] sm:$0xff] }
 0x12b   :  { %v884_v21 = vld [vmem:[%s3665_s4 + $0x850] sm:$0xff]  ;;  %1364 = vmatpush.msra.mxu1 %v952_v46  ;;  %1373 = vmatpush.msra.mxu2 %v677_v47  ;;  %v641_v20 = vld [vmem:[%s3665_s4 + $0xb8] sm:$0xff] }
 0x12c   :  { %v948_v50 = vld [vmem:[%s3665_s4 + $0xa50] sm:$0xff]  ;;  %1393 = vmatpush.msra.mxu3 %v741_v19  ;;  %1345 = vmatpush.msra.mxu0 %v884_v21  ;;  %v705_v22 = vld [vmem:[%s3665_s4 + $0x2b8] sm:$0xff] }
 0x12d   :  { %v880_v45 = vld [vmem:[%s3665_s4 + $0x830] sm:$0xff]  ;;  %1365 = vmatpush.msra.mxu1 %v948_v50  ;;  %1374 = vmatpush.msra.mxu2 %v673_v52  ;;  %v785_v17 = vld [vmem:[%s3665_s4 + $0x538] sm:$0xff] }
 0x12e   :  { %v944_v55 = vld [vmem:[%s3665_s4 + $0xa30] sm:$0xff]  ;;  %1394 = vmatpush.msra.mxu3 %v737_v54  ;;  %1346 = vmatpush.msra.mxu0 %v880_v45  ;;  %v849_v23 = vld [vmem:[%s3665_s4 + $0x738] sm:$0xff] }
 0x12f   :  { %v876_v40 = vld [vmem:[%s3665_s4 + $0x810] sm:$0xff]  ;;  %1366 = vmatpush.msra.mxu1 %v944_v55  ;;  %1375 = vmatpush.msra.mxu2 %v669_v43  ;;  %v637_v24 = vld [vmem:[%s3665_s4 + $0x98] sm:$0xff] }
 0x130   :  { %v940_v56 = vld [vmem:[%s3665_s4 + $0xa10] sm:$0xff]  ;;  %1395 = vmatpush.msra.mxu3 %v733_v51  ;;  %1347 = vmatpush.msra.mxu0 %v876_v40  ;;  %v701_v25 = vld [vmem:[%s3665_s4 + $0x298] sm:$0xff] }
 0x131   :  { %1367 = vmatpush.msra.mxu1 %v940_v56  ;;  %1348 = vmatmul.f32.vlgmr.msra.gmra.mxu0 %v2902_v48  ;;  %v781_v27 = vld [vmem:[%s3665_s4 + $0x518] sm:$0xff] }
 0x132   :  { %1368 = vmatmul.f32.vlgmr.msra.gmra.mxu1 %v2904_v14  ;;  %1376 = vmatpush.msra.mxu2 %v665_v10  ;;  %v845_v13 = vld [vmem:[%s3665_s4 + $0x718] sm:$0xff] }
 0x133   :  { %1396 = vmatpush.msra.mxu3 %v729_v58  ;;  %1412 = vmatpush.msrb.mxu0 %v809_v53  ;;  %v633_v29 = vld [vmem:[%s3665_s4 + $0x78] sm:$0xff] }
 0x134   :  { %1432 = vmatpush.msrb.mxu1 %v873_v59  ;;  %1377 = vmatpush.msra.mxu2 %v661_v60  ;;  %v697_v30 = vld [vmem:[%s3665_s4 + $0x278] sm:$0xff] }
 0x135   :  { %1397 = vmatpush.msra.mxu3 %v725_v9  ;;  %1413 = vmatpush.msrb.mxu0 %v805_v2  ;;  %v777_v31 = vld [vmem:[%s3665_s4 + $0x4f8] sm:$0xff]  ;;  %v1511_v2 = vld [vmem:[#allocation2 + $0x78] sm:$0xff] }
 0x136   :  { %1433 = vmatpush.msrb.mxu1 %v869_v62  ;;  %1378 = vmatpush.msra.mxu2 %v657_v63  ;;  %v841_v32 = vld [vmem:[%s3665_s4 + $0x6f8] sm:$0xff]  ;;  %v1527_v62 = vld [vmem:[#allocation2 + $0xf8] sm:$0xff] }
 0x137   :  { %1398 = vmatpush.msra.mxu3 %v721_v1  ;;  %1414 = vmatpush.msrb.mxu0 %v801_v3  ;;  %v629_v34 = vld [vmem:[%s3665_s4 + $0x58] sm:$0xff] }
 0x138   :  { %1434 = vmatpush.msrb.mxu1 %v865_v4  ;;  %1379 = vmatpush.msra.mxu2 %v653_v15  ;;  %v693_v35 = vld [vmem:[%s3665_s4 + $0x258] sm:$0xff] }
 0x139   :  { %1399 = vmatpush.msra.mxu3 %v717_v49  ;;  %1415 = vmatpush.msrb.mxu0 %v797_v5  ;;  %v773_v36 = vld [vmem:[%s3665_s4 + $0x4d8] sm:$0xff]  ;;  %v1525_v49 = vld [vmem:[#allocation2 + $0xe8] sm:$0xff] }
 0x13a   :  { %1435 = vmatpush.msrb.mxu1 %v861_v7  ;;  %1380 = vmatpush.msra.mxu2 %v649_v8  ;;  %v837_v37 = vld [vmem:[%s3665_s4 + $0x6d8] sm:$0xff]  ;;  %v1508_v8 = vld [vmem:[#allocation2 + $0x60] sm:$0xff] }
 0x13b   :  { %1400 = vmatpush.msra.mxu3 %v713_v57  ;;  %1416 = vmatpush.msrb.mxu0 %v793_v0  ;;  %v625_v39 = vld [vmem:[%s3665_s4 + $0x38] sm:$0xff]  ;;  %v1524_v57 = vld [vmem:[#allocation2 + $0xe0] sm:$0xff] }
 0x13c   :  { %1436 = vmatpush.msrb.mxu1 %v857_v12  ;;  %1381 = vmatpush.msra.mxu2 %v645_v26  ;;  %v689_v11 = vld [vmem:[%s3665_s4 + $0x238] sm:$0xff]  ;;  %v3527_v26 = vld [vmem:[%s3666_s5] sm:$0xf] }
 0x13d   :  { %1401 = vmatpush.msra.mxu3 %v709_v16  ;;  %1417 = vmatpush.msrb.mxu0 %v789_v18  ;;  %v769_v41 = vld [vmem:[%s3665_s4 + $0x4b8] sm:$0xff]  ;;  %v1507_v16 = vld [vmem:[#allocation2 + $0x58] sm:$0xff] }
 0x13e   :  { %1437 = vmatpush.msrb.mxu1 %v853_v61  ;;  %1382 = vmatpush.msra.mxu2 %v641_v20  ;;  %v833_v42 = vld [vmem:[%s3665_s4 + $0x6b8] sm:$0xff]  ;;  %v1523_v18 = vld [vmem:[#allocation2 + $0xd8] sm:$0xff] }
 0x13f   :  { %1402 = vmatpush.msra.mxu3 %v705_v22  ;;  %1418 = vmatpush.msrb.mxu0 %v785_v17  ;;  %v621_v44 = vld [vmem:[%s3665_s4 + $0x18] sm:$0xff] }
 0x140   :  { %1438 = vmatpush.msrb.mxu1 %v849_v23  ;;  %1383 = vmatpush.msra.mxu2 %v637_v24  ;;  %v685_v46 = vld [vmem:[%s3665_s4 + $0x218] sm:$0xff]  ;;  %v1004_v23 = vperm.slane %v3527_v26, 0 }
 0x141   :  { %1403 = vmatpush.msra.mxu3 %v701_v25  ;;  %1419 = vmatpush.msrb.mxu0 %v781_v27  ;;  %v765_v47 = vld [vmem:[%s3665_s4 + $0x498] sm:$0xff]  ;;  %v1029_v27 = vpop.f32.mrf.mxu0 }
 0x142   :  { %1439 = vmatpush.msrb.mxu1 %v845_v13  ;;  %1384 = vmatpush.msra.mxu2 %v633_v29  ;;  %v829_v19 = vld [vmem:[%s3665_s4 + $0x698] sm:$0xff]  ;;  %v1505_v13 = vld [vmem:[#allocation2 + $0x48] sm:$0xff] }
 0x143   :  { %1404 = vmatpush.msra.mxu3 %v697_v30  ;;  %1420 = vmatpush.msrb.mxu0 %v777_v31  ;;  %v937_v21 = vld [vmem:[%s3665_s4 + $0x9f8] sm:$0xff]  ;;  %v1521_v29 = vld [vmem:[#allocation2 + $0xc8] sm:$0xff] }
 0x144   :  { %1440 = vmatpush.msrb.mxu1 %v841_v32  ;;  %1385 = vmatpush.msra.mxu2 %v629_v34  ;;  %v1001_v50 = vld [vmem:[%s3665_s4 + $0xbf8] sm:$0xff]  ;;  %v1504_v32 = vld [vmem:[#allocation2 + $0x40] sm:$0xff] }
 0x145   :  { %1405 = vmatpush.msra.mxu3 %v693_v35  ;;  %1421 = vmatpush.msrb.mxu0 %v773_v36  ;;  %v761_v52 = vld [vmem:[%s3665_s4 + $0x478] sm:$0xff]  ;;  %v1520_v34 = vld [vmem:[#allocation2 + $0xc0] sm:$0xff]  ;;  %v1030_v35 = vadd.f32 %v1029_v27, %v1004_v23 }
 0x146   :  { %1441 = vmatpush.msrb.mxu1 %v837_v37  ;;  %1386 = vmatpush.msra.mxu2 %v625_v39  ;;  %v825_v54 = vld [vmem:[%s3665_s4 + $0x678] sm:$0xff]  ;;  %v1503_v39 = vld [vmem:[#allocation2 + $0x38] sm:$0xff] }
 0x147   :  { %1406 = vmatpush.msra.mxu3 %v689_v11  ;;  %1422 = vmatpush.msrb.mxu0 %v769_v41  ;;  %v933_v45 = vld [vmem:[%s3665_s4 + $0x9d8] sm:$0xff]  ;;  %v1519_v11 = vld [vmem:[#allocation2 + $0xb8] sm:$0xff] }
 0x148   :  { %1442 = vmatpush.msrb.mxu1 %v833_v42  ;;  %1387 = vmatpush.msra.mxu2 %v621_v44  ;;  %v997_v55 = vld [vmem:[%s3665_s4 + $0xbd8] sm:$0xff]  ;;  %v1049_v44 = vpop.f32.mrf.mxu1 }
 0x149   :  { %1407 = vmatpush.msra.mxu3 %v685_v46  ;;  %1423 = vmatpush.msrb.mxu0 %v765_v47  ;;  %v757_v43 = vld [vmem:[%s3665_s4 + $0x458] sm:$0xff] }
 0x14a   :  { %1443 = vmatpush.msrb.mxu1 %v829_v19  ;;  %1388 = vmatmul.f32.vlgmr.msra.gmra.mxu2 %v2639_v28  ;;  %v821_v28 = vld [vmem:[%s3665_s4 + $0x658] sm:$0xff]  ;;  %v1050_v19 = vadd.f32 %v1049_v44, %v1030_v35 }
 0x14b   :  { %1408 = vmatmul.f32.vlgmr.msra.gmra.mxu3 %v2641_v6  ;;  %1452 = vmatpush.msrb.mxu2 %v937_v21  ;;  %v929_v6 = vld [vmem:[%s3665_s4 + $0x9b8] sm:$0xff] }
 0x14c   :  { %1472 = vmatpush.msrb.mxu3 %v1001_v50  ;;  %1424 = vmatpush.msrb.mxu0 %v761_v52  ;;  %v993_v51 = vld [vmem:[%s3665_s4 + $0xbb8] sm:$0xff] }
 0x14d   :  { %1444 = vmatpush.msrb.mxu1 %v825_v54  ;;  %1453 = vmatpush.msrb.mxu2 %v933_v45  ;;  %v753_v40 = vld [vmem:[%s3665_s4 + $0x438] sm:$0xff]  ;;  %v1501_v54 = vld [vmem:[#allocation2 + $0x28] sm:$0xff] }
 0x14e   :  { %1473 = vmatpush.msrb.mxu3 %v997_v55  ;;  %v817_v56 = vld [vmem:[%s3665_s4 + $0x638] sm:$0xff]  ;;  %1425 = vmatpush.msrb.mxu0 %v757_v43  ;;  %v1517_v45 = vld [vmem:[#allocation2 + $0xa8] sm:$0xff] }
 0x14f   :  { %1445 = vmatpush.msrb.mxu1 %v821_v28  ;;  %v925_v10 = vld [vmem:[%s3665_s4 + $0x998] sm:$0xff]  ;;  %1454 = vmatpush.msrb.mxu2 %v929_v6 }
 0x150   :  { %v989_v58 = vld [vmem:[%s3665_s4 + $0xb98] sm:$0xff]  ;;  %1474 = vmatpush.msrb.mxu3 %v993_v51  ;;  %1426 = vmatpush.msrb.mxu0 %v753_v40  ;;  %v1500_v40 = vld [vmem:[#allocation2 + $0x20] sm:$0xff] }
 0x151   :  { %v749_v53 = vld [vmem:[%s3665_s4 + $0x418] sm:$0xff]  ;;  %1446 = vmatpush.msrb.mxu1 %v817_v56  ;;  %1455 = vmatpush.msrb.mxu2 %v925_v10  ;;  %v1516_v56 = vld [vmem:[#allocation2 + $0xa0] sm:$0xff] }
 0x152   :  { %v813_v59 = vld [vmem:[%s3665_s4 + $0x618] sm:$0xff]  ;;  %1475 = vmatpush.msrb.mxu3 %v989_v58  ;;  %1427 = vmatpush.msrb.mxu0 %v749_v53  ;;  %v1499_v53 = vld [vmem:[#allocation2 + $0x18] sm:$0xff] }
 0x153   :  { %v921_v60 = vld [vmem:[%s3665_s4 + $0x978] sm:$0xff]  ;;  %1447 = vmatpush.msrb.mxu1 %v813_v59  ;;  %1428 = vmatmul.f32.vlgmr.msrb.gmra.mxu0 %v2872_v33 }
 0x154   :  { %v985_v9 = vld [vmem:[%s3665_s4 + $0xb78] sm:$0xff]  ;;  %1448 = vmatmul.f32.vlgmr.msrb.gmra.mxu1 %v2874_v38  ;;  %1456 = vmatpush.msrb.mxu2 %v921_v60  ;;  %v1509_v38 = vld [vmem:[#allocation2 + $0x68] sm:$0xff] }
 0x155   :  { %v917_v63 = vld [vmem:[%s3665_s4 + $0x958] sm:$0xff]  ;;  %1476 = vmatpush.msrb.mxu3 %v985_v9  ;;  %1564 = vmatpush.msra.mxu0 %v1511_v2  ;;  %v1515_v2 = vld [vmem:[#allocation2 + $0x98] sm:$0xff] }
 0x156   :  { %v981_v1 = vld [vmem:[%s3665_s4 + $0xb58] sm:$0xff]  ;;  %1584 = vmatpush.msra.mxu1 %v1527_v62  ;;  %1457 = vmatpush.msrb.mxu2 %v917_v63  ;;  %v1497_v62 = vld [vmem:[#allocation2 + $0x8] sm:$0xff] }
 0x157   :  { %v1510_v3 = vld [vmem:[#allocation2 + $0x70] sm:$0xff]  ;;  %1477 = vmatpush.msrb.mxu3 %v981_v1  ;;  %v1513_v1 = vld [vmem:[#allocation2 + $0x88] sm:$0xff] }
 0x158   :  { %v1526_v4 = vld [vmem:[#allocation2 + $0xf0] sm:$0xff]  ;;  %1565 = vmatpush.msra.mxu0 %v1510_v3  ;;  %v1543_v3 = vld [vmem:[#allocation2 + $0x178] sm:$0xff] }
 0x159   :  { %v913_v15 = vld [vmem:[%s3665_s4 + $0x938] sm:$0xff]  ;;  %1585 = vmatpush.msra.mxu1 %v1526_v4 }
 0x15a   :  { %v977_v33 = vld [vmem:[%s3665_s4 + $0xb38] sm:$0xff]  ;;  %1458 = vmatpush.msrb.mxu2 %v913_v15  ;;  %1566 = vmatpush.msra.mxu0 %v1509_v38  ;;  %v1540_v38 = vld [vmem:[#allocation2 + $0x160] sm:$0xff] }
 0x15b   :  { %v909_v5 = vld [vmem:[%s3665_s4 + $0x918] sm:$0xff]  ;;  %1478 = vmatpush.msrb.mxu3 %v977_v33  ;;  %1586 = vmatpush.msra.mxu1 %v1525_v49  ;;  %v1541_v33 = vld [vmem:[#allocation2 + $0x168] sm:$0xff]  ;;  %v1539_v49 = vld [vmem:[#allocation2 + $0x158] sm:$0xff] }
 0x15c   :  { %v973_v7 = vld [vmem:[%s3665_s4 + $0xb18] sm:$0xff]  ;;  %1459 = vmatpush.msrb.mxu2 %v909_v5  ;;  %1567 = vmatpush.msra.mxu0 %v1508_v8  ;;  %v1005_v5 = vperm.slane %v3527_v26, 1 }
 0x15d   :  { %v905_v0 = vld [vmem:[%s3665_s4 + $0x8f8] sm:$0xff]  ;;  %1479 = vmatpush.msrb.mxu3 %v973_v7  ;;  %1587 = vmatpush.msra.mxu1 %v1524_v57  ;;  %v1537_v57 = vld [vmem:[#allocation2 + $0x148] sm:$0xff] }
 0x15e   :  { %v969_v12 = vld [vmem:[%s3665_s4 + $0xaf8] sm:$0xff]  ;;  %1460 = vmatpush.msrb.mxu2 %v905_v0  ;;  %1568 = vmatpush.msra.mxu0 %v1507_v16 }
 0x15f   :  { %v901_v61 = vld [vmem:[%s3665_s4 + $0x8d8] sm:$0xff]  ;;  %1480 = vmatpush.msrb.mxu3 %v969_v12  ;;  %1588 = vmatpush.msra.mxu1 %v1523_v18  ;;  %v1536_v12 = vld [vmem:[#allocation2 + $0x140] sm:$0xff]  ;;  %v1535_v18 = vld [vmem:[#allocation2 + $0x138] sm:$0xff] }
 0x160   :  { %v965_v20 = vld [vmem:[%s3665_s4 + $0xad8] sm:$0xff]  ;;  %1461 = vmatpush.msrb.mxu2 %v901_v61 }
 0x161   :  { %v1506_v22 = vld [vmem:[#allocation2 + $0x50] sm:$0xff]  ;;  %1481 = vmatpush.msrb.mxu3 %v965_v20 }
 0x162   :  { %v1522_v17 = vld [vmem:[#allocation2 + $0xd0] sm:$0xff]  ;;  %1569 = vmatpush.msra.mxu0 %v1506_v22 }
 0x163   :  { %v897_v24 = vld [vmem:[%s3665_s4 + $0x8b8] sm:$0xff]  ;;  %1589 = vmatpush.msra.mxu1 %v1522_v17 }
 0x164   :  { %v961_v25 = vld [vmem:[%s3665_s4 + $0xab8] sm:$0xff]  ;;  %1462 = vmatpush.msrb.mxu2 %v897_v24  ;;  %1570 = vmatpush.msra.mxu0 %v1505_v13 }
 0x165   :  { %v893_v30 = vld [vmem:[%s3665_s4 + $0x898] sm:$0xff]  ;;  %1482 = vmatpush.msrb.mxu3 %v961_v25  ;;  %1590 = vmatpush.msra.mxu1 %v1521_v29 }
 0x166   :  { %v957_v31 = vld [vmem:[%s3665_s4 + $0xa98] sm:$0xff]  ;;  %1463 = vmatpush.msrb.mxu2 %v893_v30  ;;  %1571 = vmatpush.msra.mxu0 %v1504_v32  ;;  %v1069_v52 = vpop.f32.mrf.mxu2  ;;  %v1089_v6 = vpop.f32.mrf.mxu3  ;;  %v1532_v32 = vld [vmem:[#allocation2 + $0x120] sm:$0xff] }
 0x167   :  { %v889_v36 = vld [vmem:[%s3665_s4 + $0x878] sm:$0xff]  ;;  %1483 = vmatpush.msrb.mxu3 %v957_v31  ;;  %1591 = vmatpush.msra.mxu1 %v1520_v34  ;;  %v1070_v28 = vadd.f32 %v1069_v52, %v1050_v19  ;;  %v1533_v31 = vld [vmem:[#allocation2 + $0x128] sm:$0xff]  ;;  %v1531_v34 = vld [vmem:[#allocation2 + $0x118] sm:$0xff] }
 0x168   :  { %v953_v37 = vld [vmem:[%s3665_s4 + $0xa78] sm:$0xff]  ;;  %1464 = vmatpush.msrb.mxu2 %v889_v36  ;;  %1572 = vmatpush.msra.mxu0 %v1503_v39  ;;  %v1109_v10 = vpop.f32.mrf.mxu0  ;;  %v1129_v59 = vpop.f32.mrf.mxu1  ;;  %v1529_v36 = vld [vmem:[#allocation2 + $0x108] sm:$0xff]  ;;  %v1006_v39 = vperm.slane %v3527_v26, 2 }
 0x169   :  { %v885_v41 = vld [vmem:[%s3665_s4 + $0x858] sm:$0xff]  ;;  %1484 = vmatpush.msrb.mxu3 %v953_v37  ;;  %1592 = vmatpush.msra.mxu1 %v1519_v11  ;;  %v1090_v51 = vadd.f32 %v1089_v6, %v1070_v28  ;;  %v1528_v37 = vld [vmem:[#allocation2 + $0x100] sm:$0xff]  ;;  %v1557_v6 = vld [vmem:[#allocation2 + $0x1e8] sm:$0xff] }
 0x16a   :  { %v949_v42 = vld [vmem:[%s3665_s4 + $0xa58] sm:$0xff]  ;;  %1465 = vmatpush.msrb.mxu2 %v885_v41 }
 0x16b   :  { %v1502_v46 = vld [vmem:[#allocation2 + $0x30] sm:$0xff]  ;;  %1485 = vmatpush.msrb.mxu3 %v949_v42  ;;  %v1110_v58 = vadd.f32 %v1109_v10, %v1090_v51  ;;  %v1556_v51 = vld [vmem:[#allocation2 + $0x1e0] sm:$0xff]  ;;  %v1553_v10 = vld [vmem:[#allocation2 + $0x1c8] sm:$0xff] }
 0x16c   :  { %v1518_v47 = vld [vmem:[#allocation2 + $0xb0] sm:$0xff]  ;;  %1573 = vmatpush.msra.mxu0 %v1502_v46 }
 0x16d   :  { %v881_v21 = vld [vmem:[%s3665_s4 + $0x838] sm:$0xff]  ;;  %1593 = vmatpush.msra.mxu1 %v1518_v47  ;;  %v1130_v60 = vadd.f32 %v1129_v59, %v1110_v58  ;;  %v1552_v58 = vld [vmem:[#allocation2 + $0x1c0] sm:$0xff] }
 0x16e   :  { %v945_v50 = vld [vmem:[%s3665_s4 + $0xa38] sm:$0xff]  ;;  %1466 = vmatpush.msrb.mxu2 %v881_v21  ;;  %1574 = vmatpush.msra.mxu0 %v1501_v54 }
 0x16f   :  { %v877_v55 = vld [vmem:[%s3665_s4 + $0x818] sm:$0xff]  ;;  %1486 = vmatpush.msrb.mxu3 %v945_v50  ;;  %1594 = vmatpush.msra.mxu1 %v1517_v45  ;;  %v1492_v15 = vmax.f32 %v1130_v60, 0.0  ;;  %v1149_v7 = vpop.f32.mrf.mxu2  ;;  %v1169_v16 = vpop.f32.mrf.mxu3  ;;  %v1549_v60 = vld [vmem:[#allocation2 + $0x1a8] sm:$0xff] }
 0x170   :  { %v941_v43 = vld [vmem:[%s3665_s4 + $0xa18] sm:$0xff]  ;;  %1467 = vmatpush.msrb.mxu2 %v877_v55  ;;  %1575 = vmatpush.msra.mxu0 %v1500_v40  ;;  %v1150_v0 = vadd.f32 %v1149_v7, %v1005_v5  ;;  %v1555_v40 = vld [vmem:[#allocation2 + $0x1d8] sm:$0xff] }
 0x171   :  { %1487 = vmatpush.msrb.mxu3 %v941_v43  ;;  %1468 = vmatmul.f32.vlgmr.msrb.gmra.mxu2 %v2902_v48  ;;  %v1498_v9 = vld [vmem:[#allocation2 + $0x10] sm:$0xff]  ;;  %v1496_v48 = vld [vmem:[#allocation2] sm:$0xff]  ;;  %v1559_v43 = vld [vmem:[#allocation2 + $0x1f8] sm:$0xff] }
 0x172   :  { %1488 = vmatmul.f32.vlgmr.msrb.gmra.mxu3 %v2904_v14  ;;  %1595 = vmatpush.msra.mxu1 %v1516_v56  ;;  %v1514_v63 = vld [vmem:[#allocation2 + $0x90] sm:$0xff]  ;;  %v1512_v14 = vld [vmem:[#allocation2 + $0x80] sm:$0xff]  ;;  %v1170_v61 = vadd.f32 %v1169_v16, %v1150_v0  ;;  %v1189_v22 = vpop.f32.mrf.mxu0  ;;  %v1209_v23 = vpop.f32.mrf.mxu1 }
 0x173   :  { %1576 = vmatpush.msra.mxu0 %v1499_v53  ;;  %v1542_v4 = vld [vmem:[#allocation2 + $0x170] sm:$0xff]  ;;  %1604 = vmatpush.msra.mxu2 %v1543_v3  ;;  %v1551_v53 = vld [vmem:[#allocation2 + $0x1b8] sm:$0xff]  ;;  %v1007_v3 = vperm.slane %v3527_v26, 3  ;;  %v1659_v26 = vld [vmem:[%s3669_s8 + $0x70] sm:$0xff] }
 0x174   :  { %1596 = vmatpush.msra.mxu1 %v1515_v2  ;;  %v1538_v8 = vld [vmem:[#allocation2 + $0x150] sm:$0xff]  ;;  %v1190_v17 = vadd.f32 %v1189_v22, %v1170_v61  ;;  %1624 = vmatpush.msra.mxu3 %v1559_v43  ;;  %v1547_v2 = vld [vmem:[#allocation2 + $0x198] sm:$0xff]  ;;  %v1655_v22 = vld [vmem:[%s3669_s8 + $0x50] sm:$0xff] }
 0x175   :  { %1577 = vmatpush.msra.mxu0 %v1498_v9  ;;  %1605 = vmatpush.msra.mxu2 %v1542_v4  ;;  %v1534_v20 = vld [vmem:[#allocation2 + $0x130] sm:$0xff]  ;;  %v1548_v9 = vld [vmem:[#allocation2 + $0x1a0] sm:$0xff]  ;;  %v1657_v61 = vld [vmem:[%s3669_s8 + $0x60] sm:$0xff] }
 0x176   :  { %1597 = vmatpush.msra.mxu1 %v1514_v63  ;;  %v1210_v24 = vadd.f32 %v1209_v23, %v1190_v17  ;;  %v1530_v35 = vld [vmem:[#allocation2 + $0x110] sm:$0xff]  ;;  %v1545_v63 = vld [vmem:[#allocation2 + $0x188] sm:$0xff]  ;;  %v1654_v17 = vld [vmem:[%s3669_s8 + $0x48] sm:$0xff] }
 0x177   :  { %1578 = vmatpush.msra.mxu0 %v1497_v62  ;;  %1606 = vmatpush.msra.mxu2 %v1541_v33  ;;  %v1558_v28 = vld [vmem:[#allocation2 + $0x1f0] sm:$0xff]  ;;  %v1653_v23 = vld [vmem:[%s3669_s8 + $0x40] sm:$0xff] }
 0x178   :  { %1598 = vmatpush.msra.mxu1 %v1513_v1  ;;  %1625 = vmatpush.msra.mxu3 %v1558_v28  ;;  %v1554_v56 = vld [vmem:[#allocation2 + $0x1d0] sm:$0xff]  ;;  %v1544_v1 = vld [vmem:[#allocation2 + $0x180] sm:$0xff]  ;;  %v1777_v43 = vld [vmem:[%s3670_s9] ss:$0 sm:$0xff] }
 0x179   :  { %1579 = vmatpush.msra.mxu0 %v1496_v48  ;;  %1607 = vmatpush.msra.mxu2 %v1540_v38  ;;  %v1550_v59 = vld [vmem:[#allocation2 + $0x1b0] sm:$0xff] }
 0x17a   :  { %1580 = vmatmul.f32.vlgmr.msra.gmra.mxu0 %v1492_v15  ;;  %1599 = vmatpush.msra.mxu1 %v1512_v14  ;;  %v1546_v62 = vld [vmem:[#allocation2 + $0x190] sm:$0xff] }
 0x17b   :  { %1608 = vmatpush.msra.mxu2 %v1539_v49  ;;  %1626 = vmatpush.msra.mxu3 %v1557_v6  ;;  %v1660_v16 = vld [vmem:[%s3669_s8 + $0x78] sm:$0xff] }
 0x17c   :  { %1665 = vmatpush.msrb.mxu0 %v1660_v16 }
 0x17d   :  { %1609 = vmatpush.msra.mxu2 %v1538_v8  ;;  %1627 = vmatpush.msra.mxu3 %v1556_v51 }
 0x17e   :  { %1666 = vmatpush.msrb.mxu0 %v1659_v26 }
 0x17f   :  { %1610 = vmatpush.msra.mxu2 %v1537_v57  ;;  %1628 = vmatpush.msra.mxu3 %v1555_v40  ;;  %v1778_v40 = vld [vmem:[%s3672_s11] ss:$0 sm:$0xff] }
 0x181   :  { %1611 = vmatpush.msra.mxu2 %v1536_v12  ;;  %1629 = vmatpush.msra.mxu3 %v1554_v56 }
 0x183   :  { %1612 = vmatpush.msra.mxu2 %v1535_v18  ;;  %1630 = vmatpush.msra.mxu3 %v1553_v10  ;;  %v1658_v18 = vld [vmem:[%s3669_s8 + $0x68] sm:$0xff] }
 0x184   :  { %1667 = vmatpush.msrb.mxu0 %v1658_v18 }
 0x185   :  { %1613 = vmatpush.msra.mxu2 %v1534_v20  ;;  %1631 = vmatpush.msra.mxu3 %v1552_v58  ;;  %v1656_v20 = vld [vmem:[%s3669_s8 + $0x58] sm:$0xff] }
 0x186   :  { %1668 = vmatpush.msrb.mxu0 %v1657_v61 }
 0x187   :  { %1614 = vmatpush.msra.mxu2 %v1533_v31  ;;  %1632 = vmatpush.msra.mxu3 %v1551_v53  ;;  %v1646_v31 = vld [vmem:[%s3669_s8 + $0x8] sm:$0xff] }
 0x188   :  { %1669 = vmatpush.msrb.mxu0 %v1656_v20 }
 0x189   :  { %v1229_v25 = vpop.f32.mrf.mxu2  ;;  %v1249_v13 = vpop.f32.mrf.mxu3  ;;  %1615 = vmatpush.msra.mxu2 %v1532_v32  ;;  %1633 = vmatpush.msra.mxu3 %v1550_v59  ;;  %v1645_v32 = vld [vmem:[%s3669_s8] sm:$0xff] }
 0x18a   :  { %v1230_v27 = vadd.f32 %v1229_v25, %v1210_v24  ;;  %1670 = vmatpush.msrb.mxu0 %v1655_v22  ;;  %v1652_v24 = vld [vmem:[%s3669_s8 + $0x38] sm:$0xff]  ;;  %v1651_v25 = vld [vmem:[%s3669_s8 + $0x30] sm:$0xff] }
 0x18b   :  { %1616 = vmatpush.msra.mxu2 %v1531_v34  ;;  %1634 = vmatpush.msra.mxu3 %v1549_v60  ;;  %v1693_v34 = vld [vmem:[%s3671_s10 + $0x38] sm:$0xff] }
 0x18c   :  { %v1250_v29 = vadd.f32 %v1249_v13, %v1230_v27  ;;  %v1269_v11 = vpop.f32.mrf.mxu0  ;;  %v1289_v42 = vpop.f32.mrf.mxu1  ;;  %1671 = vmatpush.msrb.mxu0 %v1654_v17  ;;  %v1650_v27 = vld [vmem:[%s3669_s8 + $0x28] sm:$0xff]  ;;  %v1649_v13 = vld [vmem:[%s3669_s8 + $0x20] sm:$0xff]  ;;  %1710 = vmatpush.msrb.mxu1 %v1693_v34 }
 0x18d   :  { %1617 = vmatpush.msra.mxu2 %v1530_v35  ;;  %v1270_v41 = vadd.f32 %v1269_v11, %v1006_v39  ;;  %1635 = vmatpush.msra.mxu3 %v1548_v9  ;;  %v1692_v35 = vld [vmem:[%s3671_s10 + $0x30] sm:$0xff]  ;;  %v1689_v39 = vld [vmem:[%s3671_s10 + $0x18] sm:$0xff]  ;;  %v1776_v11 = vld [vmem:[%s3668_s7] ss:$0 sm:$0xff] }
 0x18e   :  { %v1493_v30 = vmax.f32 %v1250_v29, 0.0  ;;  %1672 = vmatpush.msrb.mxu0 %v1653_v23  ;;  %v1648_v29 = vld [vmem:[%s3669_s8 + $0x18] sm:$0xff]  ;;  %1711 = vmatpush.msrb.mxu1 %v1692_v35 }
 0x18f   :  { %1618 = vmatpush.msra.mxu2 %v1529_v36  ;;  %v1290_v44 = vadd.f32 %v1289_v42, %v1270_v41  ;;  %1636 = vmatpush.msra.mxu3 %v1547_v2  ;;  %v1691_v36 = vld [vmem:[%s3671_s10 + $0x28] sm:$0xff] }
 0x190   :  { %1600 = vmatmul.f32.vlgmr.msra.gmra.mxu1 %v1493_v30  ;;  %1673 = vmatpush.msrb.mxu0 %v1652_v24  ;;  %v1647_v30 = vld [vmem:[%s3669_s8 + $0x10] sm:$0xff] }
 0x191   :  { %1619 = vmatpush.msra.mxu2 %v1528_v37  ;;  %1637 = vmatpush.msra.mxu3 %v1546_v62  ;;  %v1690_v37 = vld [vmem:[%s3671_s10 + $0x20] sm:$0xff] }
 0x192   :  { %1674 = vmatpush.msrb.mxu0 %v1651_v25  ;;  %1712 = vmatpush.msrb.mxu1 %v1691_v36 }
 0x193   :  { %1638 = vmatpush.msra.mxu3 %v1545_v63 }
 0x194   :  { %1675 = vmatpush.msrb.mxu0 %v1650_v27  ;;  %1713 = vmatpush.msrb.mxu1 %v1690_v37 }
 0x195   :  { %1639 = vmatpush.msra.mxu3 %v1544_v1 }
 0x196   :  { %1676 = vmatpush.msrb.mxu0 %v1649_v13  ;;  %1714 = vmatpush.msrb.mxu1 %v1689_v39 }
 0x198   :  { %1677 = vmatpush.msrb.mxu0 %v1648_v29 }
 0x19a   :  { %1678 = vmatpush.msrb.mxu0 %v1647_v30 }
 0x19c   :  { %1679 = vmatpush.msrb.mxu0 %v1646_v31 }
 0x19e   :  { %1680 = vmatpush.msrb.mxu0 %v1645_v32 }
 0x1aa   :  { %v1309_v46 = vpop.f32.mrf.mxu2 }
 0x1ab   :  { %v1310_v47 = vadd.f32 %v1309_v46, %v1290_v44  ;;  %v1329_v19 = vpop.f32.mrf.mxu3 }
 0x1ad   :  { %v1330_v21 = vadd.f32 %v1329_v19, %v1310_v47 }
 0x1ae   :  { %v1349_v50 = vpop.f32.mrf.mxu0 }
 0x1af   :  { %v1350_v52 = vadd.f32 %v1349_v50, %v1330_v21  ;;  %v1369_v54 = vpop.f32.mrf.mxu1 }
 0x1b1   :  { %v1370_v45 = vadd.f32 %v1369_v54, %v1350_v52  ;;  %v1688_v54 = vld [vmem:[%s3671_s10 + $0x10] sm:$0xff] }
 0x1b2   :  { %1715 = vmatpush.msrb.mxu1 %v1688_v54 }
 0x1b3   :  { %v1494_v55 = vmax.f32 %v1370_v45, 0.0  ;;  %v1687_v45 = vld [vmem:[%s3671_s10 + $0x8] sm:$0xff] }
 0x1b4   :  { %1716 = vmatpush.msrb.mxu1 %v1687_v45 }
 0x1b5   :  { %1620 = vmatmul.f32.vlgmr.msra.gmra.mxu2 %v1494_v55  ;;  %v1686_v55 = vld [vmem:[%s3671_s10] sm:$0xff]  ;;  %s1731_s10 = sshll.u32 %s3673_s12, 4  ;;  %s1732_s10 = int_to_ptr.hbm [resolvable:$true] %s1731_s10 }
 0x1b6   :  { %1717 = vmatpush.msrb.mxu1 %v1686_v55 }
 0x1cd   :  { %v1389_v4 = vpop.f32.mrf.mxu2 }
 0x1ce   :  { %v1390_v15 = vadd.f32 %v1389_v4, %v1007_v3  ;;  %v1409_v48 = vpop.f32.mrf.mxu3 }
 0x1d0   :  { %v1410_v14 = vadd.f32 %v1409_v48, %v1390_v15  ;;  %v1429_v33 = vpop.f32.mrf.mxu0 }
 0x1d1   :  { %v1449_v49 = vpop.f32.mrf.mxu1 }
 0x1d2   :  { %v1430_v38 = vadd.f32 %v1429_v33, %v1410_v14 }
 0x1d4   :  { %v1450_v5 = vadd.f32 %v1449_v49, %v1430_v38 }
 0x1f4   :  { %v1469_v7 = vpop.f32.mrf.mxu2 }
 0x1f5   :  { %v1470_v8 = vadd.f32 %v1469_v7, %v1450_v5  ;;  %v1489_v57 = vpop.f32.mrf.mxu3 }
 0x1f7   :  { %v1490_v0 = vadd.f32 %v1489_v57, %v1470_v8  ;;  %v1581_v41 = vpop.f32.mrf.mxu0 }
 0x1f8   :  { %v1582_v44 = vadd.f32 %v1776_v11, %v1581_v41 }
 0x1f9   :  { %v1495_v12 = vmax.f32 %v1490_v0, 0.0 }
 0x1fb   :  { %1640 = vmatmul.f32.vlgmr.msra.gmra.mxu3 %v1495_v12 }
 0x20d   :  { %v1601_v42 = vpop.f32.mrf.mxu1 }
 0x20e   :  { %v1602_v47 = vadd.f32 %v1601_v42, %v1582_v44 }
 0x238   :  { %v1621_v46 = vpop.f32.mrf.mxu2 }
 0x239   :  { %v1622_v19 = vadd.f32 %v1621_v46, %v1602_v47 }
 0x27e   :  { %v1641_v21 = vpop.f32.mrf.mxu3 }
 0x27f   :  { %v1642_v50 = vadd.f32 %v1641_v21, %v1622_v19 }
 0x281   :  { %v1644_v52 = vmax.f32 %v1642_v50, 0.0 }
 0x283   :  { %1681 = vmatmul.f32.vlgmr.msrb.gmra.mxu0 %v1644_v52 }
 0x300   :  { %v1682_v28 = vpop.f32.mrf.mxu0 }
 0x301   :  { %v1683_v6 = vadd.f32 %v1777_v43, %v1682_v28 }
 0x303   :  { %v1685_v51 = vmax.f32 %v1683_v6, 0.0 }
 0x305   :  { %1767 = vmatmul.msk.f32.vlgmr.msrb.gmra.mxu1 %vm1698_vm15, %v1685_v51 }
 0x382   :  { %v1719_v56 = vpop.f32.mrf.mxu1 }
 0x383   :  { %v1720_v10 = vadd.f32 %v1778_v40, %v1719_v56 }
 0x385   :  { %1723 = vst.msk [vmem:[#allocation5] sm:$0x3] %vm1722_vm2, %v1720_v10 }
 0x386   :  { %1734 = dma.vmem_to_hbm [thread:$0]  %s1730_s18, 32, %s1732_s10, [#allocation4]  }
 0x387   :  { %1841 = dma.done.wait [#allocation4], 32  }
 0x388   :  { %1842 = vsyncadd [#allocation4], 4294967264 }
 0x389   :  { %1739 = vsyncpa [#allocation3], 1 }
 0x38a   :  { %1740 = vsyncpa [#allocation4], 1 }

</bundles_post_ra>
